<compile_context>
chip_gen: v7x
topology: tpu7x:2x2x1
jax: 0.10.0
libtpu: 0.0.40
codegen_flags: <defaults>
</compile_context>

<pallas_src>
import jax
import jax.numpy as jnp
from jax.experimental import pallas as pl
from jax.experimental.pallas import tpu as pltpu


# ----------------------------------------------------------------------------
# Kernels (all operate on [channels x pixels] tiles; one grid step per image)
# ----------------------------------------------------------------------------
def _conv1_lrelu_kernel(x_ref, w_ref, b_ref, o_ref):
    """Conv2d(1->32, k=4, s=2, p=1) as one aligned im2col matmul + bias + LeakyReLU.

    x_ref: (1, 16, 4096) bf16   im2col: 16 taps on sublanes, output pixels on lanes
    w_ref: (32, 16)      bf16   [cout, kh*4+kw]
    b_ref: (32, 1)       f32    per-channel bias (sublane broadcast; minor)
    o_ref: (1, 32, 4096) bf16   channels on sublanes, pixels on lanes (lane-dense)
    """
    y = jnp.dot(w_ref[...], x_ref[0], preferred_element_type=jnp.float32)
    y = y + b_ref[...]
    y = jnp.where(y > 0, y, 0.2 * y)                    # LeakyReLU(0.2)
    o_ref[0] = y.astype(o_ref.dtype)


def _conv2_bn_lrelu_kernel(x_ref, w_ref, s_ref, t_ref, o_ref):
    """Conv2d(32->64, k=4, s=2, p=1) + eval-BN + LeakyReLU; single K=512 matmul.

    x_ref: (1, 512, 1024) bf16   im2col: (kh,kw,ci) on sublanes, pixels on lanes
    w_ref: (64, 512)      bf16
    s_ref, t_ref: (64, 1) f32    BN scale/shift (conv bias folded in)
    o_ref: (1, 64, 1024)  bf16   lane-dense
    """
    y = jnp.dot(w_ref[...], x_ref[0], preferred_element_type=jnp.float32)
    y = y * s_ref[...] + t_ref[...]
    y = jnp.where(y > 0, y, 0.2 * y)
    o_ref[0] = y.astype(o_ref.dtype)


def _conv3_bn_lrelu_fc_sigmoid_kernel(x_ref, w_ref, s_ref, t_ref, wfc_ref,
                                      bfc_ref, prob_ref, logit_ref):
    """Conv2d(64->128)+BN+LeakyReLU fused with Flatten+Linear(32768,1)+Sigmoid.

    x_ref:   (1, 1024, 256) bf16   im2col, K=1024, 256 output pixels on lanes
    w_ref:   (128, 1024)    bf16
    s_ref, t_ref: (128, 1)  f32
    wfc_ref: (128, 256)     f32    FC weight; [channel, pixel] == NCHW flatten order
    bfc_ref: (1,)           f32    SMEM scalar
    prob_ref, logit_ref: (1, 1, 1) f32
    """
    feat = jnp.dot(w_ref[...], x_ref[0], preferred_element_type=jnp.float32)
    feat = feat * s_ref[...] + t_ref[...]
    feat = jnp.where(feat > 0, feat, 0.2 * feat)
    part = jnp.sum(feat * wfc_ref[...], axis=1, keepdims=True)     # (128, 1)
    logit = jnp.sum(part, axis=0, keepdims=True) + bfc_ref[0]      # (1, 1)
    prob = 1.0 / (1.0 + jnp.exp(-logit))                           # Sigmoid
    logit_ref[0] = logit
    prob_ref[0] = prob


# ----------------------------------------------------------------------------
# pallas_call wrappers
# ----------------------------------------------------------------------------
def conv1_lrelu(x_im, w1t, b1):
    n, k, p = x_im.shape
    return pl.pallas_call(
        _conv1_lrelu_kernel,
        out_shape=jax.ShapeDtypeStruct((n, 32, p), jnp.bfloat16),
        grid=(n,),
        in_specs=[
            pl.BlockSpec((1, k, p), lambda i: (i, 0, 0)),
            pl.BlockSpec((32, k), lambda i: (0, 0)),
            pl.BlockSpec((32, 1), lambda i: (0, 0)),
        ],
        out_specs=pl.BlockSpec((1, 32, p), lambda i: (i, 0, 0)),
        compiler_params=pltpu.CompilerParams(dimension_semantics=("parallel",)),
    )(x_im, w1t, b1)


def conv2_bn_lrelu(x_im, w2t, s2, t2):
    n, k, p = x_im.shape
    cout = w2t.shape[0]
    return pl.pallas_call(
        _conv2_bn_lrelu_kernel,
        out_shape=jax.ShapeDtypeStruct((n, cout, p), jnp.bfloat16),
        grid=(n,),
        in_specs=[
            pl.BlockSpec((1, k, p), lambda i: (i, 0, 0)),
            pl.BlockSpec((cout, k), lambda i: (0, 0)),
            pl.BlockSpec((cout, 1), lambda i: (0, 0)),
            pl.BlockSpec((cout, 1), lambda i: (0, 0)),
        ],
        out_specs=pl.BlockSpec((1, cout, p), lambda i: (i, 0, 0)),
        compiler_params=pltpu.CompilerParams(dimension_semantics=("parallel",)),
    )(x_im, w2t, s2, t2)


def conv3_bn_lrelu_fc_sigmoid(x_im, w3t, s3, t3, wfc, bfc):
    n, k, p = x_im.shape
    cout = w3t.shape[0]
    prob, logit = pl.pallas_call(
        _conv3_bn_lrelu_fc_sigmoid_kernel,
        out_shape=(jax.ShapeDtypeStruct((n, 1, 1), jnp.float32),
                   jax.ShapeDtypeStruct((n, 1, 1), jnp.float32)),
        grid=(n,),
        in_specs=[
            pl.BlockSpec((1, k, p), lambda i: (i, 0, 0)),
            pl.BlockSpec((cout, k), lambda i: (0, 0)),
            pl.BlockSpec((cout, 1), lambda i: (0, 0)),
            pl.BlockSpec((cout, 1), lambda i: (0, 0)),
            pl.BlockSpec((cout, p), lambda i: (0, 0)),
            pl.BlockSpec(memory_space=pltpu.MemorySpace.SMEM),
        ],
        out_specs=(pl.BlockSpec((1, 1, 1), lambda i: (i, 0, 0)),
                   pl.BlockSpec((1, 1, 1), lambda i: (i, 0, 0))),
        compiler_params=pltpu.CompilerParams(dimension_semantics=("parallel",)),
    )(x_im, w3t, s3, t3, wfc, bfc)
    return prob, logit


# ----------------------------------------------------------------------------
# Host-side im2col glue (small fused XLA strided-slice gathers on bf16 data)
# ----------------------------------------------------------------------------
def _im2col_s2k4p1(x_cp, h, w):
    """im2col of a k=4 / stride=2 / pad=1 conv, channels-x-pixels layout.

    x_cp: (N, C, H*W) bf16 -> (N, 16*C, (H//2)*(W//2)) bf16.
    K ordering is (kh*4 + kw)*C + ci; output pixel ordering is oh*(W//2) + ow.
    """
    n, c, _ = x_cp.shape
    assert h % 2 == 0 and w % 2 == 0
    oh, ow = h // 2, w // 2
    xp = jnp.pad(x_cp.reshape(n, c, h, w), ((0, 0), (0, 0), (1, 1), (1, 1)))
    taps = [xp[:, :, kh:kh + 2 * oh:2, kw:kw + 2 * ow:2]     # each (N, C, OH, OW)
            for kh in range(4) for kw in range(4)]
    x_im = jnp.stack(taps, axis=1)                           # (N, 16, C, OH, OW)
    return x_im.reshape(n, 16 * c, oh * ow)


# ----------------------------------------------------------------------------
# Parameters (deterministic synthetic init, shapes from the PyTorch module)
# ----------------------------------------------------------------------------
def init_params(key):
    ks = jax.random.split(key, 11)

    def conv_layer(kw_, kb_, kbn, cin, cout, with_bn):
        w = 0.05 * jax.random.normal(kw_, (4, 4, cin, cout), jnp.float32)
        b = 0.05 * jax.random.normal(kb_, (cout,), jnp.float32)
        bn = None
        if with_bn:
            kg, kbeta, km, kv = jax.random.split(kbn, 4)
            gamma = 1.0 + 0.1 * jax.random.normal(kg, (cout,), jnp.float32)
            beta = 0.1 * jax.random.normal(kbeta, (cout,), jnp.float32)
            mean = 0.1 * jax.random.normal(km, (cout,), jnp.float32)
            var = 1.0 + 0.1 * jax.random.uniform(kv, (cout,), jnp.float32)
            bn = (gamma, beta, mean, var)
        return {"w": w, "b": b, "bn": bn}

    convs = [
        conv_layer(ks[0], ks[1], ks[2], 1, 32, False),
        conv_layer(ks[3], ks[4], ks[5], 32, 64, True),
        conv_layer(ks[6], ks[7], ks[8], 64, 128, True),
    ]
    fc_w = 0.002 * jax.random.normal(ks[9], (128 * 16 * 16,), jnp.float32)
    fc_b = 0.01 * jax.random.normal(ks[10], (1,), jnp.float32)
    return {"convs": convs, "fc_w": fc_w, "fc_b": fc_b}


def prepare_params(params, eps=1e-5):
    """PyTorch-layout params -> kernel layout: bf16 (Cout, 16*Cin) conv weights,
    eval-mode BN + conv bias folded into per-channel (Cout, 1) scale/shift,
    FC weight reshaped to (128, 256) [channel, pixel] (no permute needed)."""
    c1, c2, c3 = params["convs"]

    def w_cp(w):   # (4, 4, Cin, Cout) -> (Cout, 16*Cin), K order (kh, kw, ci)
        kh, kw, cin, cout = w.shape
        return w.reshape(kh * kw * cin, cout).T.astype(jnp.bfloat16)

    def bn_fold(layer):
        cout = layer["w"].shape[-1]
        gamma, beta, mean, var = layer["bn"]
        scale = gamma / jnp.sqrt(var + eps)
        shift = (layer["b"] - mean) * scale + beta
        return (scale.reshape(cout, 1).astype(jnp.float32),
                shift.reshape(cout, 1).astype(jnp.float32))

    w1t = w_cp(c1["w"])                                    # (32, 16)
    b1 = c1["b"].reshape(32, 1).astype(jnp.float32)
    w2t = w_cp(c2["w"])                                    # (64, 512)
    s2, t2 = bn_fold(c2)
    w3t = w_cp(c3["w"])                                    # (128, 1024)
    s3, t3 = bn_fold(c3)
    wfc = params["fc_w"].reshape(128, 256).astype(jnp.float32)   # [c, oh*16+ow]
    bfc = params["fc_b"].reshape(1,).astype(jnp.float32)
    return dict(w1t=w1t, b1=b1, w2t=w2t, s2=s2, t2=t2,
                w3t=w3t, s3=s3, t3=t3, wfc=wfc, bfc=bfc)


# ----------------------------------------------------------------------------
# Full forward pass
# ----------------------------------------------------------------------------
@jax.jit
def discriminator_x_forward(x_nchw, kparams):
    n, c, h, w = x_nchw.shape
    assert (c, h, w) == (1, 128, 128), x_nchw.shape   # forced by Linear(128*16*16)
    x_cp = x_nchw.astype(jnp.bfloat16).reshape(n, 1, h * w)       # bf16 before gather
    x1 = _im2col_s2k4p1(x_cp, 128, 128)                           # (N, 16, 4096)
    a1 = conv1_lrelu(x1, kparams["w1t"], kparams["b1"])           # (N, 32, 4096)
    x2 = _im2col_s2k4p1(a1, 64, 64)                               # (N, 512, 1024)
    a2 = conv2_bn_lrelu(x2, kparams["w2t"],
                        kparams["s2"], kparams["t2"])             # (N, 64, 1024)
    x3 = _im2col_s2k4p1(a2, 32, 32)                               # (N, 1024, 256)
    prob, logit = conv3_bn_lrelu_fc_sigmoid(
        x3, kparams["w3t"], kparams["s3"], kparams["t3"],
        kparams["wfc"], kparams["bfc"])                           # (N,1,1) each
    return prob.reshape(n, 1), logit.reshape(n, 1)


# ----------------------------------------------------------------------------
# Pure-JAX reference of the PyTorch module (for correctness cross-check)
# ----------------------------------------------------------------------------
def _reference_forward(x_nchw, params, eps=1e-5):
    y = x_nchw.astype(jnp.float32)
    for layer in params["convs"]:
        y = jax.lax.conv_general_dilated(
            y, layer["w"], window_strides=(2, 2), padding=((1, 1), (1, 1)),
            dimension_numbers=("NCHW", "HWIO", "NCHW"))
        y = y + layer["b"].reshape(1, -1, 1, 1)
        if layer["bn"] is not None:
            gamma, beta, mean, var = layer["bn"]
            y = (y - mean.reshape(1, -1, 1, 1)) / jnp.sqrt(
                var.reshape(1, -1, 1, 1) + eps)
            y = y * gamma.reshape(1, -1, 1, 1) + beta.reshape(1, -1, 1, 1)
        y = jnp.where(y > 0, y, 0.2 * y)
    n = y.shape[0]
    logit = y.reshape(n, -1) @ params["fc_w"].reshape(-1, 1) + params["fc_b"]
    return jax.nn.sigmoid(logit), logit


if __name__ == "__main__":
    key = jax.random.PRNGKey(0)
    k_x, k_p = jax.random.split(key)

    # Input implied by the module: Linear(128*16*16) after three /2 convs
    # => 128x128 single-channel images.  Small batch of 2.
    x = jax.random.normal(k_x, (2, 1, 128, 128), jnp.float32)
    params = init_params(k_p)
    kparams = prepare_params(params)

    prob, logit = discriminator_x_forward(x, kparams)
    prob = jax.block_until_ready(prob)

    assert prob.shape == (2, 1), prob.shape
    assert bool(jnp.all((prob >= 0.0) & (prob <= 1.0)))

    # Cross-check against a pure-JAX/XLA reference of the PyTorch module.
    # Validate on pre-sigmoid logits (keeps the bf16 error budget visible,
    # review item) and on the sigmoid outputs.
    ref_prob, ref_logit = _reference_forward(x, params)
    assert bool(jnp.allclose(logit, ref_logit, atol=3e-2, rtol=2e-2)), (logit, ref_logit)
    assert bool(jnp.allclose(prob, ref_prob, atol=2e-2, rtol=0.0)), (prob, ref_prob)

    print("KERNEL_OK")
</pallas_src>

<mosaic_0001>
module attributes {stable_mosaic.version = 11 : i64} {
  func.func @_conv1_lrelu_kernel(%arg0: i32, %arg1: memref<1x16x4096xbf16, #tpu.memory_space<vmem>>, %arg2: memref<32x16xbf16, #tpu.memory_space<vmem>>, %arg3: memref<32x1xf32, #tpu.memory_space<vmem>>, %arg4: memref<1x32x4096xbf16, #tpu.memory_space<vmem>>) attributes {dimension_semantics = [#tpu.dimension_semantics<parallel>], iteration_bounds = array<i64: 2>, scalar_prefetch = 0 : i64, scratch_operands = 0 : i64, tpu.core_type = #tpu.core_type<tc>, window_params = [{transform_indices = @transform_0, window_bounds = array<i64: 1, 16, 4096>}, {pipeline_mode = #tpu.pipeline_mode<synchronous>, transform_indices = @transform_1, window_bounds = array<i64: 32, 16>}, {pipeline_mode = #tpu.pipeline_mode<synchronous>, transform_indices = @transform_2, window_bounds = array<i64: 32, 1>}, {transform_indices = @transform_3, window_bounds = array<i64: 1, 32, 4096>}]} {
    %c0 = arith.constant 0 : index
    %c0_0 = arith.constant 0 : index
    %0 = vector.load %arg2[%c0, %c0_0] : memref<32x16xbf16, #tpu.memory_space<vmem>>, vector<32x16xbf16>
    %c0_1 = arith.constant 0 : index
    %c0_2 = arith.constant 0 : index
    %c0_3 = arith.constant 0 : index
    %1 = vector.load %arg1[%c0_1, %c0_2, %c0_3] : memref<1x16x4096xbf16, #tpu.memory_space<vmem>>, vector<1x16x4096xbf16>
    %2 = vector.shape_cast %1 : vector<1x16x4096xbf16> to vector<16x4096xbf16>
    %cst = arith.constant dense<0.000000e+00> : vector<32x4096xf32>
    %3 = tpu.matmul %0, %2, %cst {dimension_numbers = #tpu.dot_dimension_numbers<[1], [0], [0], [1], [0, 0, 1, 1], [], []>} : vector<32x16xbf16>, vector<16x4096xbf16>, vector<32x4096xf32> -> vector<32x4096xf32>
    %c0_4 = arith.constant 0 : index
    %c0_5 = arith.constant 0 : index
    %4 = vector.load %arg3[%c0_4, %c0_5] : memref<32x1xf32, #tpu.memory_space<vmem>>, vector<32x1xf32>
    %5 = vector.broadcast %4 : vector<32x1xf32> to vector<32x4096xf32>
    %6 = arith.addf %3, %5 : vector<32x4096xf32>
    %cst_6 = arith.constant 0.000000e+00 : f32
    %7 = vector.broadcast %cst_6 : f32 to vector<32x4096xf32>
    %8 = arith.cmpf ogt, %6, %7 : vector<32x4096xf32>
    %cst_7 = arith.constant 2.000000e-01 : f32
    %9 = vector.broadcast %cst_7 : f32 to vector<32x4096xf32>
    %10 = arith.mulf %9, %6 : vector<32x4096xf32>
    %11 = arith.select %8, %6, %10 : vector<32x4096xi1>, vector<32x4096xf32>
    %12 = arith.truncf %11 : vector<32x4096xf32> to vector<32x4096xbf16>
    %c0_8 = arith.constant 0 : index
    %c0_9 = arith.constant 0 : index
    %c0_10 = arith.constant 0 : index
    %13 = vector.load %arg4[%c0_8, %c0_9, %c0_10] : memref<1x32x4096xbf16, #tpu.memory_space<vmem>>, vector<1x32x4096xbf16>
    %14 = vector.shape_cast %13 : vector<1x32x4096xbf16> to vector<32x4096xbf16>
    %15 = vector.shape_cast %12 : vector<32x4096xbf16> to vector<1x32x4096xbf16>
    tpu.vector_store %arg4[%c0_8, %c0_9, %c0_10], %15 {strides = array<i32>} : memref<1x32x4096xbf16, #tpu.memory_space<vmem>>, vector<1x32x4096xbf16>,
    return
  }
  func.func @transform_0(%arg0: i32) -> (i32, i32, i32) {
    %c0_i32 = arith.constant 0 : i32
    %c0_i32_0 = arith.constant 0 : i32
    %c0_i32_1 = arith.constant 0 : i32
    return %arg0, %c0_i32, %c0_i32_0 : i32, i32, i32
  }
  func.func @transform_1(%arg0: i32) -> (i32, i32) {
    %c0_i32 = arith.constant 0 : i32
    %c0_i32_0 = arith.constant 0 : i32
    %c0_i32_1 = arith.constant 0 : i32
    return %c0_i32, %c0_i32_0 : i32, i32
  }
  func.func @transform_2(%arg0: i32) -> (i32, i32) {
    %c0_i32 = arith.constant 0 : i32
    %c0_i32_0 = arith.constant 0 : i32
    %c0_i32_1 = arith.constant 0 : i32
    return %c0_i32, %c0_i32_0 : i32, i32
  }
  func.func @transform_3(%arg0: i32) -> (i32, i32, i32) {
    %c0_i32 = arith.constant 0 : i32
    %c0_i32_0 = arith.constant 0 : i32
    %c0_i32_1 = arith.constant 0 : i32
    return %arg0, %c0_i32, %c0_i32_0 : i32, i32, i32
  }
}

module attributes {stable_mosaic.version = 11 : i64} {
  func.func @_conv2_bn_lrelu_kernel(%arg0: i32, %arg1: memref<1x512x1024xbf16, #tpu.memory_space<vmem>>, %arg2: memref<64x512xbf16, #tpu.memory_space<vmem>>, %arg3: memref<64x1xf32, #tpu.memory_space<vmem>>, %arg4: memref<64x1xf32, #tpu.memory_space<vmem>>, %arg5: memref<1x64x1024xbf16, #tpu.memory_space<vmem>>) attributes {dimension_semantics = [#tpu.dimension_semantics<parallel>], iteration_bounds = array<i64: 2>, scalar_prefetch = 0 : i64, scratch_operands = 0 : i64, tpu.core_type = #tpu.core_type<tc>, window_params = [{transform_indices = @transform_0, window_bounds = array<i64: 1, 512, 1024>}, {pipeline_mode = #tpu.pipeline_mode<synchronous>, transform_indices = @transform_1, window_bounds = array<i64: 64, 512>}, {pipeline_mode = #tpu.pipeline_mode<synchronous>, transform_indices = @transform_2, window_bounds = array<i64: 64, 1>}, {pipeline_mode = #tpu.pipeline_mode<synchronous>, transform_indices = @transform_3, window_bounds = array<i64: 64, 1>}, {transform_indices = @transform_4, window_bounds = array<i64: 1, 64, 1024>}]} {
    %c0 = arith.constant 0 : index
    %c0_0 = arith.constant 0 : index
    %0 = vector.load %arg2[%c0, %c0_0] : memref<64x512xbf16, #tpu.memory_space<vmem>>, vector<64x512xbf16>
    %c0_1 = arith.constant 0 : index
    %c0_2 = arith.constant 0 : index
    %c0_3 = arith.constant 0 : index
    %1 = vector.load %arg1[%c0_1, %c0_2, %c0_3] : memref<1x512x1024xbf16, #tpu.memory_space<vmem>>, vector<1x512x1024xbf16>
    %2 = vector.shape_cast %1 : vector<1x512x1024xbf16> to vector<512x1024xbf16>
    %cst = arith.constant dense<0.000000e+00> : vector<64x1024xf32>
    %3 = tpu.matmul %0, %2, %cst {dimension_numbers = #tpu.dot_dimension_numbers<[1], [0], [0], [1], [0, 0, 1, 1], [], []>} : vector<64x512xbf16>, vector<512x1024xbf16>, vector<64x1024xf32> -> vector<64x1024xf32>
    %c0_4 = arith.constant 0 : index
    %c0_5 = arith.constant 0 : index
    %4 = vector.load %arg3[%c0_4, %c0_5] : memref<64x1xf32, #tpu.memory_space<vmem>>, vector<64x1xf32>
    %5 = vector.broadcast %4 : vector<64x1xf32> to vector<64x1024xf32>
    %6 = arith.mulf %3, %5 : vector<64x1024xf32>
    %c0_6 = arith.constant 0 : index
    %c0_7 = arith.constant 0 : index
    %7 = vector.load %arg4[%c0_6, %c0_7] : memref<64x1xf32, #tpu.memory_space<vmem>>, vector<64x1xf32>
    %8 = vector.broadcast %7 : vector<64x1xf32> to vector<64x1024xf32>
    %9 = arith.addf %6, %8 : vector<64x1024xf32>
    %cst_8 = arith.constant 0.000000e+00 : f32
    %10 = vector.broadcast %cst_8 : f32 to vector<64x1024xf32>
    %11 = arith.cmpf ogt, %9, %10 : vector<64x1024xf32>
    %cst_9 = arith.constant 2.000000e-01 : f32
    %12 = vector.broadcast %cst_9 : f32 to vector<64x1024xf32>
    %13 = arith.mulf %12, %9 : vector<64x1024xf32>
    %14 = arith.select %11, %9, %13 : vector<64x1024xi1>, vector<64x1024xf32>
    %15 = arith.truncf %14 : vector<64x1024xf32> to vector<64x1024xbf16>
    %c0_10 = arith.constant 0 : index
    %c0_11 = arith.constant 0 : index
    %c0_12 = arith.constant 0 : index
    %16 = vector.load %arg5[%c0_10, %c0_11, %c0_12] : memref<1x64x1024xbf16, #tpu.memory_space<vmem>>, vector<1x64x1024xbf16>
    %17 = vector.shape_cast %16 : vector<1x64x1024xbf16> to vector<64x1024xbf16>
    %18 = vector.shape_cast %15 : vector<64x1024xbf16> to vector<1x64x1024xbf16>
    tpu.vector_store %arg5[%c0_10, %c0_11, %c0_12], %18 {strides = array<i32>} : memref<1x64x1024xbf16, #tpu.memory_space<vmem>>, vector<1x64x1024xbf16>,
    return
  }
  func.func @transform_0(%arg0: i32) -> (i32, i32, i32) {
    %c0_i32 = arith.constant 0 : i32
    %c0_i32_0 = arith.constant 0 : i32
    %c0_i32_1 = arith.constant 0 : i32
    return %arg0, %c0_i32, %c0_i32_0 : i32, i32, i32
  }
  func.func @transform_1(%arg0: i32) -> (i32, i32) {
    %c0_i32 = arith.constant 0 : i32
    %c0_i32_0 = arith.constant 0 : i32
    %c0_i32_1 = arith.constant 0 : i32
    return %c0_i32, %c0_i32_0 : i32, i32
  }
  func.func @transform_2(%arg0: i32) -> (i32, i32) {
    %c0_i32 = arith.constant 0 : i32
    %c0_i32_0 = arith.constant 0 : i32
    %c0_i32_1 = arith.constant 0 : i32
    return %c0_i32, %c0_i32_0 : i32, i32
  }
  func.func @transform_3(%arg0: i32) -> (i32, i32) {
    %c0_i32 = arith.constant 0 : i32
    %c0_i32_0 = arith.constant 0 : i32
    %c0_i32_1 = arith.constant 0 : i32
    return %c0_i32, %c0_i32_0 : i32, i32
  }
  func.func @transform_4(%arg0: i32) -> (i32, i32, i32) {
    %c0_i32 = arith.constant 0 : i32
    %c0_i32_0 = arith.constant 0 : i32
    %c0_i32_1 = arith.constant 0 : i32
    return %arg0, %c0_i32, %c0_i32_0 : i32, i32, i32
  }
}

module attributes {stable_mosaic.version = 11 : i64} {
  func.func @_conv3_bn_lrelu_fc_sigmoid_kernel(%arg0: i32, %arg1: memref<1x1024x256xbf16, #tpu.memory_space<vmem>>, %arg2: memref<128x1024xbf16, #tpu.memory_space<vmem>>, %arg3: memref<128x1xf32, #tpu.memory_space<vmem>>, %arg4: memref<128x1xf32, #tpu.memory_space<vmem>>, %arg5: memref<128x256xf32, #tpu.memory_space<vmem>>, %arg6: memref<1xf32, #tpu.memory_space<smem>>, %arg7: memref<1x1x1xf32, #tpu.memory_space<vmem>>, %arg8: memref<1x1x1xf32, #tpu.memory_space<vmem>>) attributes {dimension_semantics = [#tpu.dimension_semantics<parallel>], iteration_bounds = array<i64: 2>, scalar_prefetch = 0 : i64, scratch_operands = 0 : i64, tpu.core_type = #tpu.core_type<tc>, window_params = [{transform_indices = @transform_0, window_bounds = array<i64: 1, 1024, 256>}, {pipeline_mode = #tpu.pipeline_mode<synchronous>, transform_indices = @transform_1, window_bounds = array<i64: 128, 1024>}, {pipeline_mode = #tpu.pipeline_mode<synchronous>, transform_indices = @transform_2, window_bounds = array<i64: 128, 1>}, {pipeline_mode = #tpu.pipeline_mode<synchronous>, transform_indices = @transform_3, window_bounds = array<i64: 128, 1>}, {pipeline_mode = #tpu.pipeline_mode<synchronous>, transform_indices = @transform_4, window_bounds = array<i64: 128, 256>}, {transform_indices = @transform_5, window_bounds = array<i64: 1>}, {transform_indices = @transform_6, window_bounds = array<i64: 1, 1, 1>}, {transform_indices = @transform_7, window_bounds = array<i64: 1, 1, 1>}]} {
    %c0 = arith.constant 0 : index
    %c0_0 = arith.constant 0 : index
    %0 = vector.load %arg2[%c0, %c0_0] : memref<128x1024xbf16, #tpu.memory_space<vmem>>, vector<128x1024xbf16>
    %c0_1 = arith.constant 0 : index
    %c0_2 = arith.constant 0 : index
    %c0_3 = arith.constant 0 : index
    %1 = vector.load %arg1[%c0_1, %c0_2, %c0_3] : memref<1x1024x256xbf16, #tpu.memory_space<vmem>>, vector<1x1024x256xbf16>
    %2 = vector.shape_cast %1 : vector<1x1024x256xbf16> to vector<1024x256xbf16>
    %cst = arith.constant dense<0.000000e+00> : vector<128x256xf32>
    %3 = tpu.matmul %0, %2, %cst {dimension_numbers = #tpu.dot_dimension_numbers<[1], [0], [0], [1], [0, 0, 1, 1], [], []>} : vector<128x1024xbf16>, vector<1024x256xbf16>, vector<128x256xf32> -> vector<128x256xf32>
    %c0_4 = arith.constant 0 : index
    %c0_5 = arith.constant 0 : index
    %4 = vector.load %arg3[%c0_4, %c0_5] : memref<128x1xf32, #tpu.memory_space<vmem>>, vector<128x1xf32>
    %5 = vector.broadcast %4 : vector<128x1xf32> to vector<128x256xf32>
    %6 = arith.mulf %3, %5 : vector<128x256xf32>
    %c0_6 = arith.constant 0 : index
    %c0_7 = arith.constant 0 : index
    %7 = vector.load %arg4[%c0_6, %c0_7] : memref<128x1xf32, #tpu.memory_space<vmem>>, vector<128x1xf32>
    %8 = vector.broadcast %7 : vector<128x1xf32> to vector<128x256xf32>
    %9 = arith.addf %6, %8 : vector<128x256xf32>
    %cst_8 = arith.constant 0.000000e+00 : f32
    %10 = vector.broadcast %cst_8 : f32 to vector<128x256xf32>
    %11 = arith.cmpf ogt, %9, %10 : vector<128x256xf32>
    %cst_9 = arith.constant 2.000000e-01 : f32
    %12 = vector.broadcast %cst_9 : f32 to vector<128x256xf32>
    %13 = arith.mulf %12, %9 : vector<128x256xf32>
    %14 = arith.select %11, %9, %13 : vector<128x256xi1>, vector<128x256xf32>
    %c0_10 = arith.constant 0 : index
    %c0_11 = arith.constant 0 : index
    %15 = vector.load %arg5[%c0_10, %c0_11] : memref<128x256xf32, #tpu.memory_space<vmem>>, vector<128x256xf32>
    %16 = arith.mulf %14, %15 : vector<128x256xf32>
    %cst_12 = arith.constant dense<0.000000e+00> : vector<128xf32>
    %17 = vector.multi_reduction <add>, %16, %cst_12 [1] : vector<128x256xf32> to vector<128xf32>
    %18 = vector.shape_cast %17 : vector<128xf32> to vector<128x1xf32>
    %cst_13 = arith.constant dense<0.000000e+00> : vector<1xf32>
    %19 = vector.multi_reduction <add>, %18, %cst_13 [0] : vector<128x1xf32> to vector<1xf32>
    %20 = vector.shape_cast %19 : vector<1xf32> to vector<1x1xf32>
    %c0_14 = arith.constant 0 : index
    %21 = memref.load %arg6[%c0_14] : memref<1xf32, #tpu.memory_space<smem>>
    %22 = vector.broadcast %21 : f32 to vector<1x1xf32>
    %23 = arith.addf %20, %22 : vector<1x1xf32>
    %cst_15 = arith.constant 0.000000e+00 : f32
    %24 = vector.broadcast %cst_15 : f32 to vector<1x1xf32>
    %25 = arith.subf %24, %23 : vector<1x1xf32>
    %26 = math.exp %25 : vector<1x1xf32>
    %cst_16 = arith.constant 1.000000e+00 : f32
    %27 = vector.broadcast %cst_16 : f32 to vector<1x1xf32>
    %28 = arith.addf %27, %26 : vector<1x1xf32>
    %cst_17 = arith.constant 1.000000e+00 : f32
    %29 = vector.broadcast %cst_17 : f32 to vector<1x1xf32>
    %30 = arith.divf %29, %28 : vector<1x1xf32>
    %c0_18 = arith.constant 0 : index
    %c0_19 = arith.constant 0 : index
    %c0_20 = arith.constant 0 : index
    %31 = vector.load %arg8[%c0_18, %c0_19, %c0_20] : memref<1x1x1xf32, #tpu.memory_space<vmem>>, vector<1x1x1xf32>
    %32 = vector.shape_cast %31 : vector<1x1x1xf32> to vector<1x1xf32>
    %33 = vector.shape_cast %23 : vector<1x1xf32> to vector<1x1x1xf32>
    tpu.vector_store %arg8[%c0_18, %c0_19, %c0_20], %33 {strides = array<i32>} : memref<1x1x1xf32, #tpu.memory_space<vmem>>, vector<1x1x1xf32>,
    %c0_21 = arith.constant 0 : index
    %c0_22 = arith.constant 0 : index
    %c0_23 = arith.constant 0 : index
    %34 = vector.load %arg7[%c0_21, %c0_22, %c0_23] : memref<1x1x1xf32, #tpu.memory_space<vmem>>, vector<1x1x1xf32>
    %35 = vector.shape_cast %34 : vector<1x1x1xf32> to vector<1x1xf32>
    %36 = vector.shape_cast %30 : vector<1x1xf32> to vector<1x1x1xf32>
    tpu.vector_store %arg7[%c0_21, %c0_22, %c0_23], %36 {strides = array<i32>} : memref<1x1x1xf32, #tpu.memory_space<vmem>>, vector<1x1x1xf32>,
    return
  }
  func.func @transform_0(%arg0: i32) -> (i32, i32, i32) {
    %c0_i32 = arith.constant 0 : i32
    %c0_i32_0 = arith.constant 0 : i32
    %c0_i32_1 = arith.constant 0 : i32
    return %arg0, %c0_i32, %c0_i32_0 : i32, i32, i32
  }
  func.func @transform_1(%arg0: i32) -> (i32, i32) {
    %c0_i32 = arith.constant 0 : i32
    %c0_i32_0 = arith.constant 0 : i32
    %c0_i32_1 = arith.constant 0 : i32
    return %c0_i32, %c0_i32_0 : i32, i32
  }
  func.func @transform_2(%arg0: i32) -> (i32, i32) {
    %c0_i32 = arith.constant 0 : i32
    %c0_i32_0 = arith.constant 0 : i32
    %c0_i32_1 = arith.constant 0 : i32
    return %c0_i32, %c0_i32_0 : i32, i32
  }
  func.func @transform_3(%arg0: i32) -> (i32, i32) {
    %c0_i32 = arith.constant 0 : i32
    %c0_i32_0 = arith.constant 0 : i32
    %c0_i32_1 = arith.constant 0 : i32
    return %c0_i32, %c0_i32_0 : i32, i32
  }
  func.func @transform_4(%arg0: i32) -> (i32, i32) {
    %c0_i32 = arith.constant 0 : i32
    %c0_i32_0 = arith.constant 0 : i32
    %c0_i32_1 = arith.constant 0 : i32
    return %c0_i32, %c0_i32_0 : i32, i32
  }
  func.func @transform_5(%arg0: i32) -> i32 {
    %c0_i32 = arith.constant 0 : i32
    %c0_i32_0 = arith.constant 0 : i32
    return %c0_i32 : i32
  }
  func.func @transform_6(%arg0: i32) -> (i32, i32, i32) {
    %c0_i32 = arith.constant 0 : i32
    %c0_i32_0 = arith.constant 0 : i32
    %c0_i32_1 = arith.constant 0 : i32
    return %arg0, %c0_i32, %c0_i32_0 : i32, i32, i32
  }
  func.func @transform_7(%arg0: i32) -> (i32, i32, i32) {
    %c0_i32 = arith.constant 0 : i32
    %c0_i32_0 = arith.constant 0 : i32
    %c0_i32_1 = arith.constant 0 : i32
    return %arg0, %c0_i32, %c0_i32_0 : i32, i32, i32
  }
}

</mosaic_0001>

<bundles_post_ra>
// kernel: discriminator_x_forward.3
= control target key start
LH: loop header
LB: loop body
LE: loop exit
PB: predicated region body
PF: predicated region fallthrough
CT: control target
= control target key end

     0   :  { %s2393_s12 = smov 0   ;;  %s2902_s0 = inlined_call_operand.vmem [shape: bf16[2,16,4096], index: 0, kind: input, shape index: {}]   ;;  %s2903_s1 = inlined_call_operand.vmem [shape: bf16[32,16], index: 1, kind: input, shape index: {}]   ;;  %s2904_s2 = inlined_call_operand.vmem [shape: f32[32,1], index: 2, kind: input, shape index: {}]   ;;  %s2905_s3 = inlined_call_operand.vmem [shape: bf16[2,32,4096], index: 3, kind: output, shape index: {}]  }
   0x1 LB: > { %s2144_s13 = sadd.s32 4294967295, %s2370_s12   ;;  %p2148_p0 = scmp.ge.s32.totalorder %s2370_s12, 1  ;;  %s2370_s12 = sphi %s2393_s12, %s13_s12  }
   0x2   : > { %p137_p1 = scmp.lt.s32.totalorder %s2370_s12, 3 }
   0x4   : > { %p138_p2 = pnand %p2148_p0, %p137_p1 }
   0x5   : > { %p161_p3 = scmp.lt.s32.totalorder (!%p138_p2), %s2144_s13, 1  ;;  %v2372_v0 = vmov (!%p138_p2), 0   ;;  %v208_v1 = vld [vmem:[%s2904_s2] sm:$0xff] (!%p138_p2)  ;;  %v210_v2 = vld [vmem:[%s2904_s2 + $0x10] sm:$0xff] (!%p138_p2)  ;;  %v209_v3 = vld [vmem:[%s2904_s2 + $0x8] sm:$0xff] (!%p138_p2)  ;;  %vm402_vm0 = vcmask (!%p138_p2), 130048  }
   0x6   : > { %141 = sbr.rel (%p138_p2) target bundleno = 386 (0x182), region = 32  ;;  %441 = vmatprep.mubr.bf16.mxu0 (!%p138_p2), %v2372_v0  ;;  %494 = vmatprep.mubr.bf16.mxu1 (!%p138_p2), %v2372_v0  ;;  %v211_v4 = vld [vmem:[%s2904_s2 + $0x18] sm:$0xff] (!%p138_p2)  ;;  %v2436_v18 = vld [vmem:[%s2903_s1] sm:$0xff] (!%p138_p2)   ;;  %v2451_v28 = vld [vmem:[%s2903_s1 + $0x8] sm:$0xff] (!%p138_p2)  }
   0x7   : > { %2360 = vset.pattern.permute.xlu0 (!%p138_p2), %v2372_v0  ;;  %2361 = vset.pattern.permute.xlu1 (!%p138_p2), %v2372_v0 }
   0x8   : > { %214 = vperm.xlu0 (!%p138_p2), %2360, %v208_v1   ;;  %224 = vperm.xlu1 (!%p138_p2), %2361, %v210_v2  }
   0xc   : > { %219 = vperm.xlu0 (!%p138_p2), %2360, %v209_v3   ;;  %229 = vperm.xlu1 (!%p138_p2), %2361, %v211_v4  }
   0xd   : > { %s2907_s13 = smov (!%p161_p3, %s2144_s13), 1 }
   0xe   : > { %s2285_s18 = sshll.u32 %s2907_s13, 8  ;;  %s2286_s30 = sshll.u32 %s2907_s13, 9 }
   0xf   : > { %s2420_s23 = scalar_lea.vmem %s2902_s0, %s2285_s18  ;;  %s2576_s6 = scalar_lea.vmem %s2905_s3, %s2286_s30 }
  0x10   : > { %v176_v5 = vld [vmem:[%s2420_s23] sm:$0xff]  ;;  %v177_v7 = vld [vmem:[%s2420_s23 + $0x8] sm:$0xff]  ;;  %v178_v11 = vld [vmem:[%s2420_s23 + $0x10] sm:$0xff] }
  0x11   : > { %v192_v6 = vld [vmem:[%s2420_s23 + $0x80] sm:$0xff]  ;;  %v193_v9 = vld [vmem:[%s2420_s23 + $0x88] sm:$0xff]  ;;  %v194_v12 = vld [vmem:[%s2420_s23 + $0x90] sm:$0xff] }
  0x12   : > { %v2156_v8 = vcombine.high %v176_v5, %v192_v6  ;;  %v2155_v10 = vcombine.low %v176_v5, %v192_v6  ;;  %v2158_v13 = vcombine.high %v177_v7, %v193_v9  ;;  %v2157_v14 = vcombine.low %v177_v7, %v193_v9  ;;  %v179_v16 = vld [vmem:[%s2420_s23 + $0x18] sm:$0xff]  ;;  %v180_v20 = vld [vmem:[%s2420_s23 + $0x20] sm:$0xff]  ;;  %v181_v23 = vld [vmem:[%s2420_s23 + $0x28] sm:$0xff] }
  0x13   : > { %v2160_v15 = vcombine.high %v178_v11, %v194_v12  ;;  %v195_v17 = vld [vmem:[%s2420_s23 + $0x98] sm:$0xff]  ;;  %v196_v21 = vld [vmem:[%s2420_s23 + $0xa0] sm:$0xff]  ;;  %v2159_v22 = vcombine.low %v178_v11, %v194_v12  ;;  %v197_v24 = vld [vmem:[%s2420_s23 + $0xa8] sm:$0xff] }
  0x14   : > { %409 = vmatprep.subr.bf16.mxu0 %v2156_v8  ;;  %v2162_v19 = vcombine.high %v179_v16, %v195_v17  ;;  %462 = vmatprep.subr.bf16.mxu1 %v2158_v13  ;;  %v2161_v25 = vcombine.low %v179_v16, %v195_v17  ;;  %v2164_v26 = vcombine.high %v180_v20, %v196_v21  ;;  %v182_v29 = vld [vmem:[%s2420_s23 + $0x30] sm:$0xff]  ;;  %v183_v32 = vld [vmem:[%s2420_s23 + $0x38] sm:$0xff]  ;;  %v184_v37 = vld [vmem:[%s2420_s23 + $0x40] sm:$0xff] }
  0x15   : > { %410 = vmatpush1.bf16.msra.mxu0 %v2155_v10  ;;  %463 = vmatpush1.bf16.msra.mxu1 %v2157_v14  ;;  %v2166_v27 = vcombine.high %v181_v23, %v197_v24  ;;  %v198_v30 = vld [vmem:[%s2420_s23 + $0xb0] sm:$0xff]  ;;  %v2163_v31 = vcombine.low %v180_v20, %v196_v21  ;;  %v199_v33 = vld [vmem:[%s2420_s23 + $0xb8] sm:$0xff]  ;;  %v2165_v34 = vcombine.low %v181_v23, %v197_v24  ;;  %v200_v38 = vld [vmem:[%s2420_s23 + $0xc0] sm:$0xff] }
  0x16   : > { %515 = vmatprep.subr.bf16.mxu0 %v2160_v15  ;;  %568 = vmatprep.subr.bf16.mxu1 %v2162_v19  ;;  %v2168_v35 = vcombine.high %v182_v29, %v198_v30  ;;  %v2170_v36 = vcombine.high %v183_v32, %v199_v33  ;;  %v2167_v39 = vcombine.low %v182_v29, %v198_v30  ;;  %v185_v40 = vld [vmem:[%s2420_s23 + $0x48] sm:$0xff]  ;;  %v186_v45 = vld [vmem:[%s2420_s23 + $0x50] sm:$0xff]  ;;  %v187_v48 = vld [vmem:[%s2420_s23 + $0x58] sm:$0xff] }
  0x17   : > { %v201_v41 = vld [vmem:[%s2420_s23 + $0xc8] sm:$0xff]  ;;  %v2169_v42 = vcombine.low %v183_v32, %v199_v33  ;;  %v2172_v43 = vcombine.high %v184_v37, %v200_v38  ;;  %v202_v46 = vld [vmem:[%s2420_s23 + $0xd0] sm:$0xff]  ;;  %v2171_v47 = vcombine.low %v184_v37, %v200_v38  ;;  %v203_v49 = vld [vmem:[%s2420_s23 + $0xd8] sm:$0xff] }
  0x18   : > { %2187 = vmatmul.mubr.msk.bf16.vlgmr.msra.gmra.mrb[0].mxu0 %vm402_vm0, %v2436_v18  ;;  %2189 = vmatmul.mubr.msk.bf16.vlgmr.msra.gmra.mrb[0].mxu1 %vm402_vm0, %v2436_v18  ;;  %v2174_v44 = vcombine.high %v185_v40, %v201_v41  ;;  %v2173_v50 = vcombine.low %v185_v40, %v201_v41  ;;  %v2176_v51 = vcombine.high %v186_v45, %v202_v46  ;;  %v188_v53 = vld [vmem:[%s2420_s23 + $0x60] sm:$0xff]  ;;  %v189_v56 = vld [vmem:[%s2420_s23 + $0x68] sm:$0xff]  ;;  %v190_v61 = vld [vmem:[%s2420_s23 + $0x70] sm:$0xff] }
  0x19   : > { %516 = vmatpush1.bf16.msra.mxu0 %v2159_v22  ;;  %569 = vmatpush1.bf16.msra.mxu1 %v2161_v25  ;;  %v2178_v52 = vcombine.high %v187_v48, %v203_v49  ;;  %v204_v54 = vld [vmem:[%s2420_s23 + $0xe0] sm:$0xff]  ;;  %v2175_v55 = vcombine.low %v186_v45, %v202_v46  ;;  %v205_v57 = vld [vmem:[%s2420_s23 + $0xe8] sm:$0xff]  ;;  %v2177_v58 = vcombine.low %v187_v48, %v203_v49  ;;  %v206_v62 = vld [vmem:[%s2420_s23 + $0xf0] sm:$0xff] }
  0x1a   : > { %451 = vmatprep.mubr.bf16.mxu0 %v2372_v0  ;;  %504 = vmatprep.mubr.bf16.mxu1 %v2372_v0  ;;  %v2180_v59 = vcombine.high %v188_v53, %v204_v54  ;;  %v2182_v60 = vcombine.high %v189_v56, %v205_v57  ;;  %v2179_v63 = vcombine.low %v188_v53, %v204_v54  ;;  %v191_v1 = vld [vmem:[%s2420_s23 + $0x78] sm:$0xff] }
  0x1b   : > { %621 = vmatprep.subr.bf16.mxu0 %v2164_v26  ;;  %674 = vmatprep.subr.bf16.mxu1 %v2166_v27  ;;  %v207_v2 = vld [vmem:[%s2420_s23 + $0xf8] sm:$0xff]  ;;  %v2181_v3 = vcombine.low %v189_v56, %v205_v57  ;;  %v2184_v4 = vcombine.high %v190_v61, %v206_v62  ;;  %v2183_v6 = vcombine.low %v190_v61, %v206_v62 }
  0x1c   : > { %v2186_v5 = vcombine.high %v191_v1, %v207_v2  ;;  %v2185_v7 = vcombine.low %v191_v1, %v207_v2 }
  0x20   : > { %2188 = vmatmul.mubr.msk.bf16.gmra.mrb[4].mxu0 %vm402_vm0, %v2451_v28  ;;  %2190 = vmatmul.mubr.msk.bf16.gmra.mrb[4].mxu1 %vm402_vm0, %v2451_v28 }
  0x21   : > { %547 = vmatprep.mubr.bf16.mxu0 %v2372_v0  ;;  %600 = vmatprep.mubr.bf16.mxu1 %v2372_v0 }
  0x28   : > { %2191 = vmatmul.mubr.msk.bf16.vlgmr.msra.gmra.mrb[8].mxu0 %vm402_vm0, %v2436_v18  ;;  %2193 = vmatmul.mubr.msk.bf16.vlgmr.msra.gmra.mrb[8].mxu1 %vm402_vm0, %v2436_v18 }
  0x29   : > { %622 = vmatpush1.bf16.msra.mxu0 %v2163_v31  ;;  %675 = vmatpush1.bf16.msra.mxu1 %v2165_v34 }
  0x2a   : > { %557 = vmatprep.mubr.bf16.mxu0 %v2372_v0  ;;  %610 = vmatprep.mubr.bf16.mxu1 %v2372_v0 }
  0x2b   : > { %727 = vmatprep.subr.bf16.mxu0 %v2168_v35  ;;  %780 = vmatprep.subr.bf16.mxu1 %v2170_v36 }
  0x30   : > { %2192 = vmatmul.mubr.msk.bf16.gmra.mrb[12].mxu0 %vm402_vm0, %v2451_v28  ;;  %2194 = vmatmul.mubr.msk.bf16.gmra.mrb[12].mxu1 %vm402_vm0, %v2451_v28 }
  0x31   : > { %653 = vmatprep.mubr.bf16.mxu0 %v2372_v0  ;;  %706 = vmatprep.mubr.bf16.mxu1 %v2372_v0 }
  0x38   : > { %2195 = vmatmul.mubr.msk.bf16.vlgmr.msra.gmra.mrb[16].mxu0 %vm402_vm0, %v2436_v18  ;;  %2197 = vmatmul.mubr.msk.bf16.vlgmr.msra.gmra.mrb[16].mxu1 %vm402_vm0, %v2436_v18 }
  0x39   : > { %728 = vmatpush1.bf16.msra.mxu0 %v2167_v39  ;;  %781 = vmatpush1.bf16.msra.mxu1 %v2169_v42 }
  0x3a   : > { %663 = vmatprep.mubr.bf16.mxu0 %v2372_v0  ;;  %716 = vmatprep.mubr.bf16.mxu1 %v2372_v0 }
  0x3b   : > { %833 = vmatprep.subr.bf16.mxu0 %v2172_v43  ;;  %886 = vmatprep.subr.bf16.mxu1 %v2174_v44 }
  0x40   : > { %2196 = vmatmul.mubr.msk.bf16.gmra.mrb[20].mxu0 %vm402_vm0, %v2451_v28  ;;  %2198 = vmatmul.mubr.msk.bf16.gmra.mrb[20].mxu1 %vm402_vm0, %v2451_v28 }
  0x41   : > { %759 = vmatprep.mubr.bf16.mxu0 %v2372_v0  ;;  %812 = vmatprep.mubr.bf16.mxu1 %v2372_v0 }
  0x48   : > { %2199 = vmatmul.mubr.msk.bf16.vlgmr.msra.gmra.mrb[24].mxu0 %vm402_vm0, %v2436_v18  ;;  %2201 = vmatmul.mubr.msk.bf16.vlgmr.msra.gmra.mrb[24].mxu1 %vm402_vm0, %v2436_v18 }
  0x49   : > { %834 = vmatpush1.bf16.msra.mxu0 %v2171_v47  ;;  %887 = vmatpush1.bf16.msra.mxu1 %v2173_v50 }
  0x4a   : > { %769 = vmatprep.mubr.bf16.mxu0 %v2372_v0  ;;  %822 = vmatprep.mubr.bf16.mxu1 %v2372_v0 }
  0x4b   : > { %939 = vmatprep.subr.bf16.mxu0 %v2176_v51  ;;  %992 = vmatprep.subr.bf16.mxu1 %v2178_v52 }
  0x50   : > { %2200 = vmatmul.mubr.msk.bf16.gmra.mrb[28].mxu0 %vm402_vm0, %v2451_v28  ;;  %2202 = vmatmul.mubr.msk.bf16.gmra.mrb[28].mxu1 %vm402_vm0, %v2451_v28 }
  0x51   : > { %865 = vmatprep.mubr.bf16.mxu0 %v2372_v0  ;;  %918 = vmatprep.mubr.bf16.mxu1 %v2372_v0 }
  0x58   : > { %2203 = vmatmul.mubr.msk.bf16.vlgmr.msra.gmra.mrb[32].mxu0 %vm402_vm0, %v2436_v18  ;;  %2205 = vmatmul.mubr.msk.bf16.vlgmr.msra.gmra.mrb[32].mxu1 %vm402_vm0, %v2436_v18 }
  0x59   : > { %940 = vmatpush1.bf16.msra.mxu0 %v2175_v55  ;;  %993 = vmatpush1.bf16.msra.mxu1 %v2177_v58 }
  0x5a   : > { %875 = vmatprep.mubr.bf16.mxu0 %v2372_v0  ;;  %928 = vmatprep.mubr.bf16.mxu1 %v2372_v0 }
  0x5b   : > { %1045 = vmatprep.subr.bf16.mxu0 %v2180_v59  ;;  %1098 = vmatprep.subr.bf16.mxu1 %v2182_v60 }
  0x60   : > { %2204 = vmatmul.mubr.msk.bf16.gmra.mrb[36].mxu0 %vm402_vm0, %v2451_v28  ;;  %2206 = vmatmul.mubr.msk.bf16.gmra.mrb[36].mxu1 %vm402_vm0, %v2451_v28 }
  0x61   : > { %971 = vmatprep.mubr.bf16.mxu0 %v2372_v0  ;;  %1024 = vmatprep.mubr.bf16.mxu1 %v2372_v0 }
  0x68   : > { %2207 = vmatmul.mubr.msk.bf16.vlgmr.msra.gmra.mrb[40].mxu0 %vm402_vm0, %v2436_v18  ;;  %2209 = vmatmul.mubr.msk.bf16.vlgmr.msra.gmra.mrb[40].mxu1 %vm402_vm0, %v2436_v18 }
  0x69   : > { %1046 = vmatpush1.bf16.msra.mxu0 %v2179_v63  ;;  %1099 = vmatpush1.bf16.msra.mxu1 %v2181_v3 }
  0x6a   : > { %981 = vmatprep.mubr.bf16.mxu0 %v2372_v0  ;;  %1034 = vmatprep.mubr.bf16.mxu1 %v2372_v0 }
  0x6b   : > { %1151 = vmatprep.subr.bf16.mxu0 %v2184_v4  ;;  %1204 = vmatprep.subr.bf16.mxu1 %v2186_v5 }
  0x70   : > { %2208 = vmatmul.mubr.msk.bf16.gmra.mrb[44].mxu0 %vm402_vm0, %v2451_v28  ;;  %2210 = vmatmul.mubr.msk.bf16.gmra.mrb[44].mxu1 %vm402_vm0, %v2451_v28 }
  0x71   : > { %1077 = vmatprep.mubr.bf16.mxu0 %v2372_v0  ;;  %1130 = vmatprep.mubr.bf16.mxu1 %v2372_v0 }
  0x78   : > { %2211 = vmatmul.mubr.msk.bf16.vlgmr.msra.gmra.mrb[48].mxu0 %vm402_vm0, %v2436_v18  ;;  %2213 = vmatmul.mubr.msk.bf16.vlgmr.msra.gmra.mrb[48].mxu1 %vm402_vm0, %v2436_v18 }
  0x79   : > { %1152 = vmatpush1.bf16.msra.mxu0 %v2183_v6  ;;  %1205 = vmatpush1.bf16.msra.mxu1 %v2185_v7 }
  0x7a   : > { %1087 = vmatprep.mubr.bf16.mxu0 %v2372_v0  ;;  %1140 = vmatprep.mubr.bf16.mxu1 %v2372_v0 }
  0x80   : > { %2212 = vmatmul.mubr.msk.bf16.gmra.mrb[52].mxu0 %vm402_vm0, %v2451_v28  ;;  %2214 = vmatmul.mubr.msk.bf16.gmra.mrb[52].mxu1 %vm402_vm0, %v2451_v28 }
  0x81   : > { %1183 = vmatprep.mubr.bf16.mxu0 %v2372_v0  ;;  %1236 = vmatprep.mubr.bf16.mxu1 %v2372_v0 }
  0x87   : > { %v2561_v8 = vpop.permute.xlu0 %214  ;;  %v2563_v9 = vpop.permute.xlu1 %224 }
  0x88   : > { %2215 = vmatmul.mubr.msk.bf16.vlgmr.msra.gmra.mrb[56].mxu0 %vm402_vm0, %v2436_v18  ;;  %2217 = vmatmul.mubr.msk.bf16.vlgmr.msra.gmra.mrb[56].mxu1 %vm402_vm0, %v2436_v18 }
  0x89   : > { %1193 = vmatprep.mubr.bf16.mxu0 %v2372_v0  ;;  %1246 = vmatprep.mubr.bf16.mxu1 %v2372_v0 }
  0x8b   : > { %v2565_v11 = vpop.permute.xlu0 %219  ;;  %v2582_v42 = vpop.permute.xlu1 %229 }
  0x90   : > { %2216 = vmatmul.mubr.msk.bf16.gmra.mrb[60].mxu0 %vm402_vm0, %v2451_v28  ;;  %2218 = vmatmul.mubr.msk.bf16.gmra.mrb[60].mxu1 %vm402_vm0, %v2451_v28 }
  0xeb   : > { %v443_v10 = vpop.f32.mrb[0].mxu0  ;;  %v496_v13 = vpop.f32.mrb[0].mxu1 }
  0xec   : > { %v444_v12 = vadd.f32 %v443_v10, %v2561_v8  ;;  %v445_v14 = vpop.f32.mrb[1].mxu0  ;;  %v497_v15 = vadd.f32 %v496_v13, %v2561_v8  ;;  %v498_v16 = vpop.f32.mrb[1].mxu1 }
  0xed   : > { %v446_v0 = vadd.f32 %v445_v14, %v2561_v8  ;;  %v447_v17 = vpop.f32.mrb[2].mxu0  ;;  %v499_v19 = vadd.f32 %v498_v16, %v2561_v8  ;;  %v500_v21 = vpop.f32.mrb[2].mxu1 }
  0xee   : > { %vm1257_vm1 = vcmp.gt.f32.partialorder %v444_v12, 0.0  ;;  %v1385_v18 = vmul.f32 0.2, %v444_v12  ;;  %v448_v20 = vadd.f32 %v447_v17, %v2565_v11  ;;  %v449_v22 = vpop.f32.mrb[3].mxu0  ;;  %vm1259_vm2 = vcmp.gt.f32.partialorder %v497_v15, 0.0  ;;  %v502_v27 = vpop.f32.mrb[3].mxu1 }
  0xef   : > { %v1387_v23 = vmul.f32 0.2, %v497_v15  ;;  %vm1258_vm3 = vcmp.gt.f32.partialorder %v446_v0, 0.0  ;;  %v1386_v24 = vmul.f32 0.2, %v446_v0  ;;  %vm1260_vm4 = vcmp.gt.f32.partialorder %v499_v19, 0.0 }
  0xf0   : > { %v1513_v25 = vsel %vm1257_vm1, %v444_v12, %v1385_v18  ;;  %v1388_v26 = vmul.f32 0.2, %v499_v19  ;;  %vm1289_vm5 = vcmp.gt.f32.partialorder %v448_v20, 0.0  ;;  %v1417_v30 = vmul.f32 0.2, %v448_v20 }
  0xf1   : > { %v1515_v28 = vsel %vm1259_vm2, %v497_v15, %v1387_v23  ;;  %v1514_v29 = vsel %vm1258_vm3, %v446_v0, %v1386_v24  ;;  %v501_v31 = vadd.f32 %v500_v21, %v2565_v11  ;;  %v450_v34 = vadd.f32 %v449_v22, %v2565_v11 }
  0xf2   : > { %v2287_v32 = vpack.c.bf16 %v1514_v29, %v1513_v25  ;;  %v1516_v33 = vsel %vm1260_vm4, %v499_v19, %v1388_v26  ;;  %v503_v35 = vadd.f32 %v502_v27, %v2565_v11  ;;  %v1545_v37 = vsel %vm1289_vm5, %v448_v20, %v1417_v30 }
  0xf3   : > { %v2288_v36 = vpack.c.bf16 %v1516_v33, %v1515_v28  ;;  %vm1291_vm6 = vcmp.gt.f32.partialorder %v501_v31, 0.0  ;;  %v1419_v38 = vmul.f32 0.2, %v501_v31  ;;  %v453_v39 = vpop.f32.mrb[4].mxu0  ;;  %vm1290_vm7 = vcmp.gt.f32.partialorder %v450_v34, 0.0  ;;  %v506_v45 = vpop.f32.mrb[4].mxu1 }
  0xf4   : > { %2025 = vst [vmem:[%s2576_s6] sm:$0xff] %v2287_v32  ;;  %v1418_v40 = vmul.f32 0.2, %v450_v34  ;;  %vm1292_vm8 = vcmp.gt.f32.partialorder %v503_v35, 0.0  ;;  %v1420_v41 = vmul.f32 0.2, %v503_v35  ;;  %v454_v44 = vadd.f32 %v453_v39, %v2563_v9  ;;  %v455_v46 = vpop.f32.mrb[5].mxu0 }
  0xf5   : > { %2026 = vst [vmem:[%s2576_s6 + $0x8] sm:$0xff] %v2288_v36  ;;  %v1547_v43 = vsel %vm1291_vm6, %v501_v31, %v1419_v38  ;;  %v507_v49 = vadd.f32 %v506_v45, %v2563_v9  ;;  %v456_v50 = vadd.f32 %v455_v46, %v2563_v9  ;;  %v508_v51 = vpop.f32.mrb[5].mxu1  ;;  %v457_v52 = vpop.f32.mrb[6].mxu0 }
  0xf6   : > { %v1546_v47 = vsel %vm1290_vm7, %v450_v34, %v1418_v40  ;;  %v1548_v48 = vsel %vm1292_vm8, %v503_v35, %v1420_v41  ;;  %vm1321_vm9 = vcmp.gt.f32.partialorder %v454_v44, 0.0  ;;  %v1449_v55 = vmul.f32 0.2, %v454_v44  ;;  %v510_v56 = vpop.f32.mrb[6].mxu1  ;;  %v459_v57 = vpop.f32.mrb[7].mxu0 }
  0xf7   : > { %v2303_v53 = vpack.c.bf16 %v1546_v47, %v1545_v37  ;;  %v2304_v54 = vpack.c.bf16 %v1548_v48, %v1547_v43  ;;  %vm1323_vm10 = vcmp.gt.f32.partialorder %v507_v49, 0.0  ;;  %v1451_v58 = vmul.f32 0.2, %v507_v49  ;;  %v512_v1 = vpop.f32.mrb[7].mxu1 }
  0xf8   : > { %vm1322_vm11 = vcmp.gt.f32.partialorder %v456_v50, 0.0  ;;  %v1450_v59 = vmul.f32 0.2, %v456_v50  ;;  %v1577_v60 = vsel %vm1321_vm9, %v454_v44, %v1449_v55  ;;  %v509_v61 = vadd.f32 %v508_v51, %v2563_v9 }
  0xf9   : > { %2041 = vst [vmem:[%s2576_s6 + $0x80] sm:$0xff] %v2303_v53  ;;  %2042 = vst [vmem:[%s2576_s6 + $0x88] sm:$0xff] %v2304_v54  ;;  %v458_v62 = vadd.f32 %v457_v52, %v2582_v42  ;;  %v511_v63 = vadd.f32 %v510_v56, %v2582_v42  ;;  %v1579_v2 = vsel %vm1323_vm10, %v507_v49, %v1451_v58 }
  0xfa   : > { %v1578_v3 = vsel %vm1322_vm11, %v456_v50, %v1450_v59  ;;  %v460_v4 = vadd.f32 %v459_v57, %v2582_v42  ;;  %v513_v5 = vadd.f32 %v512_v1, %v2582_v42  ;;  %vm1324_vm12 = vcmp.gt.f32.partialorder %v509_v61, 0.0 }
  0xfb   : > { %v2319_v6 = vpack.c.bf16 %v1578_v3, %v1577_v60  ;;  %v1452_v7 = vmul.f32 0.2, %v509_v61  ;;  %vm1353_vm13 = vcmp.gt.f32.partialorder %v458_v62, 0.0  ;;  %v549_v10 = vpop.f32.mrb[8].mxu0  ;;  %v1481_v12 = vmul.f32 0.2, %v458_v62 }
  0xfc   : > { %vm1355_vm14 = vcmp.gt.f32.partialorder %v511_v63, 0.0  ;;  %v1483_v13 = vmul.f32 0.2, %v511_v63  ;;  %vm1354_vm15 = vcmp.gt.f32.partialorder %v460_v4, 0.0  ;;  %v1482_v15 = vmul.f32 0.2, %v460_v4 }
  0xfd   : > { %2057 = vst [vmem:[%s2576_s6 + $0x100] sm:$0xff] %v2319_v6  ;;  %v1580_v14 = vsel %vm1324_vm12, %v509_v61, %v1452_v7  ;;  %vm1356_vm0 = vcmp.gt.f32.partialorder %v513_v5, 0.0  ;;  %v1484_v0 = vmul.f32 0.2, %v513_v5  ;;  %v602_v16 = vpop.f32.mrb[8].mxu1  ;;  %v1609_v18 = vsel %vm1353_vm13, %v458_v62, %v1481_v12  ;;  %v551_v21 = vpop.f32.mrb[9].mxu0 }
  0xfe   : > { %v2320_v17 = vpack.c.bf16 %v1580_v14, %v1579_v2  ;;  %v1611_v19 = vsel %vm1355_vm14, %v511_v63, %v1483_v13  ;;  %v550_v20 = vadd.f32 %v549_v10, %v2561_v8  ;;  %v604_v22 = vpop.f32.mrb[9].mxu1  ;;  %v1610_v23 = vsel %vm1354_vm15, %v460_v4, %v1482_v15  ;;  %v553_v27 = vpop.f32.mrb[10].mxu0 }
  0xff   : > { %v1612_v24 = vsel %vm1356_vm0, %v513_v5, %v1484_v0  ;;  %v603_v25 = vadd.f32 %v602_v16, %v2561_v8  ;;  %v552_v26 = vadd.f32 %v551_v21, %v2561_v8  ;;  %v606_v28 = vpop.f32.mrb[10].mxu1  ;;  %v2335_v29 = vpack.c.bf16 %v1610_v23, %v1609_v18  ;;  %v555_v32 = vpop.f32.mrb[11].mxu0 }
 0x100   : > { %2058 = vst [vmem:[%s2576_s6 + $0x108] sm:$0xff] %v2320_v17  ;;  %v2336_v30 = vpack.c.bf16 %v1612_v24, %v1611_v19  ;;  %vm1261_vm1 = vcmp.gt.f32.partialorder %v550_v20, 0.0  ;;  %v1389_v31 = vmul.f32 0.2, %v550_v20  ;;  %v608_v33 = vpop.f32.mrb[11].mxu1  ;;  %v605_v37 = vadd.f32 %v604_v22, %v2561_v8 }
 0x101   : > { %vm1263_vm2 = vcmp.gt.f32.partialorder %v603_v25, 0.0  ;;  %v1391_v34 = vmul.f32 0.2, %v603_v25  ;;  %vm1262_vm3 = vcmp.gt.f32.partialorder %v552_v26, 0.0  ;;  %v1390_v35 = vmul.f32 0.2, %v552_v26 }
 0x102   : > { %2073 = vst [vmem:[%s2576_s6 + $0x180] sm:$0xff] %v2335_v29  ;;  %2074 = vst [vmem:[%s2576_s6 + $0x188] sm:$0xff] %v2336_v30  ;;  %v1517_v36 = vsel %vm1261_vm1, %v550_v20, %v1389_v31  ;;  %v554_v38 = vadd.f32 %v553_v27, %v2565_v11  ;;  %v607_v39 = vadd.f32 %v606_v28, %v2565_v11  ;;  %vm1264_vm4 = vcmp.gt.f32.partialorder %v605_v37, 0.0 }
 0x103   : > { %v1519_v40 = vsel %vm1263_vm2, %v603_v25, %v1391_v34  ;;  %v1518_v41 = vsel %vm1262_vm3, %v552_v26, %v1390_v35  ;;  %v556_v43 = vadd.f32 %v555_v32, %v2565_v11  ;;  %v609_v44 = vadd.f32 %v608_v33, %v2565_v11  ;;  %v559_v45 = vpop.f32.mrb[12].mxu0  ;;  %v612_v48 = vpop.f32.mrb[12].mxu1 }
 0x104   : > { %v2289_v46 = vpack.c.bf16 %v1518_v41, %v1517_v36  ;;  %v1392_v47 = vmul.f32 0.2, %v605_v37  ;;  %vm1293_vm5 = vcmp.gt.f32.partialorder %v554_v38, 0.0  ;;  %v561_v49 = vpop.f32.mrb[13].mxu0  ;;  %v1421_v50 = vmul.f32 0.2, %v554_v38 }
 0x105   : > { %vm1295_vm6 = vcmp.gt.f32.partialorder %v607_v39, 0.0  ;;  %v1423_v51 = vmul.f32 0.2, %v607_v39  ;;  %vm1294_vm7 = vcmp.gt.f32.partialorder %v556_v43, 0.0  ;;  %v1422_v53 = vmul.f32 0.2, %v556_v43 }
 0x106   : > { %2027 = vst [vmem:[%s2576_s6 + $0x10] sm:$0xff] %v2289_v46  ;;  %v1520_v52 = vsel %vm1264_vm4, %v605_v37, %v1392_v47  ;;  %vm1296_vm8 = vcmp.gt.f32.partialorder %v609_v44, 0.0  ;;  %v1424_v54 = vmul.f32 0.2, %v609_v44  ;;  %v614_v55 = vpop.f32.mrb[13].mxu1  ;;  %v1549_v57 = vsel %vm1293_vm5, %v554_v38, %v1421_v50  ;;  %v563_v60 = vpop.f32.mrb[14].mxu0 }
 0x107   : > { %v2290_v56 = vpack.c.bf16 %v1520_v52, %v1519_v40  ;;  %v1551_v58 = vsel %vm1295_vm6, %v607_v39, %v1423_v51  ;;  %v560_v59 = vadd.f32 %v559_v45, %v2563_v9  ;;  %v616_v61 = vpop.f32.mrb[14].mxu1  ;;  %v1550_v62 = vsel %vm1294_vm7, %v556_v43, %v1422_v53  ;;  %v565_v3 = vpop.f32.mrb[15].mxu0 }
 0x108   : > { %v1552_v63 = vsel %vm1296_vm8, %v609_v44, %v1424_v54  ;;  %v613_v1 = vadd.f32 %v612_v48, %v2563_v9  ;;  %v562_v2 = vadd.f32 %v561_v49, %v2563_v9  ;;  %v618_v4 = vpop.f32.mrb[15].mxu1  ;;  %v2305_v5 = vpack.c.bf16 %v1550_v62, %v1549_v57 }
 0x109   : > { %2028 = vst [vmem:[%s2576_s6 + $0x18] sm:$0xff] %v2290_v56  ;;  %v2306_v6 = vpack.c.bf16 %v1552_v63, %v1551_v58  ;;  %vm1325_vm9 = vcmp.gt.f32.partialorder %v560_v59, 0.0  ;;  %v1453_v7 = vmul.f32 0.2, %v560_v59  ;;  %v615_v14 = vadd.f32 %v614_v55, %v2563_v9 }
 0x10a   : > { %vm1327_vm10 = vcmp.gt.f32.partialorder %v613_v1, 0.0  ;;  %v1455_v10 = vmul.f32 0.2, %v613_v1  ;;  %vm1326_vm11 = vcmp.gt.f32.partialorder %v562_v2, 0.0  ;;  %v1454_v12 = vmul.f32 0.2, %v562_v2 }
 0x10b   : > { %2043 = vst [vmem:[%s2576_s6 + $0x90] sm:$0xff] %v2305_v5  ;;  %2044 = vst [vmem:[%s2576_s6 + $0x98] sm:$0xff] %v2306_v6  ;;  %v1581_v13 = vsel %vm1325_vm9, %v560_v59, %v1453_v7  ;;  %v564_v15 = vadd.f32 %v563_v60, %v2582_v42  ;;  %v617_v0 = vadd.f32 %v616_v61, %v2582_v42  ;;  %v655_v16 = vpop.f32.mrb[16].mxu0  ;;  %v708_v21 = vpop.f32.mrb[16].mxu1  ;;  %vm1328_vm12 = vcmp.gt.f32.partialorder %v615_v14, 0.0 }
 0x10c   : > { %v1583_v17 = vsel %vm1327_vm10, %v613_v1, %v1455_v10  ;;  %v1582_v18 = vsel %vm1326_vm11, %v562_v2, %v1454_v12  ;;  %v566_v19 = vadd.f32 %v565_v3, %v2582_v42  ;;  %v619_v20 = vadd.f32 %v618_v4, %v2582_v42  ;;  %v657_v22 = vpop.f32.mrb[17].mxu0  ;;  %v710_v25 = vpop.f32.mrb[17].mxu1 }
 0x10d   : > { %v2321_v23 = vpack.c.bf16 %v1582_v18, %v1581_v13  ;;  %v1456_v24 = vmul.f32 0.2, %v615_v14  ;;  %vm1357_vm13 = vcmp.gt.f32.partialorder %v564_v15, 0.0  ;;  %v659_v26 = vpop.f32.mrb[18].mxu0  ;;  %v1485_v27 = vmul.f32 0.2, %v564_v15 }
 0x10e   : > { %vm1359_vm14 = vcmp.gt.f32.partialorder %v617_v0, 0.0  ;;  %v1487_v28 = vmul.f32 0.2, %v617_v0  ;;  %vm1358_vm15 = vcmp.gt.f32.partialorder %v566_v19, 0.0  ;;  %v1486_v30 = vmul.f32 0.2, %v566_v19 }
 0x10f   : > { %2059 = vst [vmem:[%s2576_s6 + $0x110] sm:$0xff] %v2321_v23  ;;  %v1584_v29 = vsel %vm1328_vm12, %v615_v14, %v1456_v24  ;;  %vm1360_vm0 = vcmp.gt.f32.partialorder %v619_v20, 0.0  ;;  %v1488_v31 = vmul.f32 0.2, %v619_v20  ;;  %v712_v32 = vpop.f32.mrb[18].mxu1  ;;  %v1613_v34 = vsel %vm1357_vm13, %v564_v15, %v1485_v27  ;;  %v661_v37 = vpop.f32.mrb[19].mxu0 }
 0x110   : > { %v2322_v33 = vpack.c.bf16 %v1584_v29, %v1583_v17  ;;  %v1615_v35 = vsel %vm1359_vm14, %v617_v0, %v1487_v28  ;;  %v656_v36 = vadd.f32 %v655_v16, %v2561_v8  ;;  %v714_v38 = vpop.f32.mrb[19].mxu1  ;;  %v1614_v39 = vsel %vm1358_vm15, %v566_v19, %v1486_v30 }
 0x111   : > { %v1616_v40 = vsel %vm1360_vm0, %v619_v20, %v1488_v31  ;;  %v709_v41 = vadd.f32 %v708_v21, %v2561_v8  ;;  %v658_v43 = vadd.f32 %v657_v22, %v2561_v8  ;;  %v2337_v44 = vpack.c.bf16 %v1614_v39, %v1613_v34 }
 0x112   : > { %2060 = vst [vmem:[%s2576_s6 + $0x118] sm:$0xff] %v2322_v33  ;;  %v2338_v45 = vpack.c.bf16 %v1616_v40, %v1615_v35  ;;  %vm1265_vm1 = vcmp.gt.f32.partialorder %v656_v36, 0.0  ;;  %v1393_v46 = vmul.f32 0.2, %v656_v36  ;;  %v711_v50 = vadd.f32 %v710_v25, %v2561_v8 }
 0x113   : > { %vm1267_vm2 = vcmp.gt.f32.partialorder %v709_v41, 0.0  ;;  %v1395_v47 = vmul.f32 0.2, %v709_v41  ;;  %vm1266_vm3 = vcmp.gt.f32.partialorder %v658_v43, 0.0  ;;  %v1394_v48 = vmul.f32 0.2, %v658_v43 }
 0x114   : > { %2075 = vst [vmem:[%s2576_s6 + $0x190] sm:$0xff] %v2337_v44  ;;  %2076 = vst [vmem:[%s2576_s6 + $0x198] sm:$0xff] %v2338_v45  ;;  %v1521_v49 = vsel %vm1265_vm1, %v656_v36, %v1393_v46  ;;  %v660_v51 = vadd.f32 %v659_v26, %v2565_v11  ;;  %v713_v52 = vadd.f32 %v712_v32, %v2565_v11  ;;  %v665_v53 = vpop.f32.mrb[20].mxu0  ;;  %v718_v54 = vpop.f32.mrb[20].mxu1  ;;  %vm1268_vm4 = vcmp.gt.f32.partialorder %v711_v50, 0.0 }
 0x115   : > { %v1523_v55 = vsel %vm1267_vm2, %v709_v41, %v1395_v47  ;;  %v1522_v56 = vsel %vm1266_vm3, %v658_v43, %v1394_v48  ;;  %v662_v57 = vadd.f32 %v661_v37, %v2565_v11  ;;  %v715_v58 = vadd.f32 %v714_v38, %v2565_v11  ;;  %v667_v59 = vpop.f32.mrb[21].mxu0  ;;  %v720_v60 = vpop.f32.mrb[21].mxu1 }
 0x116   : > { %v2291_v61 = vpack.c.bf16 %v1522_v56, %v1521_v49  ;;  %v1396_v62 = vmul.f32 0.2, %v711_v50  ;;  %vm1297_vm5 = vcmp.gt.f32.partialorder %v660_v51, 0.0  ;;  %v669_v63 = vpop.f32.mrb[22].mxu0  ;;  %v722_v1 = vpop.f32.mrb[22].mxu1  ;;  %vm1299_vm6 = vcmp.gt.f32.partialorder %v713_v52, 0.0 }
 0x117   : > { %v1425_v2 = vmul.f32 0.2, %v660_v51  ;;  %v1427_v3 = vmul.f32 0.2, %v713_v52  ;;  %vm1298_vm7 = vcmp.gt.f32.partialorder %v662_v57, 0.0  ;;  %vm1300_vm8 = vcmp.gt.f32.partialorder %v715_v58, 0.0 }
 0x118   : > { %2029 = vst [vmem:[%s2576_s6 + $0x20] sm:$0xff] %v2291_v61  ;;  %v1524_v4 = vsel %vm1268_vm4, %v711_v50, %v1396_v62  ;;  %v1426_v5 = vmul.f32 0.2, %v662_v57  ;;  %v1428_v6 = vmul.f32 0.2, %v715_v58  ;;  %v671_v7 = vpop.f32.mrb[23].mxu0  ;;  %v666_v14 = vadd.f32 %v665_v53, %v2563_v9 }
 0x119   : > { %v2292_v10 = vpack.c.bf16 %v1524_v4, %v1523_v55  ;;  %v1553_v12 = vsel %vm1297_vm5, %v660_v51, %v1425_v2  ;;  %v1555_v13 = vsel %vm1299_vm6, %v713_v52, %v1427_v3  ;;  %v724_v15 = vpop.f32.mrb[23].mxu1  ;;  %v719_v17 = vadd.f32 %v718_v54, %v2563_v9 }
 0x11a   : > { %v1554_v0 = vsel %vm1298_vm7, %v662_v57, %v1426_v5  ;;  %v1556_v16 = vsel %vm1300_vm8, %v715_v58, %v1428_v6  ;;  %v668_v18 = vadd.f32 %v667_v59, %v2563_v9  ;;  %vm1329_vm9 = vcmp.gt.f32.partialorder %v666_v14, 0.0 }
 0x11b   : > { %2030 = vst [vmem:[%s2576_s6 + $0x28] sm:$0xff] %v2292_v10  ;;  %v2307_v19 = vpack.c.bf16 %v1554_v0, %v1553_v12  ;;  %v2308_v20 = vpack.c.bf16 %v1556_v16, %v1555_v13  ;;  %v1457_v21 = vmul.f32 0.2, %v666_v14  ;;  %v761_v22 = vpop.f32.mrb[24].mxu0  ;;  %vm1331_vm10 = vcmp.gt.f32.partialorder %v719_v17, 0.0  ;;  %v814_v29 = vpop.f32.mrb[24].mxu1 }
 0x11c   : > { %v1459_v23 = vmul.f32 0.2, %v719_v17  ;;  %vm1330_vm11 = vcmp.gt.f32.partialorder %v668_v18, 0.0  ;;  %v1458_v24 = vmul.f32 0.2, %v668_v18  ;;  %v721_v26 = vadd.f32 %v720_v60, %v2563_v9  ;;  %v763_v30 = vpop.f32.mrb[25].mxu0 }
 0x11d   : > { %2045 = vst [vmem:[%s2576_s6 + $0xa0] sm:$0xff] %v2307_v19  ;;  %2046 = vst [vmem:[%s2576_s6 + $0xa8] sm:$0xff] %v2308_v20  ;;  %v1585_v25 = vsel %vm1329_vm9, %v666_v14, %v1457_v21  ;;  %v670_v27 = vadd.f32 %v669_v63, %v2582_v42  ;;  %v723_v28 = vadd.f32 %v722_v1, %v2582_v42  ;;  %v816_v35 = vpop.f32.mrb[25].mxu1  ;;  %v765_v36 = vpop.f32.mrb[26].mxu0 }
 0x11e   : > { %v1587_v31 = vsel %vm1331_vm10, %v719_v17, %v1459_v23  ;;  %v1586_v32 = vsel %vm1330_vm11, %v668_v18, %v1458_v24  ;;  %v672_v33 = vadd.f32 %v671_v7, %v2582_v42  ;;  %v725_v34 = vadd.f32 %v724_v15, %v2582_v42  ;;  %v818_v39 = vpop.f32.mrb[26].mxu1  ;;  %v767_v40 = vpop.f32.mrb[27].mxu0 }
 0x11f   : > { %v2323_v37 = vpack.c.bf16 %v1586_v32, %v1585_v25  ;;  %vm1332_vm12 = vcmp.gt.f32.partialorder %v721_v26, 0.0  ;;  %v1460_v38 = vmul.f32 0.2, %v721_v26  ;;  %vm1361_vm13 = vcmp.gt.f32.partialorder %v670_v27, 0.0  ;;  %v820_v47 = vpop.f32.mrb[27].mxu1 }
 0x120   : > { %v1489_v41 = vmul.f32 0.2, %v670_v27  ;;  %vm1363_vm14 = vcmp.gt.f32.partialorder %v723_v28, 0.0  ;;  %v1491_v43 = vmul.f32 0.2, %v723_v28  ;;  %vm1362_vm15 = vcmp.gt.f32.partialorder %v672_v33, 0.0 }
 0x121   : > { %2061 = vst [vmem:[%s2576_s6 + $0x120] sm:$0xff] %v2323_v37  ;;  %v1588_v44 = vsel %vm1332_vm12, %v721_v26, %v1460_v38  ;;  %v1490_v45 = vmul.f32 0.2, %v672_v33  ;;  %vm1364_vm0 = vcmp.gt.f32.partialorder %v725_v34, 0.0  ;;  %v1492_v46 = vmul.f32 0.2, %v725_v34 }
 0x122   : > { %v2324_v48 = vpack.c.bf16 %v1588_v44, %v1587_v31  ;;  %v1617_v49 = vsel %vm1361_vm13, %v670_v27, %v1489_v41  ;;  %v1619_v50 = vsel %vm1363_vm14, %v723_v28, %v1491_v43  ;;  %v762_v51 = vadd.f32 %v761_v22, %v2561_v8 }
 0x123   : > { %v1618_v52 = vsel %vm1362_vm15, %v672_v33, %v1490_v45  ;;  %v1620_v53 = vsel %vm1364_vm0, %v725_v34, %v1492_v46  ;;  %v815_v54 = vadd.f32 %v814_v29, %v2561_v8  ;;  %v764_v55 = vadd.f32 %v763_v30, %v2561_v8  ;;  %v771_v56 = vpop.f32.mrb[28].mxu0  ;;  %v824_v60 = vpop.f32.mrb[28].mxu1 }
 0x124   : > { %2062 = vst [vmem:[%s2576_s6 + $0x128] sm:$0xff] %v2324_v48  ;;  %v2339_v57 = vpack.c.bf16 %v1618_v52, %v1617_v49  ;;  %v2340_v58 = vpack.c.bf16 %v1620_v53, %v1619_v50  ;;  %vm1269_vm1 = vcmp.gt.f32.partialorder %v762_v51, 0.0  ;;  %v1397_v59 = vmul.f32 0.2, %v762_v51  ;;  %v773_v61 = vpop.f32.mrb[29].mxu0  ;;  %v826_v5 = vpop.f32.mrb[29].mxu1 }
 0x125   : > { %vm1271_vm2 = vcmp.gt.f32.partialorder %v815_v54, 0.0  ;;  %v1399_v62 = vmul.f32 0.2, %v815_v54  ;;  %vm1270_vm3 = vcmp.gt.f32.partialorder %v764_v55, 0.0  ;;  %v1398_v63 = vmul.f32 0.2, %v764_v55 }
 0x126   : > { %2077 = vst [vmem:[%s2576_s6 + $0x1a0] sm:$0xff] %v2339_v57  ;;  %2078 = vst [vmem:[%s2576_s6 + $0x1a8] sm:$0xff] %v2340_v58  ;;  %v1525_v1 = vsel %vm1269_vm1, %v762_v51, %v1397_v59  ;;  %v817_v2 = vadd.f32 %v816_v35, %v2561_v8  ;;  %v766_v3 = vadd.f32 %v765_v36, %v2565_v11  ;;  %v775_v6 = vpop.f32.mrb[30].mxu0  ;;  %v828_v14 = vpop.f32.mrb[30].mxu1 }
 0x127   : > { %v819_v4 = vadd.f32 %v818_v39, %v2565_v11  ;;  %v1527_v7 = vsel %vm1271_vm2, %v815_v54, %v1399_v62  ;;  %v1526_v10 = vsel %vm1270_vm3, %v764_v55, %v1398_v63  ;;  %v768_v12 = vadd.f32 %v767_v40, %v2565_v11  ;;  %v777_v15 = vpop.f32.mrb[31].mxu0  ;;  %v830_v17 = vpop.f32.mrb[31].mxu1 }
 0x128   : > { %v821_v13 = vadd.f32 %v820_v47, %v2565_v11  ;;  %v2293_v0 = vpack.c.bf16 %v1526_v10, %v1525_v1  ;;  %vm1272_vm4 = vcmp.gt.f32.partialorder %v817_v2, 0.0  ;;  %v1400_v16 = vmul.f32 0.2, %v817_v2 }
 0x129   : > { %vm1301_vm5 = vcmp.gt.f32.partialorder %v766_v3, 0.0  ;;  %v1429_v18 = vmul.f32 0.2, %v766_v3  ;;  %vm1303_vm6 = vcmp.gt.f32.partialorder %v819_v4, 0.0  ;;  %v1431_v19 = vmul.f32 0.2, %v819_v4 }
 0x12a   : > { %vm1302_vm7 = vcmp.gt.f32.partialorder %v768_v12, 0.0  ;;  %2031 = vst [vmem:[%s2576_s6 + $0x30] sm:$0xff] %v2293_v0  ;;  %v1528_v20 = vsel %vm1272_vm4, %v817_v2, %v1400_v16  ;;  %v1430_v21 = vmul.f32 0.2, %v768_v12  ;;  %vm1304_vm8 = vcmp.gt.f32.partialorder %v821_v13, 0.0 }
 0x12b   : > { %v1432_v22 = vmul.f32 0.2, %v821_v13  ;;  %v2294_v23 = vpack.c.bf16 %v1528_v20, %v1527_v7  ;;  %v1557_v24 = vsel %vm1301_vm5, %v766_v3, %v1429_v18  ;;  %v1559_v25 = vsel %vm1303_vm6, %v819_v4, %v1431_v19  ;;  %v867_v27 = vpop.f32.mrb[32].mxu0  ;;  %v920_v32 = vpop.f32.mrb[32].mxu1 }
 0x12c   : > { %v772_v26 = vadd.f32 %v771_v56, %v2563_v9  ;;  %v1558_v28 = vsel %vm1302_vm7, %v768_v12, %v1430_v21  ;;  %v825_v30 = vadd.f32 %v824_v60, %v2563_v9  ;;  %v774_v31 = vadd.f32 %v773_v61, %v2563_v9  ;;  %v869_v33 = vpop.f32.mrb[33].mxu0  ;;  %v922_v37 = vpop.f32.mrb[33].mxu1 }
 0x12d   : > { %v1560_v29 = vsel %vm1304_vm8, %v821_v13, %v1432_v22  ;;  %2032 = vst [vmem:[%s2576_s6 + $0x38] sm:$0xff] %v2294_v23  ;;  %v2309_v34 = vpack.c.bf16 %v1558_v28, %v1557_v24  ;;  %v871_v38 = vpop.f32.mrb[34].mxu0  ;;  %v827_v43 = vadd.f32 %v826_v5, %v2563_v9  ;;  %v776_v44 = vadd.f32 %v775_v6, %v2582_v42  ;;  %v924_v46 = vpop.f32.mrb[34].mxu1 }
 0x12e   : > { %v2310_v35 = vpack.c.bf16 %v1560_v29, %v1559_v25  ;;  %vm1333_vm9 = vcmp.gt.f32.partialorder %v772_v26, 0.0  ;;  %v1461_v36 = vmul.f32 0.2, %v772_v26  ;;  %vm1335_vm10 = vcmp.gt.f32.partialorder %v825_v30, 0.0  ;;  %v873_v47 = vpop.f32.mrb[35].mxu0  ;;  %v926_v52 = vpop.f32.mrb[35].mxu1 }
 0x12f   : > { %v1463_v39 = vmul.f32 0.2, %v825_v30  ;;  %vm1334_vm11 = vcmp.gt.f32.partialorder %v774_v31, 0.0  ;;  %v1462_v40 = vmul.f32 0.2, %v774_v31  ;;  %2047 = vst [vmem:[%s2576_s6 + $0xb0] sm:$0xff] %v2309_v34  ;;  %v829_v45 = vadd.f32 %v828_v14, %v2582_v42 }
 0x130   : > { %2048 = vst [vmem:[%s2576_s6 + $0xb8] sm:$0xff] %v2310_v35  ;;  %v1589_v41 = vsel %vm1333_vm9, %v772_v26, %v1461_v36  ;;  %v778_v50 = vadd.f32 %v777_v15, %v2582_v42  ;;  %v831_v51 = vadd.f32 %v830_v17, %v2582_v42  ;;  %vm1336_vm12 = vcmp.gt.f32.partialorder %v827_v43, 0.0 }
 0x131   : > { %v1591_v48 = vsel %vm1335_vm10, %v825_v30, %v1463_v39  ;;  %v1590_v49 = vsel %vm1334_vm11, %v774_v31, %v1462_v40  ;;  %v1464_v54 = vmul.f32 0.2, %v827_v43  ;;  %vm1365_vm13 = vcmp.gt.f32.partialorder %v776_v44, 0.0 }
 0x132   : > { %v2325_v53 = vpack.c.bf16 %v1590_v49, %v1589_v41  ;;  %v1493_v55 = vmul.f32 0.2, %v776_v44  ;;  %vm1367_vm14 = vcmp.gt.f32.partialorder %v829_v45, 0.0  ;;  %v1495_v56 = vmul.f32 0.2, %v829_v45 }
 0x133   : > { %vm1366_vm15 = vcmp.gt.f32.partialorder %v778_v50, 0.0  ;;  %v1592_v57 = vsel %vm1336_vm12, %v827_v43, %v1464_v54  ;;  %v1494_v58 = vmul.f32 0.2, %v778_v50  ;;  %vm1368_vm0 = vcmp.gt.f32.partialorder %v831_v51, 0.0  ;;  %v877_v60 = vpop.f32.mrb[36].mxu0  ;;  %v930_v2 = vpop.f32.mrb[36].mxu1 }
 0x134   : > { %2063 = vst [vmem:[%s2576_s6 + $0x130] sm:$0xff] %v2325_v53  ;;  %v1496_v59 = vmul.f32 0.2, %v831_v51  ;;  %v2326_v61 = vpack.c.bf16 %v1592_v57, %v1591_v48  ;;  %v1621_v62 = vsel %vm1365_vm13, %v776_v44, %v1493_v55  ;;  %v1623_v63 = vsel %vm1367_vm14, %v829_v45, %v1495_v56  ;;  %v879_v3 = vpop.f32.mrb[37].mxu0  ;;  %v2671_v10 = vpop.f32.mrb[37].mxu1 }
 0x135   : > { %v868_v1 = vadd.f32 %v867_v27, %v2561_v8  ;;  %v1622_v4 = vsel %vm1366_vm15, %v778_v50, %v1494_v58  ;;  %v921_v6 = vadd.f32 %v920_v32, %v2561_v8  ;;  %v870_v7 = vadd.f32 %v869_v33, %v2561_v8  ;;  %v2673_v12 = vpop.f32.mrb[38].mxu0  ;;  %v934_v0 = vpop.f32.mrb[38].mxu1 }
 0x136   : > { %v1624_v5 = vsel %vm1368_vm0, %v831_v51, %v1496_v59  ;;  %2064 = vst [vmem:[%s2576_s6 + $0x138] sm:$0xff] %v2326_v61  ;;  %v2341_v13 = vpack.c.bf16 %v1622_v4, %v1621_v62  ;;  %v2676_v16 = vpop.f32.mrb[39].mxu0  ;;  %v923_v20 = vadd.f32 %v922_v37, %v2561_v8  ;;  %v872_v21 = vadd.f32 %v871_v38, %v2565_v11  ;;  %v936_v23 = vpop.f32.mrb[39].mxu1 }
 0x137   : > { %v2342_v14 = vpack.c.bf16 %v1624_v5, %v1623_v63  ;;  %vm1273_vm1 = vcmp.gt.f32.partialorder %v868_v1, 0.0  ;;  %v1401_v15 = vmul.f32 0.2, %v868_v1  ;;  %vm1275_vm2 = vcmp.gt.f32.partialorder %v921_v6, 0.0 }
 0x138   : > { %v1403_v17 = vmul.f32 0.2, %v921_v6  ;;  %vm1274_vm3 = vcmp.gt.f32.partialorder %v870_v7, 0.0  ;;  %v1402_v18 = vmul.f32 0.2, %v870_v7  ;;  %2079 = vst [vmem:[%s2576_s6 + $0x1b0] sm:$0xff] %v2341_v13  ;;  %v925_v22 = vadd.f32 %v924_v46, %v2565_v11 }
 0x139   : > { %2080 = vst [vmem:[%s2576_s6 + $0x1b8] sm:$0xff] %v2342_v14  ;;  %v1529_v19 = vsel %vm1273_vm1, %v868_v1, %v1401_v15  ;;  %v874_v26 = vadd.f32 %v873_v47, %v2565_v11  ;;  %v927_v27 = vadd.f32 %v926_v52, %v2565_v11  ;;  %vm1276_vm4 = vcmp.gt.f32.partialorder %v923_v20, 0.0 }
 0x13a   : > { %v1531_v24 = vsel %vm1275_vm2, %v921_v6, %v1403_v17  ;;  %v1530_v25 = vsel %vm1274_vm3, %v870_v7, %v1402_v18  ;;  %v1404_v29 = vmul.f32 0.2, %v923_v20  ;;  %vm1305_vm5 = vcmp.gt.f32.partialorder %v872_v21, 0.0 }
 0x13b   : > { %v2295_v28 = vpack.c.bf16 %v1530_v25, %v1529_v19  ;;  %v1433_v30 = vmul.f32 0.2, %v872_v21  ;;  %vm1307_vm6 = vcmp.gt.f32.partialorder %v925_v22, 0.0  ;;  %v1435_v31 = vmul.f32 0.2, %v925_v22  ;;  %v973_v35 = vpop.f32.mrb[40].mxu0 }
 0x13c   : > { %vm1306_vm7 = vcmp.gt.f32.partialorder %v874_v26, 0.0  ;;  %v1532_v32 = vsel %vm1276_vm4, %v923_v20, %v1404_v29  ;;  %v1434_v33 = vmul.f32 0.2, %v874_v26  ;;  %vm1308_vm8 = vcmp.gt.f32.partialorder %v927_v27, 0.0  ;;  %v1026_v40 = vpop.f32.mrb[40].mxu1  ;;  %v975_v41 = vpop.f32.mrb[41].mxu0 }
 0x13d   : > { %2033 = vst [vmem:[%s2576_s6 + $0x40] sm:$0xff] %v2295_v28  ;;  %v1436_v34 = vmul.f32 0.2, %v927_v27  ;;  %v2296_v36 = vpack.c.bf16 %v1532_v32, %v1531_v24  ;;  %v1561_v37 = vsel %vm1305_vm5, %v872_v21, %v1433_v30  ;;  %v1563_v38 = vsel %vm1307_vm6, %v925_v22, %v1435_v31  ;;  %v2689_v47 = vpop.f32.mrb[41].mxu1  ;;  %v2691_v48 = vpop.f32.mrb[42].mxu0 }
 0x13e   : > { %v878_v39 = vadd.f32 %v877_v60, %v2563_v9  ;;  %v1562_v43 = vsel %vm1306_vm7, %v874_v26, %v1434_v33  ;;  %v931_v45 = vadd.f32 %v930_v2, %v2563_v9  ;;  %v880_v46 = vadd.f32 %v879_v3, %v2563_v9  ;;  %v1030_v52 = vpop.f32.mrb[42].mxu1  ;;  %v2694_v53 = vpop.f32.mrb[43].mxu0 }
 0x13f   : > { %v1564_v44 = vsel %vm1308_vm8, %v927_v27, %v1436_v34  ;;  %2034 = vst [vmem:[%s2576_s6 + $0x48] sm:$0xff] %v2296_v36  ;;  %v2311_v49 = vpack.c.bf16 %v1562_v43, %v1561_v37  ;;  %v933_v57 = vadd.f32 %v2671_v10, %v2563_v9  ;;  %v882_v58 = vadd.f32 %v2673_v12, %v2582_v42  ;;  %v1032_v60 = vpop.f32.mrb[43].mxu1 }
 0x140   : > { %v2312_v50 = vpack.c.bf16 %v1564_v44, %v1563_v38  ;;  %vm1337_vm9 = vcmp.gt.f32.partialorder %v878_v39, 0.0  ;;  %v1465_v51 = vmul.f32 0.2, %v878_v39  ;;  %vm1339_vm10 = vcmp.gt.f32.partialorder %v931_v45, 0.0 }
 0x141   : > { %v1467_v54 = vmul.f32 0.2, %v931_v45  ;;  %vm1338_vm11 = vcmp.gt.f32.partialorder %v880_v46, 0.0  ;;  %v1466_v55 = vmul.f32 0.2, %v880_v46  ;;  %2049 = vst [vmem:[%s2576_s6 + $0xc0] sm:$0xff] %v2311_v49  ;;  %v935_v59 = vadd.f32 %v934_v0, %v2582_v42 }
 0x142   : > { %2050 = vst [vmem:[%s2576_s6 + $0xc8] sm:$0xff] %v2312_v50  ;;  %v1593_v56 = vsel %vm1337_vm9, %v878_v39, %v1465_v51  ;;  %v884_v63 = vadd.f32 %v2676_v16, %v2582_v42  ;;  %v937_v1 = vadd.f32 %v936_v23, %v2582_v42  ;;  %vm1340_vm12 = vcmp.gt.f32.partialorder %v933_v57, 0.0 }
 0x143   : > { %v1595_v61 = vsel %vm1339_vm10, %v931_v45, %v1467_v54  ;;  %v1594_v62 = vsel %vm1338_vm11, %v880_v46, %v1466_v55  ;;  %v1468_v3 = vmul.f32 0.2, %v933_v57  ;;  %vm1369_vm13 = vcmp.gt.f32.partialorder %v882_v58, 0.0  ;;  %v2706_v4 = vpop.f32.mrb[44].mxu0  ;;  %v1036_v13 = vpop.f32.mrb[44].mxu1 }
 0x144   : > { %v2327_v2 = vpack.c.bf16 %v1594_v62, %v1593_v56  ;;  %v1497_v5 = vmul.f32 0.2, %v882_v58  ;;  %vm1371_vm14 = vcmp.gt.f32.partialorder %v935_v59, 0.0  ;;  %v1499_v6 = vmul.f32 0.2, %v935_v59  ;;  %v985_v17 = vpop.f32.mrb[45].mxu0 }
 0x145   : > { %vm1370_vm15 = vcmp.gt.f32.partialorder %v884_v63, 0.0  ;;  %v1596_v7 = vsel %vm1340_vm12, %v933_v57, %v1468_v3  ;;  %v1498_v10 = vmul.f32 0.2, %v884_v63  ;;  %vm1372_vm0 = vcmp.gt.f32.partialorder %v937_v1, 0.0  ;;  %v2710_v18 = vpop.f32.mrb[45].mxu1  ;;  %v2714_v23 = vpop.f32.mrb[46].mxu0 }
 0x146   : > { %2065 = vst [vmem:[%s2576_s6 + $0x140] sm:$0xff] %v2327_v2  ;;  %v1500_v12 = vmul.f32 0.2, %v937_v1  ;;  %v2328_v14 = vpack.c.bf16 %v1596_v7, %v1595_v61  ;;  %v1625_v15 = vsel %vm1369_vm13, %v882_v58, %v1497_v5  ;;  %v1627_v0 = vsel %vm1371_vm14, %v935_v59, %v1499_v6  ;;  %v2716_v24 = vpop.f32.mrb[46].mxu1  ;;  %v2719_v28 = vpop.f32.mrb[47].mxu0 }
 0x147   : > { %v974_v16 = vadd.f32 %v973_v35, %v2561_v8  ;;  %v1626_v19 = vsel %vm1370_vm15, %v884_v63, %v1498_v10  ;;  %v1027_v21 = vadd.f32 %v1026_v40, %v2561_v8  ;;  %v976_v22 = vadd.f32 %v975_v41, %v2561_v8  ;;  %v2721_v29 = vpop.f32.mrb[47].mxu1 }
 0x148   : > { %v1628_v20 = vsel %vm1372_vm0, %v937_v1, %v1500_v12  ;;  %2066 = vst [vmem:[%s2576_s6 + $0x148] sm:$0xff] %v2328_v14  ;;  %v2343_v25 = vpack.c.bf16 %v1626_v19, %v1625_v15  ;;  %v1029_v33 = vadd.f32 %v2689_v47, %v2561_v8  ;;  %v978_v34 = vadd.f32 %v2691_v48, %v2565_v11 }
 0x149   : > { %v2344_v26 = vpack.c.bf16 %v1628_v20, %v1627_v0  ;;  %vm1277_vm1 = vcmp.gt.f32.partialorder %v974_v16, 0.0  ;;  %v1405_v27 = vmul.f32 0.2, %v974_v16  ;;  %vm1279_vm2 = vcmp.gt.f32.partialorder %v1027_v21, 0.0 }
 0x14a   : > { %v1407_v30 = vmul.f32 0.2, %v1027_v21  ;;  %vm1278_vm3 = vcmp.gt.f32.partialorder %v976_v22, 0.0  ;;  %v1406_v31 = vmul.f32 0.2, %v976_v22  ;;  %2081 = vst [vmem:[%s2576_s6 + $0x1c0] sm:$0xff] %v2343_v25  ;;  %v1031_v35 = vadd.f32 %v1030_v52, %v2565_v11 }
 0x14b   : > { %2082 = vst [vmem:[%s2576_s6 + $0x1c8] sm:$0xff] %v2344_v26  ;;  %v1533_v32 = vsel %vm1277_vm1, %v974_v16, %v1405_v27  ;;  %v980_v38 = vadd.f32 %v2694_v53, %v2565_v11  ;;  %v1033_v39 = vadd.f32 %v1032_v60, %v2565_v11  ;;  %v2733_v40 = vpop.f32.mrb[48].mxu0  ;;  %vm1280_vm4 = vcmp.gt.f32.partialorder %v1029_v33, 0.0  ;;  %v2735_v44 = vpop.f32.mrb[48].mxu1 }
 0x14c   : > { %v1535_v36 = vsel %vm1279_vm2, %v1027_v21, %v1407_v30  ;;  %v1534_v37 = vsel %vm1278_vm3, %v976_v22, %v1406_v31  ;;  %v1408_v43 = vmul.f32 0.2, %v1029_v33  ;;  %vm1309_vm5 = vcmp.gt.f32.partialorder %v978_v34, 0.0  ;;  %v2737_v45 = vpop.f32.mrb[49].mxu0  ;;  %v2740_v51 = vpop.f32.mrb[49].mxu1 }
 0x14d   : > { %v2297_v41 = vpack.c.bf16 %v1534_v37, %v1533_v32  ;;  %v1437_v46 = vmul.f32 0.2, %v978_v34  ;;  %vm1311_vm6 = vcmp.gt.f32.partialorder %v1031_v35, 0.0  ;;  %v1439_v47 = vmul.f32 0.2, %v1031_v35  ;;  %v2744_v56 = vpop.f32.mrb[50].mxu0 }
 0x14e   : > { %vm1310_vm7 = vcmp.gt.f32.partialorder %v980_v38, 0.0  ;;  %v1536_v48 = vsel %vm1280_vm4, %v1029_v33, %v1408_v43  ;;  %v1438_v49 = vmul.f32 0.2, %v980_v38  ;;  %vm1312_vm8 = vcmp.gt.f32.partialorder %v1033_v39, 0.0  ;;  %v2746_v57 = vpop.f32.mrb[50].mxu1  ;;  %v2750_v62 = vpop.f32.mrb[51].mxu0 }
 0x14f   : > { %2035 = vst [vmem:[%s2576_s6 + $0x50] sm:$0xff] %v2297_v41  ;;  %v1440_v50 = vmul.f32 0.2, %v1033_v39  ;;  %v2298_v52 = vpack.c.bf16 %v1536_v48, %v1535_v36  ;;  %v1565_v53 = vsel %vm1309_vm5, %v978_v34, %v1437_v46  ;;  %v1567_v54 = vsel %vm1311_vm6, %v1031_v35, %v1439_v47  ;;  %v2752_v63 = vpop.f32.mrb[51].mxu1 }
 0x150   : > { %v984_v55 = vadd.f32 %v2706_v4, %v2563_v9  ;;  %v1566_v58 = vsel %vm1310_vm7, %v980_v38, %v1438_v49  ;;  %v1037_v60 = vadd.f32 %v1036_v13, %v2563_v9  ;;  %v986_v61 = vadd.f32 %v985_v17, %v2563_v9 }
 0x151   : > { %v1568_v59 = vsel %vm1312_vm8, %v1033_v39, %v1440_v50  ;;  %2036 = vst [vmem:[%s2576_s6 + $0x58] sm:$0xff] %v2298_v52  ;;  %v2313_v1 = vpack.c.bf16 %v1566_v58, %v1565_v53  ;;  %v1039_v7 = vadd.f32 %v2710_v18, %v2563_v9  ;;  %v988_v10 = vadd.f32 %v2714_v23, %v2582_v42 }
 0x152   : > { %v2314_v2 = vpack.c.bf16 %v1568_v59, %v1567_v54  ;;  %vm1341_vm9 = vcmp.gt.f32.partialorder %v984_v55, 0.0  ;;  %v1469_v3 = vmul.f32 0.2, %v984_v55  ;;  %vm1343_vm10 = vcmp.gt.f32.partialorder %v1037_v60, 0.0 }
 0x153   : > { %v1471_v4 = vmul.f32 0.2, %v1037_v60  ;;  %vm1342_vm11 = vcmp.gt.f32.partialorder %v986_v61, 0.0  ;;  %v1470_v5 = vmul.f32 0.2, %v986_v61  ;;  %2051 = vst [vmem:[%s2576_s6 + $0xd0] sm:$0xff] %v2313_v1  ;;  %v1041_v12 = vadd.f32 %v2716_v24, %v2582_v42 }
 0x154   : > { %2052 = vst [vmem:[%s2576_s6 + $0xd8] sm:$0xff] %v2314_v2  ;;  %v1597_v6 = vsel %vm1341_vm9, %v984_v55, %v1469_v3  ;;  %v2763_v13 = vpop.f32.mrb[52].mxu0  ;;  %v990_v0 = vadd.f32 %v2719_v28, %v2582_v42  ;;  %v1043_v16 = vadd.f32 %v2721_v29, %v2582_v42  ;;  %v2769_v17 = vpop.f32.mrb[52].mxu1  ;;  %vm1344_vm12 = vcmp.gt.f32.partialorder %v1039_v7, 0.0 }
 0x155   : > { %v1599_v14 = vsel %vm1343_vm10, %v1037_v60, %v1471_v4  ;;  %v1598_v15 = vsel %vm1342_vm11, %v986_v61, %v1470_v5  ;;  %v2771_v18 = vpop.f32.mrb[53].mxu0  ;;  %v1472_v20 = vmul.f32 0.2, %v1039_v7  ;;  %vm1373_vm13 = vcmp.gt.f32.partialorder %v988_v10, 0.0  ;;  %v2773_v21 = vpop.f32.mrb[53].mxu1 }
 0x156   : > { %v2329_v19 = vpack.c.bf16 %v1598_v15, %v1597_v6  ;;  %v2775_v22 = vpop.f32.mrb[54].mxu0  ;;  %v1501_v23 = vmul.f32 0.2, %v988_v10  ;;  %vm1375_vm14 = vcmp.gt.f32.partialorder %v1041_v12, 0.0  ;;  %v1503_v24 = vmul.f32 0.2, %v1041_v12 }
 0x157   : > { %vm1374_vm15 = vcmp.gt.f32.partialorder %v990_v0, 0.0  ;;  %v1600_v25 = vsel %vm1344_vm12, %v1039_v7, %v1472_v20  ;;  %v1502_v26 = vmul.f32 0.2, %v990_v0  ;;  %vm1376_vm0 = vcmp.gt.f32.partialorder %v1043_v16, 0.0  ;;  %v2778_v28 = vpop.f32.mrb[54].mxu1  ;;  %v2782_v33 = vpop.f32.mrb[55].mxu0 }
 0x158   : > { %2067 = vst [vmem:[%s2576_s6 + $0x150] sm:$0xff] %v2329_v19  ;;  %v1504_v27 = vmul.f32 0.2, %v1043_v16  ;;  %v2330_v29 = vpack.c.bf16 %v1600_v25, %v1599_v14  ;;  %v1629_v30 = vsel %vm1373_vm13, %v988_v10, %v1501_v23  ;;  %v1631_v31 = vsel %vm1375_vm14, %v1041_v12, %v1503_v24  ;;  %v2784_v34 = vpop.f32.mrb[55].mxu1 }
 0x159   : > { %v1080_v32 = vadd.f32 %v2733_v40, %v2561_v8  ;;  %v1630_v35 = vsel %vm1374_vm15, %v990_v0, %v1502_v26  ;;  %v1133_v37 = vadd.f32 %v2735_v44, %v2561_v8  ;;  %v1082_v38 = vadd.f32 %v2737_v45, %v2561_v8 }
 0x15a   : > { %v1632_v36 = vsel %vm1376_vm0, %v1043_v16, %v1504_v27  ;;  %2068 = vst [vmem:[%s2576_s6 + $0x158] sm:$0xff] %v2330_v29  ;;  %v2345_v39 = vpack.c.bf16 %v1630_v35, %v1629_v30  ;;  %v1135_v48 = vadd.f32 %v2740_v51, %v2561_v8  ;;  %v1084_v44 = vadd.f32 %v2744_v56, %v2565_v11 }
 0x15b   : > { %v2346_v41 = vpack.c.bf16 %v1632_v36, %v1631_v31  ;;  %vm1281_vm1 = vcmp.gt.f32.partialorder %v1080_v32, 0.0  ;;  %v1409_v43 = vmul.f32 0.2, %v1080_v32  ;;  %vm1283_vm2 = vcmp.gt.f32.partialorder %v1133_v37, 0.0  ;;  %v2799_v49 = vpop.f32.mrb[56].mxu0  ;;  %v2801_v50 = vpop.f32.mrb[56].mxu1 }
 0x15c   : > { %v1411_v40 = vmul.f32 0.2, %v1133_v37  ;;  %vm1282_vm3 = vcmp.gt.f32.partialorder %v1082_v38, 0.0  ;;  %v1410_v46 = vmul.f32 0.2, %v1082_v38  ;;  %2083 = vst [vmem:[%s2576_s6 + $0x1d0] sm:$0xff] %v2345_v39  ;;  %v1137_v45 = vadd.f32 %v2746_v57, %v2565_v11 }
 0x15d   : > { %2084 = vst [vmem:[%s2576_s6 + $0x1d8] sm:$0xff] %v2346_v41  ;;  %v1537_v47 = vsel %vm1281_vm1, %v1080_v32, %v1409_v43  ;;  %v1086_v54 = vadd.f32 %v2750_v62, %v2565_v11  ;;  %v1139_v55 = vadd.f32 %v2752_v63, %v2565_v11  ;;  %v2807_v51 = vpop.f32.mrb[57].mxu0  ;;  %v2809_v58 = vpop.f32.mrb[57].mxu1  ;;  %vm1284_vm4 = vcmp.gt.f32.partialorder %v1135_v48, 0.0 }
 0x15e   : > { %v1539_v52 = vsel %vm1283_vm2, %v1133_v37, %v1411_v40  ;;  %v1538_v53 = vsel %vm1282_vm3, %v1082_v38, %v1410_v46  ;;  %v1412_v57 = vmul.f32 0.2, %v1135_v48  ;;  %vm1313_vm5 = vcmp.gt.f32.partialorder %v1084_v44, 0.0  ;;  %v2811_v59 = vpop.f32.mrb[58].mxu0  ;;  %v2813_v60 = vpop.f32.mrb[58].mxu1 }
 0x15f   : > { %v2299_v56 = vpack.c.bf16 %v1538_v53, %v1537_v47  ;;  %v1441_v61 = vmul.f32 0.2, %v1084_v44  ;;  %vm1315_vm6 = vcmp.gt.f32.partialorder %v1137_v45, 0.0  ;;  %v1443_v1 = vmul.f32 0.2, %v1137_v45  ;;  %v2816_v3 = vpop.f32.mrb[59].mxu0 }
 0x160   : > { %vm1314_vm7 = vcmp.gt.f32.partialorder %v1086_v54, 0.0  ;;  %v1540_v62 = vsel %vm1284_vm4, %v1135_v48, %v1412_v57  ;;  %v1442_v63 = vmul.f32 0.2, %v1086_v54  ;;  %vm1316_vm8 = vcmp.gt.f32.partialorder %v1139_v55, 0.0  ;;  %v2820_v10 = vpop.f32.mrb[59].mxu1 }
 0x161   : > { %2037 = vst [vmem:[%s2576_s6 + $0x60] sm:$0xff] %v2299_v56  ;;  %v1444_v2 = vmul.f32 0.2, %v1139_v55  ;;  %v2300_v4 = vpack.c.bf16 %v1540_v62, %v1539_v52  ;;  %v1569_v5 = vsel %vm1313_vm5, %v1084_v44, %v1441_v61  ;;  %v1571_v6 = vsel %vm1315_vm6, %v1137_v45, %v1443_v1 }
 0x162   : > { %v1090_v7 = vadd.f32 %v2763_v13, %v2563_v9  ;;  %v1570_v12 = vsel %vm1314_vm7, %v1086_v54, %v1442_v63  ;;  %v1143_v15 = vadd.f32 %v2769_v17, %v2563_v9  ;;  %v1092_v0 = vadd.f32 %v2771_v18, %v2563_v9 }
 0x163   : > { %v1572_v14 = vsel %vm1316_vm8, %v1139_v55, %v1444_v2  ;;  %2038 = vst [vmem:[%s2576_s6 + $0x68] sm:$0xff] %v2300_v4  ;;  %v2315_v16 = vpack.c.bf16 %v1570_v12, %v1569_v5  ;;  %v2827_v23 = vpop.f32.mrb[60].mxu0  ;;  %v1145_v17 = vadd.f32 %v2773_v21, %v2563_v9  ;;  %v1094_v18 = vadd.f32 %v2775_v22, %v2582_v42  ;;  %v2837_v27 = vpop.f32.mrb[60].mxu1 }
 0x164   : > { %v2316_v19 = vpack.c.bf16 %v1572_v14, %v1571_v6  ;;  %vm1345_vm9 = vcmp.gt.f32.partialorder %v1090_v7, 0.0  ;;  %v1473_v20 = vmul.f32 0.2, %v1090_v7  ;;  %vm1347_vm10 = vcmp.gt.f32.partialorder %v1143_v15, 0.0  ;;  %v2839_v29 = vpop.f32.mrb[61].mxu0  ;;  %v2845_v21 = vpop.f32.mrb[61].mxu1 }
 0x165   : > { %v1475_v13 = vmul.f32 0.2, %v1143_v15  ;;  %vm1346_vm11 = vcmp.gt.f32.partialorder %v1092_v0, 0.0  ;;  %v1474_v24 = vmul.f32 0.2, %v1092_v0  ;;  %2053 = vst [vmem:[%s2576_s6 + $0xe0] sm:$0xff] %v2315_v16  ;;  %v1147_v26 = vadd.f32 %v2778_v28, %v2582_v42 }
 0x166   : > { %2054 = vst [vmem:[%s2576_s6 + $0xe8] sm:$0xff] %v2316_v19  ;;  %v1601_v25 = vsel %vm1345_vm9, %v1090_v7, %v1473_v20  ;;  %v1096_v32 = vadd.f32 %v2782_v33, %v2582_v42  ;;  %v1149_v35 = vadd.f32 %v2784_v34, %v2582_v42  ;;  %v2847_v36 = vpop.f32.mrb[62].mxu0  ;;  %vm1348_vm12 = vcmp.gt.f32.partialorder %v1145_v17, 0.0  ;;  %v2849_v37 = vpop.f32.mrb[62].mxu1 }
 0x167   : > { %v1603_v30 = vsel %vm1347_vm10, %v1143_v15, %v1475_v13  ;;  %v1602_v31 = vsel %vm1346_vm11, %v1092_v0, %v1474_v24  ;;  %v1476_v28 = vmul.f32 0.2, %v1145_v17  ;;  %vm1377_vm13 = vcmp.gt.f32.partialorder %v1094_v18, 0.0  ;;  %v2851_v38 = vpop.f32.mrb[63].mxu0  ;;  %v2854_v40 = vpop.f32.mrb[63].mxu1 }
 0x168   : > { %v2331_v22 = vpack.c.bf16 %v1602_v31, %v1601_v25  ;;  %v1505_v39 = vmul.f32 0.2, %v1094_v18  ;;  %vm1379_vm14 = vcmp.gt.f32.partialorder %v1147_v26, 0.0  ;;  %v1507_v41 = vmul.f32 0.2, %v1147_v26 }
 0x169   : > { %vm1378_vm15 = vcmp.gt.f32.partialorder %v1096_v32, 0.0  ;;  %v1604_v33 = vsel %vm1348_vm12, %v1145_v17, %v1476_v28  ;;  %v1506_v34 = vmul.f32 0.2, %v1096_v32  ;;  %vm1380_vm0 = vcmp.gt.f32.partialorder %v1149_v35, 0.0 }
 0x16a   : > { %2069 = vst [vmem:[%s2576_s6 + $0x160] sm:$0xff] %v2331_v22  ;;  %v1508_v43 = vmul.f32 0.2, %v1149_v35  ;;  %v2332_v46 = vpack.c.bf16 %v1604_v33, %v1603_v30  ;;  %v1633_v47 = vsel %vm1377_vm13, %v1094_v18, %v1505_v39  ;;  %v1635_v48 = vsel %vm1379_vm14, %v1147_v26, %v1507_v41 }
 0x16b   : > { %v1186_v44 = vadd.f32 %v2799_v49, %v2561_v8  ;;  %v1634_v45 = vsel %vm1378_vm15, %v1096_v32, %v1506_v34  ;;  %v1239_v53 = vadd.f32 %v2801_v50, %v2561_v8  ;;  %v1188_v54 = vadd.f32 %v2807_v51, %v2561_v8 }
 0x16c   : > { %v1636_v52 = vsel %vm1380_vm0, %v1149_v35, %v1508_v43  ;;  %2070 = vst [vmem:[%s2576_s6 + $0x168] sm:$0xff] %v2332_v46  ;;  %v2347_v55 = vpack.c.bf16 %v1634_v45, %v1633_v47  ;;  %v1241_v62 = vadd.f32 %v2809_v58, %v2561_v8  ;;  %v1190_v50 = vadd.f32 %v2811_v59, %v2565_v11 }
 0x16d   : > { %v2348_v56 = vpack.c.bf16 %v1636_v52, %v1635_v48  ;;  %vm1285_vm1 = vcmp.gt.f32.partialorder %v1186_v44, 0.0  ;;  %v1413_v57 = vmul.f32 0.2, %v1186_v44  ;;  %vm1287_vm2 = vcmp.gt.f32.partialorder %v1239_v53, 0.0 }
 0x16e   : > { %v1415_v61 = vmul.f32 0.2, %v1239_v53  ;;  %vm1286_vm3 = vcmp.gt.f32.partialorder %v1188_v54, 0.0  ;;  %v1414_v1 = vmul.f32 0.2, %v1188_v54  ;;  %2085 = vst [vmem:[%s2576_s6 + $0x1e0] sm:$0xff] %v2347_v55  ;;  %v1243_v51 = vadd.f32 %v2813_v60, %v2565_v11 }
 0x16f   : > { %2086 = vst [vmem:[%s2576_s6 + $0x1e8] sm:$0xff] %v2348_v56  ;;  %v1541_v49 = vsel %vm1285_vm1, %v1186_v44, %v1413_v57  ;;  %v1192_v4 = vadd.f32 %v2816_v3, %v2565_v11  ;;  %v1245_v5 = vadd.f32 %v2820_v10, %v2565_v11  ;;  %vm1288_vm4 = vcmp.gt.f32.partialorder %v1241_v62, 0.0 }
 0x170   : > { %v1543_v63 = vsel %vm1287_vm2, %v1239_v53, %v1415_v61  ;;  %v1542_v2 = vsel %vm1286_vm3, %v1188_v54, %v1414_v1  ;;  %v1416_v7 = vmul.f32 0.2, %v1241_v62  ;;  %vm1317_vm5 = vcmp.gt.f32.partialorder %v1190_v50, 0.0 }
 0x171   : > { %v2301_v6 = vpack.c.bf16 %v1542_v2, %v1541_v49  ;;  %v1445_v12 = vmul.f32 0.2, %v1190_v50  ;;  %vm1319_vm6 = vcmp.gt.f32.partialorder %v1243_v51, 0.0  ;;  %v1447_v8 = vmul.f32 0.2, %v1243_v51 }
 0x172   : > { %vm1318_vm7 = vcmp.gt.f32.partialorder %v1192_v4, 0.0  ;;  %v1544_v58 = vsel %vm1288_vm4, %v1241_v62, %v1416_v7  ;;  %v1446_v59 = vmul.f32 0.2, %v1192_v4  ;;  %vm1320_vm8 = vcmp.gt.f32.partialorder %v1245_v5, 0.0 }
 0x173   : > { %2039 = vst [vmem:[%s2576_s6 + $0x70] sm:$0xff] %v2301_v6  ;;  %v1448_v60 = vmul.f32 0.2, %v1245_v5  ;;  %v2302_v14 = vpack.c.bf16 %v1544_v58, %v1543_v63  ;;  %v1573_v15 = vsel %vm1317_vm5, %v1190_v50, %v1445_v12  ;;  %v1575_v3 = vsel %vm1319_vm6, %v1243_v51, %v1447_v8 }
 0x174   : > { %v1196_v11 = vadd.f32 %v2827_v23, %v2563_v9  ;;  %v1574_v10 = vsel %vm1318_vm7, %v1192_v4, %v1446_v59  ;;  %v1249_v16 = vadd.f32 %v2837_v27, %v2563_v9  ;;  %v1198_v19 = vadd.f32 %v2839_v29, %v2563_v9 }
 0x175   : > { %v1576_v0 = vsel %vm1320_vm8, %v1245_v5, %v1448_v60  ;;  %2040 = vst [vmem:[%s2576_s6 + $0x78] sm:$0xff] %v2302_v14  ;;  %v2317_v20 = vpack.c.bf16 %v1574_v10, %v1573_v15  ;;  %v1251_v18 = vadd.f32 %v2845_v21, %v2563_v9  ;;  %v1200_v26 = vadd.f32 %v2847_v36, %v2582_v42 }
 0x176   : > { %v2318_v13 = vpack.c.bf16 %v1576_v0, %v1575_v3  ;;  %vm1349_vm9 = vcmp.gt.f32.partialorder %v1196_v11, 0.0  ;;  %v1477_v24 = vmul.f32 0.2, %v1196_v11  ;;  %vm1351_vm10 = vcmp.gt.f32.partialorder %v1249_v16, 0.0 }
 0x177   : > { %v1479_v25 = vmul.f32 0.2, %v1249_v16  ;;  %vm1350_vm11 = vcmp.gt.f32.partialorder %v1198_v19, 0.0  ;;  %v1478_v17 = vmul.f32 0.2, %v1198_v19  ;;  %2055 = vst [vmem:[%s2576_s6 + $0xf0] sm:$0xff] %v2317_v20  ;;  %v1253_v27 = vadd.f32 %v2849_v37, %v2582_v42 }
 0x178   : > { %2056 = vst [vmem:[%s2576_s6 + $0xf8] sm:$0xff] %v2318_v13  ;;  %v1605_v23 = vsel %vm1349_vm9, %v1196_v11, %v1477_v24  ;;  %v1202_v31 = vadd.f32 %v2851_v38, %v2582_v42  ;;  %v1255_v32 = vadd.f32 %v2854_v40, %v2582_v42  ;;  %vm1352_vm12 = vcmp.gt.f32.partialorder %v1251_v18, 0.0 }
 0x179   : > { %v1607_v29 = vsel %vm1351_vm10, %v1249_v16, %v1479_v25  ;;  %v1606_v30 = vsel %vm1350_vm11, %v1198_v19, %v1478_v17  ;;  %v1480_v22 = vmul.f32 0.2, %v1251_v18  ;;  %vm1381_vm13 = vcmp.gt.f32.partialorder %v1200_v26, 0.0 }
 0x17a   : > { %v2333_v35 = vpack.c.bf16 %v1606_v30, %v1605_v23  ;;  %v1509_v9 = vmul.f32 0.2, %v1200_v26  ;;  %vm1383_vm14 = vcmp.gt.f32.partialorder %v1253_v27, 0.0  ;;  %v1511_v21 = vmul.f32 0.2, %v1253_v27 }
 0x17b   : > { %vm1382_vm15 = vcmp.gt.f32.partialorder %v1202_v31, 0.0  ;;  %v1608_v36 = vsel %vm1352_vm12, %v1251_v18, %v1480_v22  ;;  %v1510_v28 = vmul.f32 0.2, %v1202_v31  ;;  %vm1384_vm0 = vcmp.gt.f32.partialorder %v1255_v32, 0.0 }
 0x17c   : > { %2071 = vst [vmem:[%s2576_s6 + $0x170] sm:$0xff] %v2333_v35  ;;  %v1512_v37 = vmul.f32 0.2, %v1255_v32  ;;  %v2334_v38 = vpack.c.bf16 %v1608_v36, %v1607_v29  ;;  %v1637_v39 = vsel %vm1381_vm13, %v1200_v26, %v1509_v9  ;;  %v1639_v41 = vsel %vm1383_vm14, %v1253_v27, %v1511_v21 }
 0x17d   : > { %v1638_v42 = vsel %vm1382_vm15, %v1202_v31, %v1510_v28 }
 0x17e   : > { %v1640_v33 = vsel %vm1384_vm0, %v1255_v32, %v1512_v37  ;;  %2072 = vst [vmem:[%s2576_s6 + $0x178] sm:$0xff] %v2334_v38  ;;  %v2349_v34 = vpack.c.bf16 %v1638_v42, %v1637_v39 }
 0x17f   : > { %v2350_v43 = vpack.c.bf16 %v1640_v33, %v1639_v41 }
 0x180   : > { %2087 = vst [vmem:[%s2576_s6 + $0x1f0] sm:$0xff] %v2349_v34 }
 0x181   : > { %2088 = vst [vmem:[%s2576_s6 + $0x1f8] sm:$0xff] %v2350_v43 }
 0x182 PF: > { %s13_s12 = sadd.s32 1, %s2370_s12  }
 0x183   : > { %p10_p4 = scmp.ge.s32.totalorder %s13_s12, 4  }
 0x185   :  { %12 = sbr.rel (!%p10_p4) target bundleno = 1 (0x1), region = 62 }

// kernel: discriminator_x_forward.4
= control target key start
LH: loop header
LB: loop body
LE: loop exit
PB: predicated region body
PF: predicated region fallthrough
CT: control target
= control target key end

     0   :  { %s3592_s15 = smov 0   ;;  %s4261_s0 = inlined_call_operand.vmem [shape: bf16[2,512,1024], index: 0, kind: input, shape index: {}]   ;;  %s4262_s1 = inlined_call_operand.vmem [shape: bf16[64,512], index: 1, kind: input, shape index: {}]   ;;  %s4263_s2 = inlined_call_operand.vmem [shape: f32[64,1], index: 2, kind: input, shape index: {}]   ;;  %s4264_s3 = inlined_call_operand.vmem [shape: f32[64,1], index: 3, kind: input, shape index: {}]   ;;  %s4265_s4 = inlined_call_operand.vmem [shape: bf16[2,64,1024], index: 4, kind: output, shape index: {}]  }
   0x1 LB: > { %s3109_s16 = sadd.s32 4294967295, %s3564_s15   ;;  %p3113_p0 = scmp.ge.s32.totalorder %s3564_s15, 1  ;;  %s3564_s15 = sphi %s3592_s15, %s14_s15  }
   0x2   : > { %p162_p1 = scmp.lt.s32.totalorder %s3564_s15, 3 }
   0x4   : > { %p163_p2 = pnand %p3113_p0, %p162_p1 }
   0x5   : > { %p188_p3 = scmp.lt.s32.totalorder (!%p163_p2), %s3109_s16, 1  ;;  %v3533_v0 = vld [vmem:[%s4262_s1 + $0x4] ss:$16 sps:$4 sm:$0xff] (!%p163_p2)  }
   0x6   : > { %166 = sbr.rel (%p163_p2) target bundleno = 537 (0x219), region = 36  ;;  %1862 = vmatprep.mubr.bf16.mxu0 (!%p163_p2), %v3533_v0  ;;  %2008 = vmatprep.mubr.bf16.mxu1 (!%p163_p2), %v3533_v0 }
   0xd   : > { %s4267_s16 = smov (!%p188_p3, %s3109_s16), 1 }
   0xe   : > { %s3424_s19 = sshll.u32 %s4267_s16, 11 }
   0xf   : > { %s3609_s22 = scalar_lea.vmem %s4261_s0, %s3424_s19 }
  0x10   : > { %v214_v1 = vld [vmem:[%s3609_s22] sm:$0xff]  ;;  %v215_v3 = vld [vmem:[%s3609_s22 + $0x8] sm:$0xff] }
  0x11   : > { %v218_v2 = vld [vmem:[%s3609_s22 + $0x20] sm:$0xff]  ;;  %v219_v5 = vld [vmem:[%s3609_s22 + $0x28] sm:$0xff] }
  0x12   : > { %v3135_v4 = vcombine.high %v214_v1, %v218_v2  ;;  %v3134_v6 = vcombine.low %v214_v1, %v218_v2  ;;  %v222_v7 = vld [vmem:[%s3609_s22 + $0x40] sm:$0xff]  ;;  %v3137_v9 = vcombine.high %v215_v3, %v219_v5  ;;  %v3136_v10 = vcombine.low %v215_v3, %v219_v5  ;;  %v223_v12 = vld [vmem:[%s3609_s22 + $0x48] sm:$0xff] }
  0x13   : > { %v226_v8 = vld [vmem:[%s3609_s22 + $0x60] sm:$0xff]  ;;  %v227_v13 = vld [vmem:[%s3609_s22 + $0x68] sm:$0xff] }
  0x14   : > { %v3143_v11 = vcombine.high %v222_v7, %v226_v8  ;;  %v230_v14 = vld [vmem:[%s3609_s22 + $0x80] sm:$0xff]  ;;  %1830 = vmatprep.subr.bf16.mxu0 %v3135_v4  ;;  %v3145_v15 = vcombine.high %v223_v12, %v227_v13  ;;  %v231_v17 = vld [vmem:[%s3609_s22 + $0x88] sm:$0xff]  ;;  %1976 = vmatprep.subr.bf16.mxu1 %v3137_v9  ;;  %v3142_v19 = vcombine.low %v222_v7, %v226_v8 }
  0x15   : > { %v234_v16 = vld [vmem:[%s3609_s22 + $0xa0] sm:$0xff]  ;;  %v235_v18 = vld [vmem:[%s3609_s22 + $0xa8] sm:$0xff]  ;;  %1831 = vmatpush1.bf16.msra.mxu0 %v3134_v6  ;;  %1977 = vmatpush1.bf16.msra.mxu1 %v3136_v10  ;;  %v3144_v20 = vcombine.low %v223_v12, %v227_v13 }
  0x16   : > { %1832 = vmatprep.subr.bf16.mxu0 %v3143_v11  ;;  %v3151_v21 = vcombine.high %v230_v14, %v234_v16  ;;  %1978 = vmatprep.subr.bf16.mxu1 %v3145_v15  ;;  %v3153_v22 = vcombine.high %v231_v17, %v235_v18  ;;  %v238_v23 = vld [vmem:[%s3609_s22 + $0xc0] sm:$0xff]  ;;  %v239_v25 = vld [vmem:[%s3609_s22 + $0xc8] sm:$0xff]  ;;  %v3150_v27 = vcombine.low %v230_v14, %v234_v16 }
  0x17   : > { %v242_v24 = vld [vmem:[%s3609_s22 + $0xe0] sm:$0xff]  ;;  %v243_v26 = vld [vmem:[%s3609_s22 + $0xe8] sm:$0xff]  ;;  %v3152_v28 = vcombine.low %v231_v17, %v235_v18 }
  0x18   : > { %v3159_v29 = vcombine.high %v238_v23, %v242_v24  ;;  %v3161_v30 = vcombine.high %v239_v25, %v243_v26  ;;  %v246_v31 = vld [vmem:[%s3609_s22 + $0x100] sm:$0xff]  ;;  %v247_v33 = vld [vmem:[%s3609_s22 + $0x108] sm:$0xff]  ;;  %v3158_v35 = vcombine.low %v238_v23, %v242_v24  ;;  %v3160_v36 = vcombine.low %v239_v25, %v243_v26 }
  0x19   : > { %1833 = vmatpush1.bf16.msra.mxu0 %v3142_v19  ;;  %1979 = vmatpush1.bf16.msra.mxu1 %v3144_v20  ;;  %v250_v32 = vld [vmem:[%s3609_s22 + $0x120] sm:$0xff]  ;;  %v251_v34 = vld [vmem:[%s3609_s22 + $0x128] sm:$0xff] }
  0x1a   : > { %1834 = vmatprep.subr.bf16.mxu0 %v3151_v21  ;;  %1980 = vmatprep.subr.bf16.mxu1 %v3153_v22  ;;  %v3167_v37 = vcombine.high %v246_v31, %v250_v32  ;;  %v3169_v38 = vcombine.high %v247_v33, %v251_v34  ;;  %v254_v39 = vld [vmem:[%s3609_s22 + $0x140] sm:$0xff]  ;;  %v255_v41 = vld [vmem:[%s3609_s22 + $0x148] sm:$0xff]  ;;  %v3166_v43 = vcombine.low %v246_v31, %v250_v32 }
  0x1b   : > { %v258_v40 = vld [vmem:[%s3609_s22 + $0x160] sm:$0xff]  ;;  %v259_v42 = vld [vmem:[%s3609_s22 + $0x168] sm:$0xff]  ;;  %v3168_v44 = vcombine.low %v247_v33, %v251_v34 }
  0x1c   : > { %v3175_v45 = vcombine.high %v254_v39, %v258_v40  ;;  %v3177_v46 = vcombine.high %v255_v41, %v259_v42  ;;  %v262_v47 = vld [vmem:[%s3609_s22 + $0x180] sm:$0xff]  ;;  %v263_v49 = vld [vmem:[%s3609_s22 + $0x188] sm:$0xff]  ;;  %v3174_v51 = vcombine.low %v254_v39, %v258_v40  ;;  %v3176_v52 = vcombine.low %v255_v41, %v259_v42 }
  0x1d   : > { %1835 = vmatpush1.bf16.msra.mxu0 %v3150_v27  ;;  %1981 = vmatpush1.bf16.msra.mxu1 %v3152_v28  ;;  %v266_v48 = vld [vmem:[%s3609_s22 + $0x1a0] sm:$0xff]  ;;  %v267_v50 = vld [vmem:[%s3609_s22 + $0x1a8] sm:$0xff] }
  0x1e   : > { %1836 = vmatprep.subr.bf16.mxu0 %v3159_v29  ;;  %1982 = vmatprep.subr.bf16.mxu1 %v3161_v30  ;;  %v3183_v53 = vcombine.high %v262_v47, %v266_v48  ;;  %v3185_v54 = vcombine.high %v263_v49, %v267_v50  ;;  %v270_v55 = vld [vmem:[%s3609_s22 + $0x1c0] sm:$0xff]  ;;  %v271_v57 = vld [vmem:[%s3609_s22 + $0x1c8] sm:$0xff]  ;;  %v3182_v59 = vcombine.low %v262_v47, %v266_v48 }
  0x1f   : > { %v274_v56 = vld [vmem:[%s3609_s22 + $0x1e0] sm:$0xff]  ;;  %v275_v58 = vld [vmem:[%s3609_s22 + $0x1e8] sm:$0xff]  ;;  %v3184_v60 = vcombine.low %v263_v49, %v267_v50 }
  0x20   : > { %v3191_v61 = vcombine.high %v270_v55, %v274_v56  ;;  %v3193_v62 = vcombine.high %v271_v57, %v275_v58  ;;  %v278_v63 = vld [vmem:[%s3609_s22 + $0x200] sm:$0xff]  ;;  %v279_v1 = vld [vmem:[%s3609_s22 + $0x208] sm:$0xff]  ;;  %v3190_v3 = vcombine.low %v270_v55, %v274_v56  ;;  %v3192_v4 = vcombine.low %v271_v57, %v275_v58 }
  0x21   : > { %1837 = vmatpush1.bf16.msra.mxu0 %v3158_v35  ;;  %1983 = vmatpush1.bf16.msra.mxu1 %v3160_v36  ;;  %v282_v0 = vld [vmem:[%s3609_s22 + $0x220] sm:$0xff]  ;;  %v283_v2 = vld [vmem:[%s3609_s22 + $0x228] sm:$0xff] }
  0x22   : > { %1838 = vmatprep.subr.bf16.mxu0 %v3167_v37  ;;  %1984 = vmatprep.subr.bf16.mxu1 %v3169_v38  ;;  %v3199_v5 = vcombine.high %v278_v63, %v282_v0  ;;  %v3201_v6 = vcombine.high %v279_v1, %v283_v2  ;;  %v286_v7 = vld [vmem:[%s3609_s22 + $0x240] sm:$0xff]  ;;  %v287_v9 = vld [vmem:[%s3609_s22 + $0x248] sm:$0xff]  ;;  %v3198_v11 = vcombine.low %v278_v63, %v282_v0 }
  0x23   : > { %v290_v8 = vld [vmem:[%s3609_s22 + $0x260] sm:$0xff]  ;;  %v291_v10 = vld [vmem:[%s3609_s22 + $0x268] sm:$0xff]  ;;  %v3200_v12 = vcombine.low %v279_v1, %v283_v2 }
  0x24   : > { %v3207_v13 = vcombine.high %v286_v7, %v290_v8  ;;  %v3209_v14 = vcombine.high %v287_v9, %v291_v10  ;;  %v294_v15 = vld [vmem:[%s3609_s22 + $0x280] sm:$0xff]  ;;  %v295_v17 = vld [vmem:[%s3609_s22 + $0x288] sm:$0xff]  ;;  %v3206_v19 = vcombine.low %v286_v7, %v290_v8  ;;  %v3208_v20 = vcombine.low %v287_v9, %v291_v10 }
  0x25   : > { %1839 = vmatpush1.bf16.msra.mxu0 %v3166_v43  ;;  %1985 = vmatpush1.bf16.msra.mxu1 %v3168_v44  ;;  %v298_v16 = vld [vmem:[%s3609_s22 + $0x2a0] sm:$0xff]  ;;  %v299_v18 = vld [vmem:[%s3609_s22 + $0x2a8] sm:$0xff] }
  0x26   : > { %1840 = vmatprep.subr.bf16.mxu0 %v3175_v45  ;;  %1986 = vmatprep.subr.bf16.mxu1 %v3177_v46  ;;  %v3215_v21 = vcombine.high %v294_v15, %v298_v16  ;;  %v3217_v22 = vcombine.high %v295_v17, %v299_v18  ;;  %v302_v23 = vld [vmem:[%s3609_s22 + $0x2c0] sm:$0xff]  ;;  %v303_v25 = vld [vmem:[%s3609_s22 + $0x2c8] sm:$0xff]  ;;  %v3214_v27 = vcombine.low %v294_v15, %v298_v16 }
  0x27   : > { %v306_v24 = vld [vmem:[%s3609_s22 + $0x2e0] sm:$0xff]  ;;  %v307_v26 = vld [vmem:[%s3609_s22 + $0x2e8] sm:$0xff]  ;;  %v3216_v28 = vcombine.low %v295_v17, %v299_v18 }
  0x28   : > { %v3223_v29 = vcombine.high %v302_v23, %v306_v24  ;;  %v3225_v30 = vcombine.high %v303_v25, %v307_v26  ;;  %v310_v31 = vld [vmem:[%s3609_s22 + $0x300] sm:$0xff]  ;;  %v311_v33 = vld [vmem:[%s3609_s22 + $0x308] sm:$0xff]  ;;  %v3222_v35 = vcombine.low %v302_v23, %v306_v24  ;;  %v3224_v36 = vcombine.low %v303_v25, %v307_v26 }
  0x29   : > { %1841 = vmatpush1.bf16.msra.mxu0 %v3174_v51  ;;  %1987 = vmatpush1.bf16.msra.mxu1 %v3176_v52  ;;  %v314_v32 = vld [vmem:[%s3609_s22 + $0x320] sm:$0xff]  ;;  %v315_v34 = vld [vmem:[%s3609_s22 + $0x328] sm:$0xff] }
  0x2a   : > { %1842 = vmatprep.subr.bf16.mxu0 %v3183_v53  ;;  %1988 = vmatprep.subr.bf16.mxu1 %v3185_v54  ;;  %v3231_v37 = vcombine.high %v310_v31, %v314_v32  ;;  %v318_v38 = vld [vmem:[%s3609_s22 + $0x340] sm:$0xff]  ;;  %v3233_v39 = vcombine.high %v311_v33, %v315_v34  ;;  %v319_v41 = vld [vmem:[%s3609_s22 + $0x348] sm:$0xff]  ;;  %v3230_v43 = vcombine.low %v310_v31, %v314_v32 }
  0x2b   : > { %v322_v40 = vld [vmem:[%s3609_s22 + $0x360] sm:$0xff]  ;;  %v323_v42 = vld [vmem:[%s3609_s22 + $0x368] sm:$0xff]  ;;  %v3232_v44 = vcombine.low %v311_v33, %v315_v34 }
  0x2c   : > { %v3239_v45 = vcombine.high %v318_v38, %v322_v40  ;;  %v326_v46 = vld [vmem:[%s3609_s22 + $0x380] sm:$0xff]  ;;  %v3241_v47 = vcombine.high %v319_v41, %v323_v42  ;;  %v327_v49 = vld [vmem:[%s3609_s22 + $0x388] sm:$0xff]  ;;  %v3238_v51 = vcombine.low %v318_v38, %v322_v40  ;;  %v3240_v52 = vcombine.low %v319_v41, %v323_v42 }
  0x2d   : > { %1843 = vmatpush1.bf16.msra.mxu0 %v3182_v59  ;;  %1989 = vmatpush1.bf16.msra.mxu1 %v3184_v60  ;;  %v330_v48 = vld [vmem:[%s3609_s22 + $0x3a0] sm:$0xff]  ;;  %v331_v50 = vld [vmem:[%s3609_s22 + $0x3a8] sm:$0xff] }
  0x2e   : > { %1844 = vmatprep.subr.bf16.mxu0 %v3191_v61  ;;  %1990 = vmatprep.subr.bf16.mxu1 %v3193_v62  ;;  %v3247_v53 = vcombine.high %v326_v46, %v330_v48  ;;  %v334_v54 = vld [vmem:[%s3609_s22 + $0x3c0] sm:$0xff]  ;;  %v3249_v55 = vcombine.high %v327_v49, %v331_v50  ;;  %v335_v57 = vld [vmem:[%s3609_s22 + $0x3c8] sm:$0xff]  ;;  %v3246_v59 = vcombine.low %v326_v46, %v330_v48  ;;  %v2417_v46 = vld [vmem:[%s4263_s2 + $0x18] sm:$0xff] }
  0x2f   : > { %v338_v56 = vld [vmem:[%s3609_s22 + $0x3e0] sm:$0xff]  ;;  %v339_v58 = vld [vmem:[%s3609_s22 + $0x3e8] sm:$0xff]  ;;  %v3248_v60 = vcombine.low %v327_v49, %v331_v50 }
  0x30   : > { %v3255_v61 = vcombine.high %v334_v54, %v338_v56  ;;  %v3257_v62 = vcombine.high %v335_v57, %v339_v58  ;;  %v342_v63 = vld [vmem:[%s3609_s22 + $0x400] sm:$0xff]  ;;  %v343_v1 = vld [vmem:[%s3609_s22 + $0x408] sm:$0xff] }
  0x31   : > { %1845 = vmatpush1.bf16.msra.mxu0 %v3190_v3  ;;  %1991 = vmatpush1.bf16.msra.mxu1 %v3192_v4  ;;  %v346_v0 = vld [vmem:[%s3609_s22 + $0x420] sm:$0xff]  ;;  %v347_v2 = vld [vmem:[%s3609_s22 + $0x428] sm:$0xff]  ;;  %v3254_v3 = vcombine.low %v334_v54, %v338_v56  ;;  %v3256_v4 = vcombine.low %v335_v57, %v339_v58 }
  0x32   : > { %1846 = vmatprep.subr.bf16.mxu0 %v3199_v5  ;;  %1992 = vmatprep.subr.bf16.mxu1 %v3201_v6  ;;  %v3263_v5 = vcombine.high %v342_v63, %v346_v0  ;;  %v3265_v6 = vcombine.high %v343_v1, %v347_v2  ;;  %v350_v7 = vld [vmem:[%s3609_s22 + $0x440] sm:$0xff]  ;;  %v351_v10 = vld [vmem:[%s3609_s22 + $0x448] sm:$0xff] }
  0x33   : > { %v354_v8 = vld [vmem:[%s3609_s22 + $0x460] sm:$0xff]  ;;  %v375_v40 = vld [vmem:[%s3609_s22 + $0x508] sm:$0xff] }
  0x34   : > { %v3684_v9 = vld [vmem:[%s4262_s1] ss:$16 sps:$4 sm:$0xff]   ;;  %v3693_v18 = vld [vmem:[%s4262_s1 + $0x24] ss:$16 sps:$4 sm:$0xff]   ;;  %v379_v41 = vld [vmem:[%s3609_s22 + $0x528] sm:$0xff] }
  0x35   : > { %1847 = vmatpush1.bf16.msra.mxu0 %v3198_v11  ;;  %1993 = vmatpush1.bf16.msra.mxu1 %v3200_v12  ;;  %v355_v11 = vld [vmem:[%s3609_s22 + $0x468] sm:$0xff]  ;;  %v3262_v12 = vcombine.low %v342_v63, %v346_v0  ;;  %v358_v16 = vld [vmem:[%s3609_s22 + $0x480] sm:$0xff]  ;;  %v3296_v54 = vcombine.low %v375_v40, %v379_v41 }
  0x36   : > { %1848 = vmatprep.subr.bf16.mxu0 %v3207_v13  ;;  %1994 = vmatprep.subr.bf16.mxu1 %v3209_v14  ;;  %v3264_v13 = vcombine.low %v343_v1, %v347_v2  ;;  %v3271_v14 = vcombine.high %v350_v7, %v354_v8  ;;  %v3273_v15 = vcombine.high %v351_v10, %v355_v11  ;;  %v362_v17 = vld [vmem:[%s3609_s22 + $0x4a0] sm:$0xff]  ;;  %v383_v50 = vld [vmem:[%s3609_s22 + $0x548] sm:$0xff] }
  0x37   : > { %v3279_v23 = vcombine.high %v358_v16, %v362_v17  ;;  %v366_v25 = vld [vmem:[%s3609_s22 + $0x4c0] sm:$0xff]  ;;  %v3278_v31 = vcombine.low %v358_v16, %v362_v17  ;;  %v2419_v0 = vld [vmem:[%s4263_s2 + $0x28] sm:$0xff] }
  0x38   : > { %v370_v26 = vld [vmem:[%s3609_s22 + $0x4e0] sm:$0xff] }
  0x39   : > { %1849 = vmatpush1.bf16.msra.mxu0 %v3206_v19  ;;  %1995 = vmatpush1.bf16.msra.mxu1 %v3208_v20  ;;  %v359_v19 = vld [vmem:[%s3609_s22 + $0x488] sm:$0xff]  ;;  %v3287_v33 = vcombine.high %v366_v25, %v370_v26  ;;  %v2414_v34 = vld [vmem:[%s4263_s2] sm:$0xff]  ;;  %v3286_v42 = vcombine.low %v366_v25, %v370_v26 }
  0x3a   : > { %1850 = vmatprep.subr.bf16.mxu0 %v3215_v21  ;;  %1996 = vmatprep.subr.bf16.mxu1 %v3217_v22  ;;  %v363_v20 = vld [vmem:[%s3609_s22 + $0x4a8] sm:$0xff]  ;;  %v3270_v21 = vcombine.low %v350_v7, %v354_v8  ;;  %v3272_v22 = vcombine.low %v351_v10, %v355_v11  ;;  %v378_v38 = vld [vmem:[%s3609_s22 + $0x520] sm:$0xff] }
  0x3b   : > { %v3281_v24 = vcombine.high %v359_v19, %v363_v20  ;;  %v3280_v32 = vcombine.low %v359_v19, %v363_v20  ;;  %v382_v48 = vld [vmem:[%s3609_s22 + $0x540] sm:$0xff]  ;;  %v399_v7 = vld [vmem:[%s3609_s22 + $0x5c8] sm:$0xff] }
  0x3c   : > { %v386_v49 = vld [vmem:[%s3609_s22 + $0x560] sm:$0xff]  ;;  %v403_v8 = vld [vmem:[%s3609_s22 + $0x5e8] sm:$0xff] }
  0x3d   : > { %1851 = vmatpush1.bf16.msra.mxu0 %v3214_v27  ;;  %1997 = vmatpush1.bf16.msra.mxu1 %v3216_v28  ;;  %v367_v27 = vld [vmem:[%s3609_s22 + $0x4c8] sm:$0xff]  ;;  %v2418_v56 = vld [vmem:[%s4263_s2 + $0x20] sm:$0xff]  ;;  %v3302_v63 = vcombine.low %v382_v48, %v386_v49 }
  0x3e   : > { %1852 = vmatprep.subr.bf16.mxu0 %v3223_v29  ;;  %1998 = vmatprep.subr.bf16.mxu1 %v3225_v30  ;;  %v371_v28 = vld [vmem:[%s3609_s22 + $0x4e8] sm:$0xff]  ;;  %v3708_v29 = vld [vmem:[%s4262_s1 + $0x20] ss:$16 sps:$4 sm:$0xff]   ;;  %v3566_v30 = vmov 0  }
  0x3f   : > { %3531 = vset.pattern.permute.xlu0 %v3566_v30  ;;  %3532 = vset.pattern.permute.xlu1 %v3566_v30  ;;  %v390_v58 = vld [vmem:[%s3609_s22 + $0x580] sm:$0xff]  ;;  %v3783_v19 = vld [vmem:[%s4262_s1 + $0xc] ss:$16 sps:$4 sm:$0xff]  }
  0x40   : > { %2424 = vperm.xlu0 %3531, %v2414_v34   ;;  %v3773_v10 = vld [vmem:[%s4262_s1 + $0x60] ss:$16 sps:$4 sm:$0xff]   ;;  %v407_v20 = vld [vmem:[%s3609_s22 + $0x608] sm:$0xff] }
  0x41   : > { %1853 = vmatpush1.bf16.msra.mxu0 %v3222_v35  ;;  %1999 = vmatpush1.bf16.msra.mxu1 %v3224_v36  ;;  %v2416_v35 = vld [vmem:[%s4263_s2 + $0x10] sm:$0xff]  ;;  %v3289_v36 = vcombine.high %v367_v27, %v371_v28  ;;  %v406_v16 = vld [vmem:[%s3609_s22 + $0x600] sm:$0xff]  ;;  %v2527_v26 = vld [vmem:[%s4264_s3 + $0x8] sm:$0xff] }
  0x42   : > { %1854 = vmatprep.subr.bf16.mxu0 %v3231_v37  ;;  %2000 = vmatprep.subr.bf16.mxu1 %v3233_v39  ;;  %v374_v37 = vld [vmem:[%s3609_s22 + $0x500] sm:$0xff] }
  0x43   : > { %v3721_v39 = vld [vmem:[%s4262_s1 + $0x44] ss:$16 sps:$4 sm:$0xff]   ;;  %2434 = vperm.xlu1 %3532, %v2416_v35  }
  0x44   : > { %v410_v17 = vld [vmem:[%s3609_s22 + $0x620] sm:$0xff] }
  0x45   : > { %1855 = vmatpush1.bf16.msra.mxu0 %v3230_v43  ;;  %2001 = vmatpush1.bf16.msra.mxu1 %v3232_v44  ;;  %v3288_v43 = vcombine.low %v367_v27, %v371_v28  ;;  %v3295_v44 = vcombine.high %v374_v37, %v378_v38  ;;  %v3327_v25 = vcombine.high %v406_v16, %v410_v17  ;;  %v414_v28 = vld [vmem:[%s3609_s22 + $0x640] sm:$0xff] }
  0x46   : > { %1856 = vmatprep.subr.bf16.mxu0 %v3239_v45  ;;  %2002 = vmatprep.subr.bf16.mxu1 %v3241_v47  ;;  %v2415_v45 = vld [vmem:[%s4263_s2 + $0x8] sm:$0xff]  ;;  %v3297_v47 = vcombine.high %v375_v40, %v379_v41  ;;  %v418_v30 = vld [vmem:[%s3609_s22 + $0x660] sm:$0xff] }
  0x47   : > { %2429 = vperm.xlu0 %3531, %v2415_v45   ;;  %2439 = vperm.xlu1 %3532, %v2417_v46   ;;  %v3335_v35 = vcombine.high %v414_v28, %v418_v30  ;;  %v422_v40 = vld [vmem:[%s3609_s22 + $0x680] sm:$0xff] }
  0x48   : > { %v426_v41 = vld [vmem:[%s3609_s22 + $0x6a0] sm:$0xff] }
  0x49   : > { %1857 = vmatpush1.bf16.msra.mxu0 %v3238_v51  ;;  %2003 = vmatpush1.bf16.msra.mxu1 %v3240_v52  ;;  %v387_v51 = vld [vmem:[%s3609_s22 + $0x568] sm:$0xff]  ;;  %v3742_v52 = vld [vmem:[%s4262_s1 + $0x40] ss:$16 sps:$4 sm:$0xff]   ;;  %v3343_v46 = vcombine.high %v422_v40, %v426_v41 }
  0x4a   : > { %1858 = vmatprep.subr.bf16.mxu0 %v3247_v53  ;;  %2004 = vmatprep.subr.bf16.mxu1 %v3249_v55  ;;  %v3294_v53 = vcombine.low %v374_v37, %v378_v38  ;;  %v3303_v55 = vcombine.high %v382_v48, %v386_v49  ;;  %v3305_v57 = vcombine.high %v383_v50, %v387_v51  ;;  %v2529_v37 = vld [vmem:[%s4264_s3 + $0x18] sm:$0xff]  ;;  %v430_v48 = vld [vmem:[%s3609_s22 + $0x6c0] sm:$0xff] }
  0x4b   : > { %2444 = vperm.xlu0 %3531, %v2418_v56   ;;  %v3304_v1 = vcombine.low %v383_v50, %v387_v51  ;;  %2449 = vperm.xlu1 %3532, %v2419_v0   ;;  %v434_v49 = vld [vmem:[%s3609_s22 + $0x6e0] sm:$0xff]  ;;  %v431_v50 = vld [vmem:[%s3609_s22 + $0x6c8] sm:$0xff] }
  0x4c   : > { %v435_v51 = vld [vmem:[%s3609_s22 + $0x6e8] sm:$0xff]  ;;  %v2530_v56 = vld [vmem:[%s4264_s3 + $0x20] sm:$0xff]  ;;  %v3350_v0 = vcombine.low %v430_v48, %v434_v49 }
  0x4d   : > { %1859 = vmatpush1.bf16.msra.mxu0 %v3246_v59  ;;  %2005 = vmatpush1.bf16.msra.mxu1 %v3248_v60  ;;  %v394_v59 = vld [vmem:[%s3609_s22 + $0x5a0] sm:$0xff] }
  0x4e   : > { %1860 = vmatprep.subr.bf16.mxu0 %v3255_v61  ;;  %2006 = vmatprep.subr.bf16.mxu1 %v3257_v62  ;;  %v3752_v60 = vld [vmem:[%s4262_s1 + $0x64] ss:$16 sps:$4 sm:$0xff]   ;;  %v391_v61 = vld [vmem:[%s3609_s22 + $0x588] sm:$0xff]  ;;  %v3311_v2 = vcombine.high %v390_v58, %v394_v59  ;;  %v3310_v11 = vcombine.low %v390_v58, %v394_v59  ;;  %v3353_v58 = vcombine.high %v431_v50, %v435_v51 }
  0x4f   : > { %v395_v62 = vld [vmem:[%s3609_s22 + $0x5a8] sm:$0xff]  ;;  %v438_v59 = vld [vmem:[%s3609_s22 + $0x700] sm:$0xff] }
  0x51   : > { %1861 = vmatpush1.bf16.msra.mxu0 %v3254_v3  ;;  %2007 = vmatpush1.bf16.msra.mxu1 %v3256_v4  ;;  %v2420_v3 = vld [vmem:[%s4263_s2 + $0x30] sm:$0xff]  ;;  %v3313_v4 = vcombine.high %v391_v61, %v395_v62 }
  0x52   : > { %1903 = vmatprep.subr.bf16.mxu0 %v3263_v5  ;;  %2049 = vmatprep.subr.bf16.mxu1 %v3265_v6  ;;  %v398_v5 = vld [vmem:[%s3609_s22 + $0x5c0] sm:$0xff] }
  0x53   : > { %v402_v6 = vld [vmem:[%s3609_s22 + $0x5e0] sm:$0xff]  ;;  %2454 = vperm.xlu0 %3531, %v2420_v3  }
  0x54   : > { %1863 = vmatmul.mubr.bf16.vlgmr.msra.gmra.mrb[0].mxu0 %v3684_v9  ;;  %2009 = vmatmul.mubr.bf16.vlgmr.msra.gmra.mrb[0].mxu1 %v3684_v9 }
  0x55   : > { %1904 = vmatpush1.bf16.msra.mxu0 %v3262_v12  ;;  %2050 = vmatpush1.bf16.msra.mxu1 %v3264_v13  ;;  %v2421_v12 = vld [vmem:[%s4263_s2 + $0x38] sm:$0xff]  ;;  %v3312_v13 = vcombine.low %v391_v61, %v395_v62  ;;  %v442_v61 = vld [vmem:[%s3609_s22 + $0x720] sm:$0xff]  ;;  %v439_v62 = vld [vmem:[%s3609_s22 + $0x708] sm:$0xff] }
  0x56   : > { %1905 = vmatprep.subr.bf16.mxu0 %v3271_v14  ;;  %2051 = vmatprep.subr.bf16.mxu1 %v3273_v15  ;;  %v3319_v14 = vcombine.high %v398_v5, %v402_v6  ;;  %v3321_v15 = vcombine.high %v399_v7, %v403_v8 }
  0x57   : > { %1872 = vmatprep.mubr.bf16.mxu0 %v3693_v18  ;;  %2018 = vmatprep.mubr.bf16.mxu1 %v3693_v18 }
  0x58   : > { %2459 = vperm.xlu1 %3532, %v2421_v12  }
  0x59   : > { %1906 = vmatpush1.bf16.msra.mxu0 %v3270_v21  ;;  %2052 = vmatpush1.bf16.msra.mxu1 %v3272_v22  ;;  %v411_v21 = vld [vmem:[%s3609_s22 + $0x628] sm:$0xff]  ;;  %v3318_v22 = vcombine.low %v398_v5, %v402_v6  ;;  %v450_v5 = vld [vmem:[%s3609_s22 + $0x760] sm:$0xff] }
  0x5a   : > { %1907 = vmatprep.subr.bf16.mxu0 %v3279_v23  ;;  %2053 = vmatprep.subr.bf16.mxu1 %v3281_v24  ;;  %v2526_v23 = vld [vmem:[%s4264_s3] sm:$0xff]  ;;  %v3320_v24 = vcombine.low %v399_v7, %v403_v8  ;;  %v3329_v27 = vcombine.high %v407_v20, %v411_v21  ;;  %v3328_v34 = vcombine.low %v407_v20, %v411_v21  ;;  %v447_v6 = vld [vmem:[%s3609_s22 + $0x748] sm:$0xff] }
  0x5b   : > { %2536 = vperm.xlu0 %3531, %v2526_v23   ;;  %v451_v7 = vld [vmem:[%s3609_s22 + $0x768] sm:$0xff]  ;;  %v3358_v8 = vcombine.low %v438_v59, %v442_v61 }
  0x5c   : > { %1873 = vmatmul.mubr.bf16.gmra.mrb[4].mxu0 %v3708_v29  ;;  %2019 = vmatmul.mubr.bf16.gmra.mrb[4].mxu1 %v3708_v29  ;;  %v455_v20 = vld [vmem:[%s3609_s22 + $0x788] sm:$0xff]  ;;  %v3368_v23 = vcombine.low %v447_v6, %v451_v7 }
  0x5d   : > { %1908 = vmatpush1.bf16.msra.mxu0 %v3278_v31  ;;  %2054 = vmatpush1.bf16.msra.mxu1 %v3280_v32  ;;  %v415_v31 = vld [vmem:[%s3609_s22 + $0x648] sm:$0xff] }
  0x5e   : > { %1909 = vmatprep.subr.bf16.mxu0 %v3287_v33  ;;  %2055 = vmatprep.subr.bf16.mxu1 %v3289_v36  ;;  %v419_v32 = vld [vmem:[%s3609_s22 + $0x668] sm:$0xff]  ;;  %v3326_v33 = vcombine.low %v406_v16, %v410_v17  ;;  %v2528_v36 = vld [vmem:[%s4264_s3 + $0x10] sm:$0xff]  ;;  %v454_v16 = vld [vmem:[%s3609_s22 + $0x780] sm:$0xff] }
  0x5f   : > { %1882 = vmatprep.mubr.bf16.mxu0 %v3721_v39  ;;  %2028 = vmatprep.mubr.bf16.mxu1 %v3721_v39  ;;  %v3337_v38 = vcombine.high %v415_v31, %v419_v32  ;;  %v3336_v45 = vcombine.low %v415_v31, %v419_v32  ;;  %v458_v17 = vld [vmem:[%s3609_s22 + $0x7a0] sm:$0xff]  ;;  %v459_v21 = vld [vmem:[%s3609_s22 + $0x7a8] sm:$0xff] }
  0x60   : > { %2541 = vperm.xlu1 %3532, %v2527_v26   ;;  %2546 = vperm.xlu0 %3531, %v2528_v36   ;;  %v462_v26 = vld [vmem:[%s3609_s22 + $0x7c0] sm:$0xff]  ;;  %v3374_v31 = vcombine.low %v454_v16, %v458_v17  ;;  %v3376_v32 = vcombine.low %v455_v20, %v459_v21  ;;  %v220_v36 = vld [vmem:[%s3609_s22 + $0x30] sm:$0xff] }
  0x61   : > { %1910 = vmatpush1.bf16.msra.mxu0 %v3286_v42  ;;  %2056 = vmatpush1.bf16.msra.mxu1 %v3288_v43  ;;  %v423_v42 = vld [vmem:[%s3609_s22 + $0x688] sm:$0xff] }
  0x62   : > { %1911 = vmatprep.subr.bf16.mxu0 %v3295_v44  ;;  %2057 = vmatprep.subr.bf16.mxu1 %v3297_v47  ;;  %v427_v43 = vld [vmem:[%s3609_s22 + $0x6a8] sm:$0xff]  ;;  %v3334_v44 = vcombine.low %v414_v28, %v418_v30 }
  0x63   : > { %v3345_v47 = vcombine.high %v423_v42, %v427_v43  ;;  %v463_v28 = vld [vmem:[%s3609_s22 + $0x7c8] sm:$0xff] }
  0x64   : > { %1883 = vmatmul.mubr.bf16.gmra.mrb[8].mxu0 %v3742_v52  ;;  %2029 = vmatmul.mubr.bf16.gmra.mrb[8].mxu1 %v3742_v52  ;;  %v467_v30 = vld [vmem:[%s3609_s22 + $0x7e8] sm:$0xff] }
  0x65   : > { %1912 = vmatpush1.bf16.msra.mxu0 %v3294_v53  ;;  %2058 = vmatpush1.bf16.msra.mxu1 %v3296_v54  ;;  %v3342_v53 = vcombine.low %v422_v40, %v426_v41  ;;  %v3344_v54 = vcombine.low %v423_v42, %v427_v43  ;;  %v3384_v41 = vcombine.low %v463_v28, %v467_v30 }
  0x66   : > { %1913 = vmatprep.subr.bf16.mxu0 %v3303_v55  ;;  %2059 = vmatprep.subr.bf16.mxu1 %v3305_v57  ;;  %v3351_v55 = vcombine.high %v430_v48, %v434_v49  ;;  %v2531_v57 = vld [vmem:[%s4264_s3 + $0x28] sm:$0xff]  ;;  %v229_v48 = vld [vmem:[%s3609_s22 + $0x78] sm:$0xff] }
  0x67   : > { %1892 = vmatprep.mubr.bf16.mxu0 %v3752_v60  ;;  %2038 = vmatprep.mubr.bf16.mxu1 %v3752_v60 }
  0x68   : > { %2551 = vperm.xlu1 %3532, %v2529_v37   ;;  %2556 = vperm.xlu0 %3531, %v2530_v56   ;;  %v217_v37 = vld [vmem:[%s3609_s22 + $0x18] sm:$0xff]  ;;  %v236_v56 = vld [vmem:[%s3609_s22 + $0xb0] sm:$0xff] }
  0x69   : > { %1914 = vmatpush1.bf16.msra.mxu0 %v3302_v63  ;;  %2060 = vmatpush1.bf16.msra.mxu1 %v3304_v1  ;;  %v443_v63 = vld [vmem:[%s3609_s22 + $0x728] sm:$0xff]  ;;  %v3352_v1 = vcombine.low %v431_v50, %v435_v51 }
  0x6a   : > { %1915 = vmatprep.subr.bf16.mxu0 %v3311_v2  ;;  %2061 = vmatprep.subr.bf16.mxu1 %v3313_v4  ;;  %v3359_v2 = vcombine.high %v438_v59, %v442_v61  ;;  %v3361_v3 = vcombine.high %v439_v62, %v443_v63  ;;  %v446_v4 = vld [vmem:[%s3609_s22 + $0x740] sm:$0xff] }
  0x6b   : > { %v3367_v12 = vcombine.high %v446_v4, %v450_v5 }
  0x6c   : > { %1893 = vmatmul.mubr.bf16.gmra.mrb[12].mxu0 %v3773_v10  ;;  %2039 = vmatmul.mubr.bf16.gmra.mrb[12].mxu1 %v3773_v10 }
  0x6d   : > { %1916 = vmatpush1.bf16.msra.mxu0 %v3310_v11  ;;  %2062 = vmatpush1.bf16.msra.mxu1 %v3312_v13  ;;  %v3360_v11 = vcombine.low %v439_v62, %v443_v63  ;;  %v2532_v13 = vld [vmem:[%s4264_s3 + $0x30] sm:$0xff] }
  0x6e   : > { %1917 = vmatprep.subr.bf16.mxu0 %v3319_v14  ;;  %2063 = vmatprep.subr.bf16.mxu1 %v3321_v15  ;;  %v2533_v14 = vld [vmem:[%s4264_s3 + $0x38] sm:$0xff]  ;;  %v3369_v15 = vcombine.high %v447_v6, %v451_v7 }
  0x6f   : > { %1935 = vmatprep.mubr.bf16.mxu0 %v3783_v19  ;;  %2081 = vmatprep.mubr.bf16.mxu1 %v3783_v19 }
  0x70   : > { %2561 = vperm.xlu1 %3532, %v2531_v57   ;;  %2566 = vperm.xlu0 %3531, %v2532_v13   ;;  %v233_v57 = vld [vmem:[%s3609_s22 + $0x98] sm:$0xff]  ;;  %v252_v13 = vld [vmem:[%s3609_s22 + $0x130] sm:$0xff] }
  0x71   : > { %1918 = vmatpush1.bf16.msra.mxu0 %v3318_v22  ;;  %2064 = vmatpush1.bf16.msra.mxu1 %v3320_v24  ;;  %v3366_v22 = vcombine.low %v446_v4, %v450_v5  ;;  %v3375_v24 = vcombine.high %v454_v16, %v458_v17  ;;  %v245_v4 = vld [vmem:[%s3609_s22 + $0xf8] sm:$0xff] }
  0x72   : > { %1919 = vmatprep.subr.bf16.mxu0 %v3327_v25  ;;  %2065 = vmatprep.subr.bf16.mxu1 %v3329_v27  ;;  %v3377_v25 = vcombine.high %v455_v20, %v459_v21  ;;  %v466_v27 = vld [vmem:[%s3609_s22 + $0x7e0] sm:$0xff] }
  0x73   : > { %v3382_v40 = vcombine.low %v462_v26, %v466_v27 }
  0x74   : > { %2571 = vperm.xlu1 %3532, %v2533_v14   ;;  %v249_v14 = vld [vmem:[%s3609_s22 + $0x118] sm:$0xff] }
  0x75   : > { %1920 = vmatpush1.bf16.msra.mxu0 %v3326_v33  ;;  %2066 = vmatpush1.bf16.msra.mxu1 %v3328_v34  ;;  %v3383_v33 = vcombine.high %v462_v26, %v466_v27  ;;  %v3385_v34 = vcombine.high %v463_v28, %v467_v30  ;;  %v261_v26 = vld [vmem:[%s3609_s22 + $0x178] sm:$0xff] }
  0x76   : > { %1921 = vmatprep.subr.bf16.mxu0 %v3335_v35  ;;  %2067 = vmatprep.subr.bf16.mxu1 %v3337_v38  ;;  %v216_v35 = vld [vmem:[%s3609_s22 + $0x10] sm:$0xff]  ;;  %v221_v38 = vld [vmem:[%s3609_s22 + $0x38] sm:$0xff] }
  0x77   : > { %v3139_v42 = vcombine.high %v216_v35, %v220_v36  ;;  %v3141_v43 = vcombine.high %v217_v37, %v221_v38  ;;  %v3138_v49 = vcombine.low %v216_v35, %v220_v36  ;;  %v3140_v50 = vcombine.low %v217_v37, %v221_v38  ;;  %v265_v35 = vld [vmem:[%s3609_s22 + $0x198] sm:$0xff] }
  0x78   : > { %v269_v36 = vld [vmem:[%s3609_s22 + $0x1b8] sm:$0xff] }
  0x79   : > { %1922 = vmatpush1.bf16.msra.mxu0 %v3334_v44  ;;  %2068 = vmatpush1.bf16.msra.mxu1 %v3336_v45  ;;  %v224_v44 = vld [vmem:[%s3609_s22 + $0x50] sm:$0xff] }
  0x7a   : > { %1923 = vmatprep.subr.bf16.mxu0 %v3343_v46  ;;  %2069 = vmatprep.subr.bf16.mxu1 %v3345_v47  ;;  %v228_v45 = vld [vmem:[%s3609_s22 + $0x70] sm:$0xff]  ;;  %v3852_v46 = vld [vmem:[%s4262_s1 + $0x8] ss:$16 sps:$4 sm:$0xff]  }
  0x7b   : > { %v225_v47 = vld [vmem:[%s3609_s22 + $0x58] sm:$0xff]  ;;  %v3147_v51 = vcombine.high %v224_v44, %v228_v45  ;;  %v3146_v59 = vcombine.low %v224_v44, %v228_v45 }
  0x7c   : > { %v3148_v61 = vcombine.low %v225_v47, %v229_v48  ;;  %v3918_v44 = vld [vmem:[%s4262_s1 + $0x68] ss:$16 sps:$4 sm:$0xff]  }
  0x7d   : > { %1924 = vmatpush1.bf16.msra.mxu0 %v3342_v53  ;;  %2070 = vmatpush1.bf16.msra.mxu1 %v3344_v54  ;;  %v3149_v53 = vcombine.high %v225_v47, %v229_v48  ;;  %v3859_v54 = vld [vmem:[%s4262_s1 + $0x2c] ss:$16 sps:$4 sm:$0xff]  }
  0x7e   : > { %1925 = vmatprep.subr.bf16.mxu0 %v3351_v55  ;;  %2071 = vmatprep.subr.bf16.mxu1 %v3353_v58  ;;  %v232_v55 = vld [vmem:[%s3609_s22 + $0x90] sm:$0xff]  ;;  %v237_v58 = vld [vmem:[%s3609_s22 + $0xb8] sm:$0xff] }
  0x7f   : > { %v3155_v62 = vcombine.high %v232_v55, %v236_v56  ;;  %v3157_v63 = vcombine.high %v233_v57, %v237_v58  ;;  %v3154_v5 = vcombine.low %v232_v55, %v236_v56  ;;  %v3156_v6 = vcombine.low %v233_v57, %v237_v58  ;;  %v273_v45 = vld [vmem:[%s3609_s22 + $0x1d8] sm:$0xff]  ;;  %v284_v55 = vld [vmem:[%s3609_s22 + $0x230] sm:$0xff] }
  0x80   : > { %v277_v47 = vld [vmem:[%s3609_s22 + $0x1f8] sm:$0xff] }
  0x81   : > { %1926 = vmatpush1.bf16.msra.mxu0 %v3350_v0  ;;  %2072 = vmatpush1.bf16.msra.mxu1 %v3352_v1  ;;  %v240_v0 = vld [vmem:[%s3609_s22 + $0xd0] sm:$0xff]  ;;  %v281_v56 = vld [vmem:[%s3609_s22 + $0x218] sm:$0xff] }
  0x82   : > { %1927 = vmatprep.subr.bf16.mxu0 %v3359_v2  ;;  %2073 = vmatprep.subr.bf16.mxu1 %v3361_v3  ;;  %v244_v1 = vld [vmem:[%s3609_s22 + $0xf0] sm:$0xff]  ;;  %v3874_v2 = vld [vmem:[%s4262_s1 + $0x28] ss:$16 sps:$4 sm:$0xff]  }
  0x83   : > { %v241_v3 = vld [vmem:[%s3609_s22 + $0xd8] sm:$0xff]  ;;  %v3163_v7 = vcombine.high %v240_v0, %v244_v1  ;;  %v3162_v16 = vcombine.low %v240_v0, %v244_v1  ;;  %v292_v0 = vld [vmem:[%s3609_s22 + $0x270] sm:$0xff] }
  0x84   : > { %v3164_v17 = vcombine.low %v241_v3, %v245_v4  ;;  %v285_v57 = vld [vmem:[%s3609_s22 + $0x238] sm:$0xff]  ;;  %v3557_v1 = vld [vmem:[%s4262_s1 + $0x4] ss:$16 sps:$4 sm:$0xff]  }
  0x85   : > { %1928 = vmatpush1.bf16.msra.mxu0 %v3358_v8  ;;  %2074 = vmatpush1.bf16.msra.mxu1 %v3360_v11  ;;  %v3165_v8 = vcombine.high %v241_v3, %v245_v4  ;;  %v3881_v11 = vld [vmem:[%s4262_s1 + $0x4c] ss:$16 sps:$4 sm:$0xff]  }
  0x86   : > { %1929 = vmatprep.subr.bf16.mxu0 %v3367_v12  ;;  %2075 = vmatprep.subr.bf16.mxu1 %v3369_v15  ;;  %v248_v12 = vld [vmem:[%s3609_s22 + $0x110] sm:$0xff]  ;;  %v253_v15 = vld [vmem:[%s3609_s22 + $0x138] sm:$0xff] }
  0x87   : > { %v3171_v20 = vcombine.high %v248_v12, %v252_v13  ;;  %v3173_v21 = vcombine.high %v249_v14, %v253_v15  ;;  %v3170_v27 = vcombine.low %v248_v12, %v252_v13  ;;  %v3172_v28 = vcombine.low %v249_v14, %v253_v15  ;;  %v289_v3 = vld [vmem:[%s3609_s22 + $0x258] sm:$0xff]  ;;  %v296_v12 = vld [vmem:[%s3609_s22 + $0x290] sm:$0xff] }
  0x88   : > { %v293_v4 = vld [vmem:[%s3609_s22 + $0x278] sm:$0xff]  ;;  %v300_v13 = vld [vmem:[%s3609_s22 + $0x2b0] sm:$0xff] }
  0x89   : > { %1930 = vmatpush1.bf16.msra.mxu0 %v3366_v22  ;;  %2076 = vmatpush1.bf16.msra.mxu1 %v3368_v23  ;;  %v256_v22 = vld [vmem:[%s3609_s22 + $0x150] sm:$0xff]  ;;  %v297_v14 = vld [vmem:[%s3609_s22 + $0x298] sm:$0xff] }
  0x8a   : > { %1931 = vmatprep.subr.bf16.mxu0 %v3375_v24  ;;  %2077 = vmatprep.subr.bf16.mxu1 %v3377_v25  ;;  %v260_v23 = vld [vmem:[%s3609_s22 + $0x170] sm:$0xff]  ;;  %v3896_v24 = vld [vmem:[%s4262_s1 + $0x48] ss:$16 sps:$4 sm:$0xff]  }
  0x8b   : > { %v257_v25 = vld [vmem:[%s3609_s22 + $0x158] sm:$0xff]  ;;  %v3179_v30 = vcombine.high %v256_v22, %v260_v23  ;;  %v3178_v37 = vcombine.low %v256_v22, %v260_v23  ;;  %v304_v22 = vld [vmem:[%s3609_s22 + $0x2d0] sm:$0xff] }
  0x8c   : > { %v3180_v38 = vcombine.low %v257_v25, %v261_v26  ;;  %v301_v15 = vld [vmem:[%s3609_s22 + $0x2b8] sm:$0xff]  ;;  %v308_v23 = vld [vmem:[%s3609_s22 + $0x2f0] sm:$0xff] }
  0x8d   : > { %1932 = vmatpush1.bf16.msra.mxu0 %v3374_v31  ;;  %2078 = vmatpush1.bf16.msra.mxu1 %v3376_v32  ;;  %v3181_v31 = vcombine.high %v257_v25, %v261_v26  ;;  %v3903_v32 = vld [vmem:[%s4262_s1 + $0x6c] ss:$16 sps:$4 sm:$0xff]  }
  0x8e   : > { %1933 = vmatprep.subr.bf16.mxu0 %v3383_v33  ;;  %2079 = vmatprep.subr.bf16.mxu1 %v3385_v34  ;;  %v264_v33 = vld [vmem:[%s3609_s22 + $0x190] sm:$0xff]  ;;  %v305_v25 = vld [vmem:[%s3609_s22 + $0x2d8] sm:$0xff] }
  0x8f   : > { %v268_v34 = vld [vmem:[%s3609_s22 + $0x1b0] sm:$0xff]  ;;  %v309_v26 = vld [vmem:[%s3609_s22 + $0x2f8] sm:$0xff] }
  0x90   : > { %v3186_v48 = vcombine.low %v264_v33, %v268_v34 }
  0x91   : > { %1934 = vmatpush1.bf16.msra.mxu0 %v3382_v40  ;;  %2080 = vmatpush1.bf16.msra.mxu1 %v3384_v41  ;;  %v3187_v40 = vcombine.high %v264_v33, %v268_v34  ;;  %v3189_v41 = vcombine.high %v265_v35, %v269_v36  ;;  %v312_v33 = vld [vmem:[%s3609_s22 + $0x310] sm:$0xff] }
  0x92   : > { %2122 = vmatprep.subr.bf16.mxu0 %v3139_v42  ;;  %2268 = vmatprep.subr.bf16.mxu1 %v3141_v43  ;;  %v272_v42 = vld [vmem:[%s3609_s22 + $0x1d0] sm:$0xff] }
  0x93   : > { %v276_v43 = vld [vmem:[%s3609_s22 + $0x1f0] sm:$0xff] }
  0x94   : > { %1936 = vmatmul.mubr.bf16.vlgmr.msra.gmra.mrb[0].mxu0 %v3852_v46  ;;  %2082 = vmatmul.mubr.bf16.vlgmr.msra.gmra.mrb[0].mxu1 %v3852_v46  ;;  %v3194_v58 = vcombine.low %v272_v42, %v276_v43  ;;  %v316_v34 = vld [vmem:[%s3609_s22 + $0x330] sm:$0xff] }
  0x95   : > { %2123 = vmatpush1.bf16.msra.mxu0 %v3138_v49  ;;  %2269 = vmatpush1.bf16.msra.mxu1 %v3140_v50  ;;  %v3188_v49 = vcombine.low %v265_v35, %v269_v36  ;;  %v3195_v50 = vcombine.high %v272_v42, %v276_v43  ;;  %v313_v35 = vld [vmem:[%s3609_s22 + $0x318] sm:$0xff]  ;;  %v320_v42 = vld [vmem:[%s3609_s22 + $0x350] sm:$0xff] }
  0x96   : > { %2124 = vmatprep.subr.bf16.mxu0 %v3147_v51  ;;  %2270 = vmatprep.subr.bf16.mxu1 %v3149_v53  ;;  %v3197_v51 = vcombine.high %v273_v45, %v277_v47  ;;  %v280_v53 = vld [vmem:[%s3609_s22 + $0x210] sm:$0xff]  ;;  %v317_v36 = vld [vmem:[%s3609_s22 + $0x338] sm:$0xff] }
  0x97   : > { %1945 = vmatprep.mubr.bf16.mxu0 %v3859_v54  ;;  %2091 = vmatprep.mubr.bf16.mxu1 %v3859_v54  ;;  %v324_v43 = vld [vmem:[%s3609_s22 + $0x370] sm:$0xff] }
  0x99   : > { %2125 = vmatpush1.bf16.msra.mxu0 %v3146_v59  ;;  %2271 = vmatpush1.bf16.msra.mxu1 %v3148_v61  ;;  %v3196_v59 = vcombine.low %v273_v45, %v277_v47  ;;  %v3203_v61 = vcombine.high %v280_v53, %v284_v55  ;;  %v321_v45 = vld [vmem:[%s3609_s22 + $0x358] sm:$0xff] }
  0x9a   : > { %2126 = vmatprep.subr.bf16.mxu0 %v3155_v62  ;;  %2272 = vmatprep.subr.bf16.mxu1 %v3157_v63  ;;  %v3205_v62 = vcombine.high %v281_v56, %v285_v57  ;;  %v288_v63 = vld [vmem:[%s3609_s22 + $0x250] sm:$0xff]  ;;  %v325_v47 = vld [vmem:[%s3609_s22 + $0x378] sm:$0xff] }
  0x9c   : > { %1946 = vmatmul.mubr.bf16.gmra.mrb[4].mxu0 %v3874_v2  ;;  %2092 = vmatmul.mubr.bf16.gmra.mrb[4].mxu1 %v3874_v2 }
  0x9d   : > { %2127 = vmatpush1.bf16.msra.mxu0 %v3154_v5  ;;  %2273 = vmatpush1.bf16.msra.mxu1 %v3156_v6  ;;  %v3202_v5 = vcombine.low %v280_v53, %v284_v55  ;;  %v3204_v6 = vcombine.low %v281_v56, %v285_v57  ;;  %v328_v53 = vld [vmem:[%s3609_s22 + $0x390] sm:$0xff]  ;;  %v329_v56 = vld [vmem:[%s3609_s22 + $0x398] sm:$0xff] }
  0x9e   : > { %2128 = vmatprep.subr.bf16.mxu0 %v3163_v7  ;;  %2274 = vmatprep.subr.bf16.mxu1 %v3165_v8  ;;  %v3211_v7 = vcombine.high %v288_v63, %v292_v0  ;;  %v3213_v8 = vcombine.high %v289_v3, %v293_v4  ;;  %v332_v55 = vld [vmem:[%s3609_s22 + $0x3b0] sm:$0xff]  ;;  %v333_v57 = vld [vmem:[%s3609_s22 + $0x3b8] sm:$0xff] }
  0x9f   : > { %1955 = vmatprep.mubr.bf16.mxu0 %v3881_v11  ;;  %2101 = vmatprep.mubr.bf16.mxu1 %v3881_v11 }
  0xa1   : > { %2129 = vmatpush1.bf16.msra.mxu0 %v3162_v16  ;;  %2275 = vmatpush1.bf16.msra.mxu1 %v3164_v17  ;;  %v3210_v16 = vcombine.low %v288_v63, %v292_v0  ;;  %v3212_v17 = vcombine.low %v289_v3, %v293_v4  ;;  %v336_v63 = vld [vmem:[%s3609_s22 + $0x3d0] sm:$0xff]  ;;  %v341_v3 = vld [vmem:[%s3609_s22 + $0x3f8] sm:$0xff]  ;;  %v3250_v4 = vcombine.low %v328_v53, %v332_v55 }
  0xa2   : > { %2130 = vmatprep.subr.bf16.mxu0 %v3171_v20  ;;  %2276 = vmatprep.subr.bf16.mxu1 %v3173_v21  ;;  %v3219_v20 = vcombine.high %v296_v12, %v300_v13  ;;  %v3221_v21 = vcombine.high %v297_v14, %v301_v15  ;;  %v340_v0 = vld [vmem:[%s3609_s22 + $0x3f0] sm:$0xff] }
  0xa4   : > { %1956 = vmatmul.mubr.bf16.gmra.mrb[8].mxu0 %v3896_v24  ;;  %2102 = vmatmul.mubr.bf16.gmra.mrb[8].mxu1 %v3896_v24 }
  0xa5   : > { %2131 = vmatpush1.bf16.msra.mxu0 %v3170_v27  ;;  %2277 = vmatpush1.bf16.msra.mxu1 %v3172_v28  ;;  %v3218_v27 = vcombine.low %v296_v12, %v300_v13  ;;  %v3220_v28 = vcombine.low %v297_v14, %v301_v15  ;;  %v348_v12 = vld [vmem:[%s3609_s22 + $0x430] sm:$0xff]  ;;  %v345_v13 = vld [vmem:[%s3609_s22 + $0x418] sm:$0xff]  ;;  %v3258_v15 = vcombine.low %v336_v63, %v340_v0 }
  0xa6   : > { %2132 = vmatprep.subr.bf16.mxu0 %v3179_v30  ;;  %2278 = vmatprep.subr.bf16.mxu1 %v3181_v31  ;;  %v3227_v30 = vcombine.high %v304_v22, %v308_v23  ;;  %v3229_v31 = vcombine.high %v305_v25, %v309_v26  ;;  %v349_v14 = vld [vmem:[%s3609_s22 + $0x438] sm:$0xff] }
  0xa7   : > { %1965 = vmatprep.mubr.bf16.mxu0 %v3903_v32  ;;  %2111 = vmatprep.mubr.bf16.mxu1 %v3903_v32 }
  0xa9   : > { %2133 = vmatpush1.bf16.msra.mxu0 %v3178_v37  ;;  %2279 = vmatpush1.bf16.msra.mxu1 %v3180_v38  ;;  %v3226_v37 = vcombine.low %v304_v22, %v308_v23  ;;  %v3228_v38 = vcombine.low %v305_v25, %v309_v26  ;;  %v356_v22 = vld [vmem:[%s3609_s22 + $0x470] sm:$0xff]  ;;  %v353_v23 = vld [vmem:[%s3609_s22 + $0x458] sm:$0xff] }
  0xaa   : > { %2134 = vmatprep.subr.bf16.mxu0 %v3187_v40  ;;  %2280 = vmatprep.subr.bf16.mxu1 %v3189_v41  ;;  %v3235_v40 = vcombine.high %v312_v33, %v316_v34  ;;  %v3237_v41 = vcombine.high %v313_v35, %v317_v36  ;;  %v357_v25 = vld [vmem:[%s3609_s22 + $0x478] sm:$0xff] }
  0xac   : > { %1966 = vmatmul.mubr.bf16.gmra.mrb[12].mxu0 %v3918_v44  ;;  %2112 = vmatmul.mubr.bf16.gmra.mrb[12].mxu1 %v3918_v44 }
  0xad   : > { %2135 = vmatpush1.bf16.msra.mxu0 %v3186_v48  ;;  %2281 = vmatpush1.bf16.msra.mxu1 %v3188_v49  ;;  %v3234_v48 = vcombine.low %v312_v33, %v316_v34  ;;  %v3236_v49 = vcombine.low %v313_v35, %v317_v36  ;;  %v364_v33 = vld [vmem:[%s3609_s22 + $0x4b0] sm:$0xff]  ;;  %v361_v34 = vld [vmem:[%s3609_s22 + $0x498] sm:$0xff] }
  0xae   : > { %2136 = vmatprep.subr.bf16.mxu0 %v3195_v50  ;;  %2282 = vmatprep.subr.bf16.mxu1 %v3197_v51  ;;  %v3243_v50 = vcombine.high %v320_v42, %v324_v43  ;;  %v3245_v51 = vcombine.high %v321_v45, %v325_v47  ;;  %v365_v35 = vld [vmem:[%s3609_s22 + $0x4b8] sm:$0xff] }
  0xaf   : > { %2154 = vmatprep.mubr.bf16.mxu0 %v3557_v1  ;;  %2300 = vmatprep.mubr.bf16.mxu1 %v3557_v1  ;;  %v337_v1 = vld [vmem:[%s3609_s22 + $0x3d8] sm:$0xff] }
  0xb1   : > { %2137 = vmatpush1.bf16.msra.mxu0 %v3194_v58  ;;  %2283 = vmatpush1.bf16.msra.mxu1 %v3196_v59  ;;  %v3242_v58 = vcombine.low %v320_v42, %v324_v43  ;;  %v3244_v59 = vcombine.low %v321_v45, %v325_v47  ;;  %v372_v42 = vld [vmem:[%s3609_s22 + $0x4f0] sm:$0xff]  ;;  %v369_v43 = vld [vmem:[%s3609_s22 + $0x4d8] sm:$0xff]  ;;  %v3284_v47 = vcombine.low %v361_v34, %v365_v35 }
  0xb2   : > { %2138 = vmatprep.subr.bf16.mxu0 %v3203_v61  ;;  %2284 = vmatprep.subr.bf16.mxu1 %v3205_v62  ;;  %v3251_v61 = vcombine.high %v328_v53, %v332_v55  ;;  %v3253_v62 = vcombine.high %v329_v56, %v333_v57  ;;  %v373_v45 = vld [vmem:[%s3609_s22 + $0x4f8] sm:$0xff] }
  0xb3   : > { %v377_v53 = vld [vmem:[%s3609_s22 + $0x518] sm:$0xff] }
  0xb4   : > { %v381_v55 = vld [vmem:[%s3609_s22 + $0x538] sm:$0xff] }
  0xb5   : > { %2139 = vmatpush1.bf16.msra.mxu0 %v3202_v5  ;;  %2285 = vmatpush1.bf16.msra.mxu1 %v3204_v6  ;;  %v3252_v5 = vcombine.low %v329_v56, %v333_v57  ;;  %v3259_v6 = vcombine.high %v336_v63, %v340_v0  ;;  %v3292_v56 = vcombine.low %v369_v43, %v373_v45  ;;  %v389_v63 = vld [vmem:[%s3609_s22 + $0x578] sm:$0xff] }
  0xb6   : > { %2140 = vmatprep.subr.bf16.mxu0 %v3211_v7  ;;  %2286 = vmatprep.subr.bf16.mxu1 %v3213_v8  ;;  %v3261_v7 = vcombine.high %v337_v1, %v341_v3  ;;  %v344_v8 = vld [vmem:[%s3609_s22 + $0x410] sm:$0xff]  ;;  %v3300_v0 = vcombine.low %v377_v53, %v381_v55 }
  0xb7   : > { %v3266_v26 = vcombine.low %v344_v8, %v348_v12 }
  0xb9   : > { %2141 = vmatpush1.bf16.msra.mxu0 %v3210_v16  ;;  %2287 = vmatpush1.bf16.msra.mxu1 %v3212_v17  ;;  %v3260_v16 = vcombine.low %v337_v1, %v341_v3  ;;  %v3267_v17 = vcombine.high %v344_v8, %v348_v12 }
  0xba   : > { %2142 = vmatprep.subr.bf16.mxu0 %v3219_v20  ;;  %2288 = vmatprep.subr.bf16.mxu1 %v3221_v21  ;;  %v3269_v20 = vcombine.high %v345_v13, %v349_v14  ;;  %v352_v21 = vld [vmem:[%s3609_s22 + $0x450] sm:$0xff] }
  0xbb   : > { %v3274_v36 = vcombine.low %v352_v21, %v356_v22 }
  0xbd   : > { %2143 = vmatpush1.bf16.msra.mxu0 %v3218_v27  ;;  %2289 = vmatpush1.bf16.msra.mxu1 %v3220_v28  ;;  %v3268_v27 = vcombine.low %v345_v13, %v349_v14  ;;  %v3275_v28 = vcombine.high %v352_v21, %v356_v22  ;;  %v400_v14 = vld [vmem:[%s3609_s22 + $0x5d0] sm:$0xff] }
  0xbe   : > { %2144 = vmatprep.subr.bf16.mxu0 %v3227_v30  ;;  %2290 = vmatprep.subr.bf16.mxu1 %v3229_v31  ;;  %v3277_v30 = vcombine.high %v353_v23, %v357_v25  ;;  %v360_v31 = vld [vmem:[%s3609_s22 + $0x490] sm:$0xff] }
  0xc1   : > { %2145 = vmatpush1.bf16.msra.mxu0 %v3226_v37  ;;  %2291 = vmatpush1.bf16.msra.mxu1 %v3228_v38  ;;  %v3276_v37 = vcombine.low %v353_v23, %v357_v25  ;;  %v3283_v38 = vcombine.high %v360_v31, %v364_v33  ;;  %v408_v23 = vld [vmem:[%s3609_s22 + $0x610] sm:$0xff] }
  0xc2   : > { %2146 = vmatprep.subr.bf16.mxu0 %v3235_v40  ;;  %2292 = vmatprep.subr.bf16.mxu1 %v3237_v41  ;;  %v3285_v40 = vcombine.high %v361_v34, %v365_v35  ;;  %v368_v41 = vld [vmem:[%s3609_s22 + $0x4d0] sm:$0xff]  ;;  %v417_v35 = vld [vmem:[%s3609_s22 + $0x658] sm:$0xff] }
  0xc3   : > { %v412_v25 = vld [vmem:[%s3609_s22 + $0x630] sm:$0xff] }
  0xc4   : > { %v420_v34 = vld [vmem:[%s3609_s22 + $0x670] sm:$0xff] }
  0xc5   : > { %2147 = vmatpush1.bf16.msra.mxu0 %v3234_v48  ;;  %2293 = vmatpush1.bf16.msra.mxu1 %v3236_v49  ;;  %v3291_v48 = vcombine.high %v368_v41, %v372_v42  ;;  %v3293_v49 = vcombine.high %v369_v43, %v373_v45  ;;  %v425_v43 = vld [vmem:[%s3609_s22 + $0x698] sm:$0xff] }
  0xc6   : > { %2148 = vmatprep.subr.bf16.mxu0 %v3243_v50  ;;  %2294 = vmatprep.subr.bf16.mxu1 %v3245_v51  ;;  %v376_v50 = vld [vmem:[%s3609_s22 + $0x510] sm:$0xff]  ;;  %v429_v45 = vld [vmem:[%s3609_s22 + $0x6b8] sm:$0xff] }
  0xc7   : > { %v380_v51 = vld [vmem:[%s3609_s22 + $0x530] sm:$0xff] }
  0xc8   : > { %v3299_v57 = vcombine.high %v376_v50, %v380_v51 }
  0xc9   : > { %2149 = vmatpush1.bf16.msra.mxu0 %v3242_v58  ;;  %2295 = vmatpush1.bf16.msra.mxu1 %v3244_v59  ;;  %v3301_v58 = vcombine.high %v377_v53, %v381_v55  ;;  %v384_v59 = vld [vmem:[%s3609_s22 + $0x550] sm:$0xff]  ;;  %v437_v53 = vld [vmem:[%s3609_s22 + $0x6f8] sm:$0xff] }
  0xca   : > { %2150 = vmatprep.subr.bf16.mxu0 %v3251_v61  ;;  %2296 = vmatprep.subr.bf16.mxu1 %v3253_v62  ;;  %v388_v61 = vld [vmem:[%s3609_s22 + $0x570] sm:$0xff]  ;;  %v385_v62 = vld [vmem:[%s3609_s22 + $0x558] sm:$0xff] }
  0xcb   : > { %v3307_v1 = vcombine.high %v384_v59, %v388_v61  ;;  %v3309_v3 = vcombine.high %v385_v62, %v389_v63  ;;  %v3308_v8 = vcombine.low %v385_v62, %v389_v63  ;;  %v445_v62 = vld [vmem:[%s3609_s22 + $0x738] sm:$0xff] }
  0xcd   : > { %2151 = vmatpush1.bf16.msra.mxu0 %v3250_v4  ;;  %2297 = vmatpush1.bf16.msra.mxu1 %v3252_v5  ;;  %v392_v4 = vld [vmem:[%s3609_s22 + $0x590] sm:$0xff] }
  0xce   : > { %2152 = vmatprep.subr.bf16.mxu0 %v3259_v6  ;;  %2298 = vmatprep.subr.bf16.mxu1 %v3261_v7  ;;  %v396_v5 = vld [vmem:[%s3609_s22 + $0x5b0] sm:$0xff]  ;;  %v393_v6 = vld [vmem:[%s3609_s22 + $0x598] sm:$0xff] }
  0xcf   : > { %v397_v7 = vld [vmem:[%s3609_s22 + $0x5b8] sm:$0xff]  ;;  %v3315_v12 = vcombine.high %v392_v4, %v396_v5 }
  0xd0   : > { %v3317_v13 = vcombine.high %v393_v6, %v397_v7 }
  0xd1   : > { %2153 = vmatpush1.bf16.msra.mxu0 %v3258_v15  ;;  %2299 = vmatpush1.bf16.msra.mxu1 %v3260_v16  ;;  %v404_v15 = vld [vmem:[%s3609_s22 + $0x5f0] sm:$0xff]  ;;  %v401_v16 = vld [vmem:[%s3609_s22 + $0x5d8] sm:$0xff] }
  0xd2   : > { %2195 = vmatprep.subr.bf16.mxu0 %v3267_v17  ;;  %2341 = vmatprep.subr.bf16.mxu1 %v3269_v20  ;;  %v405_v17 = vld [vmem:[%s3609_s22 + $0x5f8] sm:$0xff]  ;;  %v3316_v20 = vcombine.low %v393_v6, %v397_v7  ;;  %v3323_v21 = vcombine.high %v400_v14, %v404_v15 }
  0xd3   : > { %v3325_v22 = vcombine.high %v401_v16, %v405_v17  ;;  %v453_v6 = vld [vmem:[%s3609_s22 + $0x778] sm:$0xff] }
  0xd4   : > { %2155 = vmatmul.mubr.bf16.vlgmr.msra.gmra.mrb[16].mxu0 %v3684_v9  ;;  %2301 = vmatmul.mubr.bf16.vlgmr.msra.gmra.mrb[16].mxu1 %v3684_v9  ;;  %v3282_v9 = vcombine.low %v360_v31, %v364_v33  ;;  %v416_v33 = vld [vmem:[%s3609_s22 + $0x650] sm:$0xff] }
  0xd5   : > { %2196 = vmatpush1.bf16.msra.mxu0 %v3266_v26  ;;  %2342 = vmatpush1.bf16.msra.mxu1 %v3268_v27  ;;  %v409_v26 = vld [vmem:[%s3609_s22 + $0x618] sm:$0xff] }
  0xd6   : > { %2197 = vmatprep.subr.bf16.mxu0 %v3275_v28  ;;  %2343 = vmatprep.subr.bf16.mxu1 %v3277_v30  ;;  %v413_v27 = vld [vmem:[%s3609_s22 + $0x638] sm:$0xff]  ;;  %v3324_v28 = vcombine.low %v401_v16, %v405_v17  ;;  %v3331_v30 = vcombine.high %v408_v23, %v412_v25 }
  0xd7   : > { %2164 = vmatprep.mubr.bf16.mxu0 %v3693_v18  ;;  %2310 = vmatprep.mubr.bf16.mxu1 %v3693_v18  ;;  %v3290_v18 = vcombine.low %v368_v41, %v372_v42  ;;  %v3333_v31 = vcombine.high %v409_v26, %v413_v27  ;;  %v424_v41 = vld [vmem:[%s3609_s22 + $0x690] sm:$0xff]  ;;  %v461_v16 = vld [vmem:[%s3609_s22 + $0x7b8] sm:$0xff] }
  0xd8   : > { %v428_v42 = vld [vmem:[%s3609_s22 + $0x6b0] sm:$0xff] }
  0xd9   : > { %2198 = vmatpush1.bf16.msra.mxu0 %v3274_v36  ;;  %2344 = vmatpush1.bf16.msra.mxu1 %v3276_v37  ;;  %v421_v36 = vld [vmem:[%s3609_s22 + $0x678] sm:$0xff]  ;;  %v3332_v37 = vcombine.low %v409_v26, %v413_v27  ;;  %v3346_v55 = vcombine.low %v424_v41, %v428_v42 }
  0xda   : > { %2199 = vmatprep.subr.bf16.mxu0 %v3283_v38  ;;  %2345 = vmatprep.subr.bf16.mxu1 %v3285_v40  ;;  %v3339_v38 = vcombine.high %v416_v33, %v420_v34  ;;  %v3341_v40 = vcombine.high %v417_v35, %v421_v36  ;;  %v469_v26 = vld [vmem:[%s3609_s22 + $0x7f8] sm:$0xff] }
  0xdc   : > { %2165 = vmatmul.mubr.bf16.gmra.mrb[20].mxu0 %v3708_v29  ;;  %2311 = vmatmul.mubr.bf16.gmra.mrb[20].mxu1 %v3708_v29  ;;  %v3298_v29 = vcombine.low %v376_v50, %v380_v51  ;;  %v436_v50 = vld [vmem:[%s3609_s22 + $0x6f0] sm:$0xff]  ;;  %v433_v51 = vld [vmem:[%s3609_s22 + $0x6d8] sm:$0xff] }
  0xdd   : > { %2200 = vmatpush1.bf16.msra.mxu0 %v3282_v9  ;;  %2346 = vmatpush1.bf16.msra.mxu1 %v3284_v47  ;;  %v3338_v9 = vcombine.low %v416_v33, %v420_v34  ;;  %v3347_v47 = vcombine.high %v424_v41, %v428_v42 }
  0xde   : > { %2201 = vmatprep.subr.bf16.mxu0 %v3291_v48  ;;  %2347 = vmatprep.subr.bf16.mxu1 %v3293_v49  ;;  %v3349_v48 = vcombine.high %v425_v43, %v429_v45  ;;  %v432_v49 = vld [vmem:[%s3609_s22 + $0x6d0] sm:$0xff] }
  0xdf   : > { %2174 = vmatprep.mubr.bf16.mxu0 %v3721_v39  ;;  %2320 = vmatprep.mubr.bf16.mxu1 %v3721_v39  ;;  %v3306_v39 = vcombine.low %v384_v59, %v388_v61  ;;  %v444_v59 = vld [vmem:[%s3609_s22 + $0x730] sm:$0xff]  ;;  %v441_v61 = vld [vmem:[%s3609_s22 + $0x718] sm:$0xff]  ;;  %v3354_v63 = vcombine.low %v432_v49, %v436_v50 }
  0xe1   : > { %2202 = vmatpush1.bf16.msra.mxu0 %v3290_v18  ;;  %2348 = vmatpush1.bf16.msra.mxu1 %v3292_v56  ;;  %v3348_v18 = vcombine.low %v425_v43, %v429_v45  ;;  %v3355_v56 = vcombine.high %v432_v49, %v436_v50 }
  0xe2   : > { %2203 = vmatprep.subr.bf16.mxu0 %v3299_v57  ;;  %2349 = vmatprep.subr.bf16.mxu1 %v3301_v58  ;;  %v3357_v57 = vcombine.high %v433_v51, %v437_v53  ;;  %v440_v58 = vld [vmem:[%s3609_s22 + $0x710] sm:$0xff] }
  0xe3   : > { %v3362_v7 = vcombine.low %v440_v58, %v444_v59 }
  0xe4   : > { %2175 = vmatmul.mubr.bf16.gmra.mrb[24].mxu0 %v3742_v52  ;;  %2321 = vmatmul.mubr.bf16.gmra.mrb[24].mxu1 %v3742_v52  ;;  %v3314_v52 = vcombine.low %v392_v4, %v396_v5  ;;  %v452_v4 = vld [vmem:[%s3609_s22 + $0x770] sm:$0xff]  ;;  %v449_v5 = vld [vmem:[%s3609_s22 + $0x758] sm:$0xff] }
  0xe5   : > { %2204 = vmatpush1.bf16.msra.mxu0 %v3298_v29  ;;  %2350 = vmatpush1.bf16.msra.mxu1 %v3300_v0  ;;  %v3356_v29 = vcombine.low %v433_v51, %v437_v53  ;;  %v3363_v0 = vcombine.high %v440_v58, %v444_v59 }
  0xe6   : > { %2205 = vmatprep.subr.bf16.mxu0 %v3307_v1  ;;  %2351 = vmatprep.subr.bf16.mxu1 %v3309_v3  ;;  %v3365_v1 = vcombine.high %v441_v61, %v445_v62  ;;  %v448_v3 = vld [vmem:[%s3609_s22 + $0x750] sm:$0xff] }
  0xe7   : > { %2184 = vmatprep.mubr.bf16.mxu0 %v3752_v60  ;;  %2330 = vmatprep.mubr.bf16.mxu1 %v3752_v60  ;;  %v3322_v60 = vcombine.low %v400_v14, %v404_v15  ;;  %v460_v14 = vld [vmem:[%s3609_s22 + $0x7b0] sm:$0xff]  ;;  %v457_v15 = vld [vmem:[%s3609_s22 + $0x798] sm:$0xff]  ;;  %v3370_v17 = vcombine.low %v448_v3, %v452_v4 }
  0xe9   : > { %2206 = vmatpush1.bf16.msra.mxu0 %v3306_v39  ;;  %2352 = vmatpush1.bf16.msra.mxu1 %v3308_v8  ;;  %v3364_v39 = vcombine.low %v441_v61, %v445_v62  ;;  %v3371_v8 = vcombine.high %v448_v3, %v452_v4 }
  0xea   : > { %2207 = vmatprep.subr.bf16.mxu0 %v3315_v12  ;;  %2353 = vmatprep.subr.bf16.mxu1 %v3317_v13  ;;  %v3373_v12 = vcombine.high %v449_v5, %v453_v6  ;;  %v456_v13 = vld [vmem:[%s3609_s22 + $0x790] sm:$0xff] }
  0xeb   : > { %v3378_v27 = vcombine.low %v456_v13, %v460_v14 }
  0xec   : > { %2185 = vmatmul.mubr.bf16.gmra.mrb[28].mxu0 %v3773_v10  ;;  %2331 = vmatmul.mubr.bf16.gmra.mrb[28].mxu1 %v3773_v10  ;;  %v3330_v10 = vcombine.low %v408_v23, %v412_v25  ;;  %v468_v23 = vld [vmem:[%s3609_s22 + $0x7f0] sm:$0xff]  ;;  %v465_v25 = vld [vmem:[%s3609_s22 + $0x7d8] sm:$0xff] }
  0xed   : > { %2208 = vmatpush1.bf16.msra.mxu0 %v3314_v52  ;;  %2354 = vmatpush1.bf16.msra.mxu1 %v3316_v20  ;;  %v3372_v52 = vcombine.low %v449_v5, %v453_v6  ;;  %v3379_v20 = vcombine.high %v456_v13, %v460_v14  ;;  %v3388_v33 = vcombine.low %v465_v25, %v469_v26 }
  0xee   : > { %2209 = vmatprep.subr.bf16.mxu0 %v3323_v21  ;;  %2355 = vmatprep.subr.bf16.mxu1 %v3325_v22  ;;  %v3381_v21 = vcombine.high %v457_v15, %v461_v16  ;;  %v464_v22 = vld [vmem:[%s3609_s22 + $0x7d0] sm:$0xff]  ;;  %s3425_s22 = sshll.u32 %s4267_s16, 8 }
  0xef   : > { %2227 = vmatprep.mubr.bf16.mxu0 %v3783_v19  ;;  %2373 = vmatprep.mubr.bf16.mxu1 %v3783_v19  ;;  %v3340_v19 = vcombine.low %v417_v35, %v421_v36  ;;  %s4090_s19 = scalar_lea.vmem %s4265_s4, %s3425_s22 }
  0xf1   : > { %2210 = vmatpush1.bf16.msra.mxu0 %v3322_v60  ;;  %2356 = vmatpush1.bf16.msra.mxu1 %v3324_v28  ;;  %v3380_v60 = vcombine.low %v457_v15, %v461_v16  ;;  %v3387_v28 = vcombine.high %v464_v22, %v468_v23 }
  0xf2   : > { %2211 = vmatprep.subr.bf16.mxu0 %v3331_v30  ;;  %2357 = vmatprep.subr.bf16.mxu1 %v3333_v31  ;;  %v3389_v30 = vcombine.high %v465_v25, %v469_v26  ;;  %v3386_v31 = vcombine.low %v464_v22, %v468_v23 }
  0xf5   : > { %2212 = vmatpush1.bf16.msra.mxu0 %v3330_v10  ;;  %2358 = vmatpush1.bf16.msra.mxu1 %v3332_v37 }
  0xf6   : > { %2213 = vmatprep.subr.bf16.mxu0 %v3339_v38  ;;  %2359 = vmatprep.subr.bf16.mxu1 %v3341_v40 }
  0xf9   : > { %2214 = vmatpush1.bf16.msra.mxu0 %v3338_v9  ;;  %2360 = vmatpush1.bf16.msra.mxu1 %v3340_v19 }
  0xfa   : > { %2215 = vmatprep.subr.bf16.mxu0 %v3347_v47  ;;  %2361 = vmatprep.subr.bf16.mxu1 %v3349_v48 }
  0xfd   : > { %2216 = vmatpush1.bf16.msra.mxu0 %v3346_v55  ;;  %2362 = vmatpush1.bf16.msra.mxu1 %v3348_v18 }
  0xfe   : > { %2217 = vmatprep.subr.bf16.mxu0 %v3355_v56  ;;  %2363 = vmatprep.subr.bf16.mxu1 %v3357_v57 }
 0x101   : > { %2218 = vmatpush1.bf16.msra.mxu0 %v3354_v63  ;;  %2364 = vmatpush1.bf16.msra.mxu1 %v3356_v29 }
 0x102   : > { %2219 = vmatprep.subr.bf16.mxu0 %v3363_v0  ;;  %2365 = vmatprep.subr.bf16.mxu1 %v3365_v1 }
 0x105   : > { %2220 = vmatpush1.bf16.msra.mxu0 %v3362_v7  ;;  %2366 = vmatpush1.bf16.msra.mxu1 %v3364_v39 }
 0x106   : > { %2221 = vmatprep.subr.bf16.mxu0 %v3371_v8  ;;  %2367 = vmatprep.subr.bf16.mxu1 %v3373_v12 }
 0x109   : > { %2222 = vmatpush1.bf16.msra.mxu0 %v3370_v17  ;;  %2368 = vmatpush1.bf16.msra.mxu1 %v3372_v52 }
 0x10a   : > { %2223 = vmatprep.subr.bf16.mxu0 %v3379_v20  ;;  %2369 = vmatprep.subr.bf16.mxu1 %v3381_v21 }
 0x10d   : > { %2224 = vmatpush1.bf16.msra.mxu0 %v3378_v27  ;;  %2370 = vmatpush1.bf16.msra.mxu1 %v3380_v60 }
 0x10e   : > { %2225 = vmatprep.subr.bf16.mxu0 %v3387_v28  ;;  %2371 = vmatprep.subr.bf16.mxu1 %v3389_v30 }
 0x111   : > { %2226 = vmatpush1.bf16.msra.mxu0 %v3386_v31  ;;  %2372 = vmatpush1.bf16.msra.mxu1 %v3388_v33 }
 0x114   : > { %2228 = vmatmul.mubr.bf16.vlgmr.msra.gmra.mrb[16].mxu0 %v3852_v46  ;;  %2374 = vmatmul.mubr.bf16.vlgmr.msra.gmra.mrb[16].mxu1 %v3852_v46  ;;  %v4053_v46 = vpop.permute.xlu0 %2424 }
 0x115   : > { %2237 = vmatprep.mubr.bf16.mxu0 %v3859_v54  ;;  %2383 = vmatprep.mubr.bf16.mxu1 %v3859_v54  ;;  %v4055_v54 = vpop.permute.xlu1 %2434 }
 0x119   : > { %v4059_v34 = vpop.permute.xlu1 %2439 }
 0x11c   : > { %2238 = vmatmul.mubr.bf16.gmra.mrb[20].mxu0 %v3874_v2  ;;  %2384 = vmatmul.mubr.bf16.gmra.mrb[20].mxu1 %v3874_v2  ;;  %v4057_v2 = vpop.permute.xlu0 %2429 }
 0x11d   : > { %2247 = vmatprep.mubr.bf16.mxu0 %v3881_v11  ;;  %2393 = vmatprep.mubr.bf16.mxu1 %v3881_v11  ;;  %v4063_v35 = vpop.permute.xlu1 %2449 }
 0x120   : > { %v4061_v11 = vpop.permute.xlu0 %2444 }
 0x121   : > { %v4067_v36 = vpop.permute.xlu1 %2459 }
 0x124   : > { %2248 = vmatmul.mubr.bf16.gmra.mrb[24].mxu0 %v3896_v24  ;;  %2394 = vmatmul.mubr.bf16.gmra.mrb[24].mxu1 %v3896_v24  ;;  %v4065_v24 = vpop.permute.xlu0 %2454 }
 0x125   : > { %2257 = vmatprep.mubr.bf16.mxu0 %v3903_v32  ;;  %2403 = vmatprep.mubr.bf16.mxu1 %v3903_v32  ;;  %v4081_v18 = vpop.permute.xlu1 %2541 }
 0x128   : > { %v4069_v10 = vpop.permute.xlu0 %2536 }
 0x12c   : > { %2258 = vmatmul.mubr.bf16.gmra.mrb[28].mxu0 %v3918_v44  ;;  %2404 = vmatmul.mubr.bf16.gmra.mrb[28].mxu1 %v3918_v44  ;;  %v4094_v6 = vpop.permute.xlu0 %2546 }
 0x167   : > { %v1937_v32 = vpop.f32.mrb[0].mxu0  ;;  %v2083_v37 = vpop.f32.mrb[0].mxu1 }
 0x168   : > { %v2462_v44 = vmul.f32 %v4053_v46, %v1937_v32  ;;  %v1939_v38 = vpop.f32.mrb[1].mxu0  ;;  %v2464_v40 = vmul.f32 %v4053_v46, %v2083_v37  ;;  %v2085_v42 = vpop.f32.mrb[1].mxu1 }
 0x169   : > { %v2463_v41 = vmul.f32 %v4053_v46, %v1939_v38  ;;  %v1941_v43 = vpop.f32.mrb[2].mxu0  ;;  %v2465_v45 = vmul.f32 %v4053_v46, %v2085_v42  ;;  %v2087_v47 = vpop.f32.mrb[2].mxu1 }
 0x16a   : > { %v2574_v9 = vadd.f32 %v4069_v10, %v2462_v44  ;;  %v2470_v19 = vmul.f32 %v4057_v2, %v1941_v43  ;;  %v1943_v48 = vpop.f32.mrb[3].mxu0  ;;  %v2576_v50 = vadd.f32 %v4069_v10, %v2464_v40  ;;  %v2472_v51 = vmul.f32 %v4057_v2, %v2087_v47  ;;  %v2089_v55 = vpop.f32.mrb[3].mxu1 }
 0x16b   : > { %v2575_v49 = vadd.f32 %v4069_v10, %v2463_v41  ;;  %v2471_v53 = vmul.f32 %v4057_v2, %v1943_v48  ;;  %v2577_v56 = vadd.f32 %v4069_v10, %v2465_v45  ;;  %v2473_v58 = vmul.f32 %v4057_v2, %v2089_v55 }
 0x16c   : > { %vm2638_vm0 = vcmp.gt.f32.partialorder %v2574_v9, 0.0  ;;  %v2702_v57 = vmul.f32 0.2, %v2574_v9  ;;  %vm2640_vm2 = vcmp.gt.f32.partialorder %v2576_v50, 0.0  ;;  %v2704_v61 = vmul.f32 0.2, %v2576_v50 }
 0x16d   : > { %vm2639_vm1 = vcmp.gt.f32.partialorder %v2575_v49, 0.0  ;;  %v2703_v59 = vmul.f32 0.2, %v2575_v49  ;;  %vm2641_vm3 = vcmp.gt.f32.partialorder %v2577_v56, 0.0  ;;  %v2705_v62 = vmul.f32 0.2, %v2577_v56 }
 0x16e   : > { %v2766_v63 = vsel %vm2638_vm0, %v2574_v9, %v2702_v57  ;;  %v2582_v29 = vadd.f32 %v4081_v18, %v2470_v19  ;;  %v2768_v1 = vsel %vm2640_vm2, %v2576_v50, %v2704_v61  ;;  %v2583_v3 = vadd.f32 %v4081_v18, %v2471_v53  ;;  %v4112_v19 = vpop.permute.xlu1 %2551 }
 0x16f   : > { %v2767_v0 = vsel %vm2639_vm1, %v2575_v49, %v2703_v59  ;;  %v2584_v4 = vadd.f32 %v4081_v18, %v2472_v51  ;;  %v1947_v5 = vpop.f32.mrb[4].mxu0  ;;  %v2769_v7 = vsel %vm2641_vm3, %v2577_v56, %v2705_v62  ;;  %v2585_v8 = vadd.f32 %v4081_v18, %v2473_v58  ;;  %v2093_v12 = vpop.f32.mrb[4].mxu1 }
 0x170   : > { %v3426_v39 = vpack.c.bf16 %v2767_v0, %v2766_v63  ;;  %vm2646_vm4 = vcmp.gt.f32.partialorder %v2582_v29, 0.0  ;;  %v1949_v13 = vpop.f32.mrb[5].mxu0  ;;  %v3427_v14 = vpack.c.bf16 %v2769_v7, %v2768_v1  ;;  %vm2647_vm5 = vcmp.gt.f32.partialorder %v2583_v3, 0.0  ;;  %v2095_v16 = vpop.f32.mrb[5].mxu1 }
 0x171   : > { %vm2648_vm6 = vcmp.gt.f32.partialorder %v2584_v4, 0.0  ;;  %v2710_v15 = vmul.f32 0.2, %v2582_v29  ;;  %v1951_v17 = vpop.f32.mrb[6].mxu0  ;;  %vm2649_vm7 = vcmp.gt.f32.partialorder %v2585_v8, 0.0  ;;  %v2478_v21 = vmul.f32 %v4055_v54, %v1947_v5  ;;  %v2097_v22 = vpop.f32.mrb[6].mxu1 }
 0x172   : > { %3022 = vst [vmem:[%s4090_s19] sm:$0xff] %v3426_v39  ;;  %v2711_v52 = vmul.f32 0.2, %v2583_v3  ;;  %v2712_v20 = vmul.f32 0.2, %v2584_v4  ;;  %3023 = vst [vmem:[%s4090_s19 + $0x8] sm:$0xff] %v3427_v14  ;;  %v2480_v26 = vmul.f32 %v4055_v54, %v2093_v12  ;;  %v2479_v27 = vmul.f32 %v4055_v54, %v1949_v13  ;;  %v1953_v60 = vpop.f32.mrb[7].mxu0 }
 0x173   : > { %v2713_v23 = vmul.f32 0.2, %v2585_v8  ;;  %v2774_v25 = vsel %vm2646_vm4, %v2582_v29, %v2710_v15  ;;  %v2099_v28 = vpop.f32.mrb[7].mxu1  ;;  %v2481_v33 = vmul.f32 %v4055_v54, %v2095_v16  ;;  %v2590_v32 = vadd.f32 %v4094_v6, %v2478_v21  ;;  %v4126_v15 = vpop.permute.xlu0 %2556 }
 0x174   : > { %v2775_v30 = vsel %vm2647_vm5, %v2583_v3, %v2711_v52  ;;  %v2776_v31 = vsel %vm2648_vm6, %v2584_v4, %v2712_v20  ;;  %v2591_v38 = vadd.f32 %v4094_v6, %v2479_v27  ;;  %v2592_v40 = vadd.f32 %v4094_v6, %v2480_v26 }
 0x175   : > { %v2777_v44 = vsel %vm2649_vm7, %v2585_v8, %v2713_v23  ;;  %v3430_v37 = vpack.c.bf16 %v2775_v30, %v2774_v25  ;;  %v2593_v42 = vadd.f32 %v4094_v6, %v2481_v33  ;;  %vm2654_vm8 = vcmp.gt.f32.partialorder %v2590_v32, 0.0 }
 0x176   : > { %v3431_v41 = vpack.c.bf16 %v2777_v44, %v2776_v31  ;;  %v2718_v43 = vmul.f32 0.2, %v2590_v32  ;;  %vm2655_vm9 = vcmp.gt.f32.partialorder %v2591_v38, 0.0  ;;  %vm2656_vm10 = vcmp.gt.f32.partialorder %v2592_v40, 0.0 }
 0x177   : > { %3026 = vst [vmem:[%s4090_s19 + $0x20] sm:$0xff] %v3430_v37  ;;  %v2719_v45 = vmul.f32 0.2, %v2591_v38  ;;  %v2720_v9 = vmul.f32 0.2, %v2592_v40  ;;  %vm2657_vm11 = vcmp.gt.f32.partialorder %v2593_v42, 0.0  ;;  %v2486_v49 = vmul.f32 %v4059_v34, %v1951_v17 }
 0x178   : > { %3027 = vst [vmem:[%s4090_s19 + $0x28] sm:$0xff] %v3431_v41  ;;  %v2721_v47 = vmul.f32 0.2, %v2593_v42  ;;  %v2782_v48 = vsel %vm2654_vm8, %v2590_v32, %v2718_v43  ;;  %v1957_v50 = vpop.f32.mrb[8].mxu0  ;;  %v2103_v51 = vpop.f32.mrb[8].mxu1  ;;  %v2488_v56 = vmul.f32 %v4059_v34, %v2097_v22  ;;  %v2487_v57 = vmul.f32 %v4059_v34, %v1953_v60 }
 0x179   : > { %v2783_v53 = vsel %vm2655_vm9, %v2591_v38, %v2719_v45  ;;  %v2784_v55 = vsel %vm2656_vm10, %v2592_v40, %v2720_v9  ;;  %v1959_v58 = vpop.f32.mrb[9].mxu0  ;;  %v2105_v59 = vpop.f32.mrb[9].mxu1  ;;  %v2489_v63 = vmul.f32 %v4059_v34, %v2099_v28  ;;  %v2598_v29 = vadd.f32 %v4112_v19, %v2486_v49 }
 0x17a   : > { %v2785_v61 = vsel %vm2657_vm11, %v2593_v42, %v2721_v47  ;;  %v3434_v62 = vpack.c.bf16 %v2783_v53, %v2782_v48  ;;  %v1961_v0 = vpop.f32.mrb[10].mxu0  ;;  %v2107_v1 = vpop.f32.mrb[10].mxu1  ;;  %v2599_v4 = vadd.f32 %v4112_v19, %v2487_v57  ;;  %v2600_v5 = vadd.f32 %v4112_v19, %v2488_v56 }
 0x17b   : > { %v3435_v3 = vpack.c.bf16 %v2785_v61, %v2784_v55  ;;  %v2494_v7 = vmul.f32 %v4061_v11, %v1957_v50  ;;  %v1963_v39 = vpop.f32.mrb[11].mxu0  ;;  %v2109_v8 = vpop.f32.mrb[11].mxu1  ;;  %v2601_v12 = vadd.f32 %v4112_v19, %v2489_v63  ;;  %vm2662_vm12 = vcmp.gt.f32.partialorder %v2598_v29, 0.0 }
 0x17c   : > { %3030 = vst [vmem:[%s4090_s19 + $0x40] sm:$0xff] %v3434_v62  ;;  %v2726_v13 = vmul.f32 0.2, %v2598_v29  ;;  %v2496_v14 = vmul.f32 %v4061_v11, %v2103_v51  ;;  %vm2663_vm13 = vcmp.gt.f32.partialorder %v2599_v4, 0.0  ;;  %vm2664_vm14 = vcmp.gt.f32.partialorder %v2600_v5, 0.0  ;;  %v4138_v45 = vpop.permute.xlu1 %2561 }
 0x17d   : > { %3031 = vst [vmem:[%s4090_s19 + $0x48] sm:$0xff] %v3435_v3  ;;  %v2727_v16 = vmul.f32 0.2, %v2599_v4  ;;  %v2728_v17 = vmul.f32 0.2, %v2600_v5  ;;  %vm2665_vm15 = vcmp.gt.f32.partialorder %v2601_v12, 0.0  ;;  %v2495_v21 = vmul.f32 %v4061_v11, %v1959_v58 }
 0x17e   : > { %v2729_v52 = vmul.f32 0.2, %v2601_v12  ;;  %v2790_v20 = vsel %vm2662_vm12, %v2598_v29, %v2726_v13  ;;  %v2497_v25 = vmul.f32 %v4061_v11, %v2105_v59  ;;  %v2606_v26 = vadd.f32 %v4126_v15, %v2494_v7  ;;  %v4152_v7 = vpop.permute.xlu0 %2566 }
 0x17f   : > { %v2791_v22 = vsel %vm2663_vm13, %v2599_v4, %v2727_v16  ;;  %v2792_v23 = vsel %vm2664_vm14, %v2600_v5, %v2728_v17  ;;  %v1967_v27 = vpop.f32.mrb[12].mxu0  ;;  %v2607_v30 = vadd.f32 %v4126_v15, %v2495_v21  ;;  %v2608_v31 = vadd.f32 %v4126_v15, %v2496_v14  ;;  %v2113_v33 = vpop.f32.mrb[12].mxu1 }
 0x180   : > { %v2793_v60 = vsel %vm2665_vm15, %v2601_v12, %v2729_v52  ;;  %v3438_v28 = vpack.c.bf16 %v2791_v22, %v2790_v20  ;;  %v1969_v32 = vpop.f32.mrb[13].mxu0  ;;  %v2609_v37 = vadd.f32 %v4126_v15, %v2497_v25  ;;  %vm2670_vm0 = vcmp.gt.f32.partialorder %v2606_v26, 0.0  ;;  %v2115_v40 = vpop.f32.mrb[13].mxu1 }
 0x181   : > { %v3439_v44 = vpack.c.bf16 %v2793_v60, %v2792_v23  ;;  %v2734_v38 = vmul.f32 0.2, %v2606_v26  ;;  %v4135_v41 = vpop.f32.mrb[14].mxu0  ;;  %vm2671_vm1 = vcmp.gt.f32.partialorder %v2607_v30, 0.0  ;;  %vm2672_vm2 = vcmp.gt.f32.partialorder %v2608_v31, 0.0  ;;  %v2117_v49 = vpop.f32.mrb[14].mxu1 }
 0x182   : > { %3034 = vst [vmem:[%s4090_s19 + $0x60] sm:$0xff] %v3438_v28  ;;  %v2735_v42 = vmul.f32 0.2, %v2607_v30  ;;  %v2736_v43 = vmul.f32 0.2, %v2608_v31  ;;  %vm2673_vm3 = vcmp.gt.f32.partialorder %v2609_v37, 0.0  ;;  %v2502_v48 = vmul.f32 %v4063_v35, %v1961_v0 }
 0x183   : > { %3035 = vst [vmem:[%s4090_s19 + $0x68] sm:$0xff] %v3439_v44  ;;  %v2737_v9 = vmul.f32 0.2, %v2609_v37  ;;  %v2798_v47 = vsel %vm2670_vm0, %v2606_v26, %v2734_v38  ;;  %v1973_v50 = vpop.f32.mrb[15].mxu0  ;;  %v2504_v55 = vmul.f32 %v4063_v35, %v2107_v1  ;;  %v2503_v56 = vmul.f32 %v4063_v35, %v1963_v39  ;;  %v2119_v57 = vpop.f32.mrb[15].mxu1 }
 0x184   : > { %v2799_v51 = vsel %vm2671_vm1, %v2607_v30, %v2735_v42  ;;  %v2800_v53 = vsel %vm2672_vm2, %v2608_v31, %v2736_v43  ;;  %v2505_v61 = vmul.f32 %v4063_v35, %v2109_v8  ;;  %v2614_v62 = vadd.f32 %v4138_v45, %v2502_v48  ;;  %v4162_v31 = vpop.permute.xlu1 %2571 }
 0x185   : > { %v2801_v58 = vsel %vm2673_vm3, %v2609_v37, %v2737_v9  ;;  %v3442_v59 = vpack.c.bf16 %v2799_v51, %v2798_v47  ;;  %v2615_v29 = vadd.f32 %v4138_v45, %v2503_v56  ;;  %v2616_v0 = vadd.f32 %v4138_v45, %v2504_v55 }
 0x186   : > { %v3443_v63 = vpack.c.bf16 %v2801_v58, %v2800_v53  ;;  %v2510_v3 = vmul.f32 %v4065_v24, %v1967_v27  ;;  %v2617_v1 = vadd.f32 %v4138_v45, %v2505_v61  ;;  %vm2678_vm4 = vcmp.gt.f32.partialorder %v2614_v62, 0.0 }
 0x187   : > { %3038 = vst [vmem:[%s4090_s19 + $0x80] sm:$0xff] %v3442_v59  ;;  %v2742_v4 = vmul.f32 0.2, %v2614_v62  ;;  %v2512_v5 = vmul.f32 %v4065_v24, %v2113_v33  ;;  %vm2679_vm5 = vcmp.gt.f32.partialorder %v2615_v29, 0.0  ;;  %vm2680_vm6 = vcmp.gt.f32.partialorder %v2616_v0, 0.0 }
 0x188   : > { %3039 = vst [vmem:[%s4090_s19 + $0x88] sm:$0xff] %v3443_v63  ;;  %v2743_v39 = vmul.f32 0.2, %v2615_v29  ;;  %v2744_v8 = vmul.f32 0.2, %v2616_v0  ;;  %vm2681_vm7 = vcmp.gt.f32.partialorder %v2617_v1, 0.0  ;;  %v2511_v14 = vmul.f32 %v4065_v24, %v1969_v32 }
 0x189   : > { %v2745_v12 = vmul.f32 0.2, %v2617_v1  ;;  %v2806_v13 = vsel %vm2678_vm4, %v2614_v62, %v2742_v4  ;;  %v2513_v52 = vmul.f32 %v4065_v24, %v2115_v40  ;;  %v2622_v20 = vadd.f32 %v4152_v7, %v2510_v3 }
 0x18a   : > { %v2807_v16 = vsel %vm2679_vm5, %v2615_v29, %v2743_v39  ;;  %v2808_v17 = vsel %vm2680_vm6, %v2616_v0, %v2744_v8  ;;  %v2623_v23 = vadd.f32 %v4152_v7, %v2511_v14  ;;  %v2624_v25 = vadd.f32 %v4152_v7, %v2512_v5 }
 0x18b   : > { %v2809_v21 = vsel %vm2681_vm7, %v2617_v1, %v2745_v12  ;;  %v3446_v22 = vpack.c.bf16 %v2807_v16, %v2806_v13  ;;  %v2625_v27 = vadd.f32 %v4152_v7, %v2513_v52  ;;  %vm2686_vm8 = vcmp.gt.f32.partialorder %v2622_v20, 0.0 }
 0x18c   : > { %v3447_v26 = vpack.c.bf16 %v2809_v21, %v2808_v17  ;;  %v2750_v60 = vmul.f32 0.2, %v2622_v20  ;;  %vm2687_vm9 = vcmp.gt.f32.partialorder %v2623_v23, 0.0  ;;  %vm2688_vm10 = vcmp.gt.f32.partialorder %v2624_v25, 0.0 }
 0x18d   : > { %3042 = vst [vmem:[%s4090_s19 + $0xa0] sm:$0xff] %v3446_v22  ;;  %v2751_v28 = vmul.f32 0.2, %v2623_v23  ;;  %v2752_v30 = vmul.f32 0.2, %v2624_v25  ;;  %vm2689_vm11 = vcmp.gt.f32.partialorder %v2625_v27, 0.0  ;;  %v2518_v44 = vmul.f32 %v4067_v36, %v4135_v41 }
 0x18e   : > { %3043 = vst [vmem:[%s4090_s19 + $0xa8] sm:$0xff] %v3447_v26  ;;  %v2753_v33 = vmul.f32 0.2, %v2625_v27  ;;  %v2814_v32 = vsel %vm2686_vm8, %v2622_v20, %v2750_v60  ;;  %v2520_v40 = vmul.f32 %v4067_v36, %v2117_v49  ;;  %v2519_v42 = vmul.f32 %v4067_v36, %v1973_v50 }
 0x18f   : > { %v2815_v37 = vsel %vm2687_vm9, %v2623_v23, %v2751_v28  ;;  %v2816_v38 = vsel %vm2688_vm10, %v2624_v25, %v2752_v30  ;;  %v2521_v47 = vmul.f32 %v4067_v36, %v2119_v57  ;;  %v2630_v48 = vadd.f32 %v4162_v31, %v2518_v44 }
 0x190   : > { %v2817_v43 = vsel %vm2689_vm11, %v2625_v27, %v2753_v33  ;;  %v3450_v9 = vpack.c.bf16 %v2815_v37, %v2814_v32  ;;  %v2631_v53 = vadd.f32 %v4162_v31, %v2519_v42  ;;  %v2632_v55 = vadd.f32 %v4162_v31, %v2520_v40 }
 0x191   : > { %v3451_v51 = vpack.c.bf16 %v2817_v43, %v2816_v38  ;;  %v2633_v41 = vadd.f32 %v4162_v31, %v2521_v47  ;;  %vm2694_vm12 = vcmp.gt.f32.partialorder %v2630_v48, 0.0  ;;  %v2758_v49 = vmul.f32 0.2, %v2630_v48 }
 0x192   : > { %3046 = vst [vmem:[%s4090_s19 + $0xc0] sm:$0xff] %v3450_v9  ;;  %vm2695_vm13 = vcmp.gt.f32.partialorder %v2631_v53, 0.0  ;;  %vm2696_vm14 = vcmp.gt.f32.partialorder %v2632_v55, 0.0  ;;  %v2759_v50 = vmul.f32 0.2, %v2631_v53 }
 0x193   : > { %3047 = vst [vmem:[%s4090_s19 + $0xc8] sm:$0xff] %v3451_v51  ;;  %v2760_v56 = vmul.f32 0.2, %v2632_v55  ;;  %vm2697_vm15 = vcmp.gt.f32.partialorder %v2633_v41, 0.0  ;;  %v2761_v57 = vmul.f32 0.2, %v2633_v41  ;;  %v2822_v58 = vsel %vm2694_vm12, %v2630_v48, %v2758_v49 }
 0x194   : > { %v2823_v59 = vsel %vm2695_vm13, %v2631_v53, %v2759_v50 }
 0x195   : > { %v2824_v61 = vsel %vm2696_vm14, %v2632_v55, %v2760_v56  ;;  %v2825_v62 = vsel %vm2697_vm15, %v2633_v41, %v2761_v57  ;;  %v3454_v63 = vpack.c.bf16 %v2823_v59, %v2822_v58 }
 0x196   : > { %v3455_v29 = vpack.c.bf16 %v2825_v62, %v2824_v61 }
 0x197   : > { %3050 = vst [vmem:[%s4090_s19 + $0xe0] sm:$0xff] %v3454_v63 }
 0x198   : > { %3051 = vst [vmem:[%s4090_s19 + $0xe8] sm:$0xff] %v3455_v29 }
 0x1e7   : > { %v2229_v0 = vpop.f32.mrb[16].mxu0  ;;  %v2375_v1 = vpop.f32.mrb[16].mxu1 }
 0x1e8   : > { %v2466_v3 = vmul.f32 %v4053_v46, %v2229_v0  ;;  %v2231_v4 = vpop.f32.mrb[17].mxu0  ;;  %v2468_v5 = vmul.f32 %v4053_v46, %v2375_v1  ;;  %v2377_v8 = vpop.f32.mrb[17].mxu1 }
 0x1e9   : > { %v2467_v39 = vmul.f32 %v4053_v46, %v2231_v4  ;;  %v2233_v12 = vpop.f32.mrb[18].mxu0  ;;  %v2469_v14 = vmul.f32 %v4053_v46, %v2377_v8  ;;  %v2379_v17 = vpop.f32.mrb[18].mxu1 }
 0x1ea   : > { %v2578_v13 = vadd.f32 %v4069_v10, %v2466_v3  ;;  %v2474_v16 = vmul.f32 %v4057_v2, %v2233_v12  ;;  %v2235_v52 = vpop.f32.mrb[19].mxu0  ;;  %v2580_v20 = vadd.f32 %v4069_v10, %v2468_v5  ;;  %v2476_v22 = vmul.f32 %v4057_v2, %v2379_v17  ;;  %v2381_v25 = vpop.f32.mrb[19].mxu1 }
 0x1eb   : > { %v2579_v21 = vadd.f32 %v4069_v10, %v2467_v39  ;;  %v2475_v23 = vmul.f32 %v4057_v2, %v2235_v52  ;;  %v2581_v27 = vadd.f32 %v4069_v10, %v2469_v14  ;;  %v2477_v9 = vmul.f32 %v4057_v2, %v2381_v25 }
 0x1ec   : > { %vm2642_vm0 = vcmp.gt.f32.partialorder %v2578_v13, 0.0  ;;  %v2706_v26 = vmul.f32 0.2, %v2578_v13  ;;  %v2586_v60 = vadd.f32 %v4081_v18, %v2474_v16  ;;  %vm2644_vm1 = vcmp.gt.f32.partialorder %v2580_v20, 0.0 }
 0x1ed   : > { %v2708_v46 = vmul.f32 0.2, %v2580_v20  ;;  %vm2643_vm2 = vcmp.gt.f32.partialorder %v2579_v21, 0.0  ;;  %v2707_v28 = vmul.f32 0.2, %v2579_v21  ;;  %vm2645_vm3 = vcmp.gt.f32.partialorder %v2581_v27, 0.0 }
 0x1ee   : > { %v2770_v30 = vsel %vm2642_vm0, %v2578_v13, %v2706_v26  ;;  %v2709_v33 = vmul.f32 0.2, %v2581_v27  ;;  %vm2650_vm4 = vcmp.gt.f32.partialorder %v2586_v60, 0.0  ;;  %v2714_v37 = vmul.f32 0.2, %v2586_v60 }
 0x1ef   : > { %v2772_v32 = vsel %vm2644_vm1, %v2580_v20, %v2708_v46  ;;  %v2771_v44 = vsel %vm2643_vm2, %v2579_v21, %v2707_v28  ;;  %v2588_v38 = vadd.f32 %v4081_v18, %v2476_v22  ;;  %v2239_v40 = vpop.f32.mrb[20].mxu0  ;;  %v2587_v10 = vadd.f32 %v4081_v18, %v2475_v23  ;;  %v2385_v47 = vpop.f32.mrb[20].mxu1 }
 0x1f0   : > { %v3428_v42 = vpack.c.bf16 %v2771_v44, %v2770_v30  ;;  %v2773_v43 = vsel %vm2645_vm3, %v2581_v27, %v2709_v33  ;;  %v2241_v48 = vpop.f32.mrb[21].mxu0  ;;  %v2778_v53 = vsel %vm2650_vm4, %v2586_v60, %v2714_v37  ;;  %v2387_v41 = vpop.f32.mrb[21].mxu1  ;;  %v2589_v56 = vadd.f32 %v4081_v18, %v2477_v9 }
 0x1f1   : > { %v3429_v51 = vpack.c.bf16 %v2773_v43, %v2772_v32  ;;  %vm2652_vm5 = vcmp.gt.f32.partialorder %v2588_v38, 0.0  ;;  %v2716_v55 = vmul.f32 0.2, %v2588_v38  ;;  %v2243_v49 = vpop.f32.mrb[22].mxu0  ;;  %vm2651_vm6 = vcmp.gt.f32.partialorder %v2587_v10, 0.0  ;;  %v2389_v58 = vpop.f32.mrb[22].mxu1 }
 0x1f2   : > { %3024 = vst [vmem:[%s4090_s19 + $0x10] sm:$0xff] %v3428_v42  ;;  %v2715_v50 = vmul.f32 0.2, %v2587_v10  ;;  %v2482_v57 = vmul.f32 %v4055_v54, %v2239_v40  ;;  %v2245_v59 = vpop.f32.mrb[23].mxu0  ;;  %v2484_v61 = vmul.f32 %v4055_v54, %v2385_v47  ;;  %v2483_v62 = vmul.f32 %v4055_v54, %v2241_v48  ;;  %v2391_v29 = vpop.f32.mrb[23].mxu1 }
 0x1f3   : > { %3025 = vst [vmem:[%s4090_s19 + $0x18] sm:$0xff] %v3429_v51  ;;  %v2780_v2 = vsel %vm2652_vm5, %v2588_v38, %v2716_v55  ;;  %v2485_v63 = vmul.f32 %v4055_v54, %v2387_v41  ;;  %vm2653_vm7 = vcmp.gt.f32.partialorder %v2589_v56, 0.0  ;;  %v2717_v3 = vmul.f32 0.2, %v2589_v56 }
 0x1f4   : > { %v2779_v0 = vsel %vm2651_vm6, %v2587_v10, %v2715_v50  ;;  %v2594_v1 = vadd.f32 %v4094_v6, %v2482_v57  ;;  %v2596_v4 = vadd.f32 %v4094_v6, %v2484_v61  ;;  %v2595_v5 = vadd.f32 %v4094_v6, %v2483_v62 }
 0x1f5   : > { %v3432_v18 = vpack.c.bf16 %v2779_v0, %v2778_v53  ;;  %v2597_v39 = vadd.f32 %v4094_v6, %v2485_v63  ;;  %v2781_v8 = vsel %vm2653_vm7, %v2589_v56, %v2717_v3  ;;  %v2490_v13 = vmul.f32 %v4059_v34, %v2243_v49 }
 0x1f6   : > { %vm2658_vm8 = vcmp.gt.f32.partialorder %v2594_v1, 0.0  ;;  %v2722_v12 = vmul.f32 0.2, %v2594_v1  ;;  %v3433_v54 = vpack.c.bf16 %v2781_v8, %v2780_v2  ;;  %vm2660_vm9 = vcmp.gt.f32.partialorder %v2596_v4, 0.0 }
 0x1f7   : > { %3028 = vst [vmem:[%s4090_s19 + $0x30] sm:$0xff] %v3432_v18  ;;  %v2724_v14 = vmul.f32 0.2, %v2596_v4  ;;  %vm2659_vm10 = vcmp.gt.f32.partialorder %v2595_v5, 0.0  ;;  %v2249_v16 = vpop.f32.mrb[24].mxu0  ;;  %vm2661_vm11 = vcmp.gt.f32.partialorder %v2597_v39, 0.0  ;;  %v2602_v6 = vadd.f32 %v4112_v19, %v2490_v13 }
 0x1f8   : > { %v2786_v17 = vsel %vm2658_vm8, %v2594_v1, %v2722_v12  ;;  %v2723_v52 = vmul.f32 0.2, %v2595_v5  ;;  %v2725_v20 = vmul.f32 0.2, %v2597_v39  ;;  %v2395_v21 = vpop.f32.mrb[24].mxu1  ;;  %3029 = vst [vmem:[%s4090_s19 + $0x38] sm:$0xff] %v3433_v54  ;;  %v2492_v23 = vmul.f32 %v4059_v34, %v2389_v58 }
 0x1f9   : > { %v2788_v22 = vsel %vm2660_vm9, %v2596_v4, %v2724_v14  ;;  %v2491_v25 = vmul.f32 %v4059_v34, %v2245_v59  ;;  %v2251_v26 = vpop.f32.mrb[25].mxu0  ;;  %v2397_v27 = vpop.f32.mrb[25].mxu1  ;;  %v2493_v28 = vmul.f32 %v4059_v34, %v2391_v29  ;;  %v2498_v30 = vmul.f32 %v4061_v11, %v2249_v16 }
 0x1fa   : > { %v2787_v60 = vsel %vm2659_vm10, %v2595_v5, %v2723_v52  ;;  %v2789_v46 = vsel %vm2661_vm11, %v2597_v39, %v2725_v20  ;;  %v2253_v33 = vpop.f32.mrb[26].mxu0  ;;  %v2399_v32 = vpop.f32.mrb[26].mxu1  ;;  %vm2666_vm12 = vcmp.gt.f32.partialorder %v2602_v6, 0.0  ;;  %v2730_v38 = vmul.f32 0.2, %v2602_v6 }
 0x1fb   : > { %v3436_v44 = vpack.c.bf16 %v2787_v60, %v2786_v17  ;;  %v3437_v37 = vpack.c.bf16 %v2789_v46, %v2788_v22  ;;  %v2255_v40 = vpop.f32.mrb[27].mxu0  ;;  %v2401_v42 = vpop.f32.mrb[27].mxu1  ;;  %v2604_v43 = vadd.f32 %v4112_v19, %v2492_v23  ;;  %v2603_v10 = vadd.f32 %v4112_v19, %v2491_v25 }
 0x1fc   : > { %v2605_v9 = vadd.f32 %v4112_v19, %v2493_v28  ;;  %v2610_v47 = vadd.f32 %v4126_v15, %v2498_v30  ;;  %v2794_v34 = vsel %vm2666_vm12, %v2602_v6, %v2730_v38  ;;  %v2500_v48 = vmul.f32 %v4061_v11, %v2395_v21 }
 0x1fd   : > { %3032 = vst [vmem:[%s4090_s19 + $0x50] sm:$0xff] %v3436_v44  ;;  %3033 = vst [vmem:[%s4090_s19 + $0x58] sm:$0xff] %v3437_v37  ;;  %v2499_v51 = vmul.f32 %v4061_v11, %v2251_v26  ;;  %v2501_v53 = vmul.f32 %v4061_v11, %v2397_v27  ;;  %vm2668_vm13 = vcmp.gt.f32.partialorder %v2604_v43, 0.0  ;;  %v2732_v55 = vmul.f32 0.2, %v2604_v43 }
 0x1fe   : > { %vm2667_vm14 = vcmp.gt.f32.partialorder %v2603_v10, 0.0  ;;  %v2731_v41 = vmul.f32 0.2, %v2603_v10  ;;  %vm2669_vm15 = vcmp.gt.f32.partialorder %v2605_v9, 0.0  ;;  %v2733_v49 = vmul.f32 0.2, %v2605_v9 }
 0x1ff   : > { %vm2674_vm0 = vcmp.gt.f32.partialorder %v2610_v47, 0.0  ;;  %v2738_v50 = vmul.f32 0.2, %v2610_v47  ;;  %v2796_v19 = vsel %vm2668_vm13, %v2604_v43, %v2732_v55  ;;  %v2612_v57 = vadd.f32 %v4126_v15, %v2500_v48  ;;  %v2259_v59 = vpop.f32.mrb[28].mxu0  ;;  %v2405_v2 = vpop.f32.mrb[28].mxu1 }
 0x200   : > { %v2795_v56 = vsel %vm2667_vm14, %v2603_v10, %v2731_v41  ;;  %v2611_v58 = vadd.f32 %v4126_v15, %v2499_v51  ;;  %v2797_v62 = vsel %vm2669_vm15, %v2605_v9, %v2733_v49  ;;  %v2613_v63 = vadd.f32 %v4126_v15, %v2501_v53  ;;  %v2261_v29 = vpop.f32.mrb[29].mxu0  ;;  %v2407_v0 = vpop.f32.mrb[29].mxu1 }
 0x201   : > { %v3440_v61 = vpack.c.bf16 %v2795_v56, %v2794_v34  ;;  %v2802_v11 = vsel %vm2674_vm0, %v2610_v47, %v2738_v50  ;;  %v3441_v3 = vpack.c.bf16 %v2797_v62, %v2796_v19  ;;  %vm2676_vm1 = vcmp.gt.f32.partialorder %v2612_v57, 0.0  ;;  %v2263_v18 = vpop.f32.mrb[30].mxu0  ;;  %v2409_v4 = vpop.f32.mrb[30].mxu1 }
 0x202   : > { %v2740_v1 = vmul.f32 0.2, %v2612_v57  ;;  %vm2675_vm2 = vcmp.gt.f32.partialorder %v2611_v58, 0.0  ;;  %v2739_v5 = vmul.f32 0.2, %v2611_v58  ;;  %vm2677_vm3 = vcmp.gt.f32.partialorder %v2613_v63, 0.0 }
 0x203   : > { %3036 = vst [vmem:[%s4090_s19 + $0x70] sm:$0xff] %v3440_v61  ;;  %v2741_v39 = vmul.f32 0.2, %v2613_v63  ;;  %v2506_v8 = vmul.f32 %v4063_v35, %v2253_v33  ;;  %v2265_v12 = vpop.f32.mrb[31].mxu0  ;;  %3037 = vst [vmem:[%s4090_s19 + $0x78] sm:$0xff] %v3441_v3  ;;  %v2508_v54 = vmul.f32 %v4063_v35, %v2399_v32  ;;  %v2507_v15 = vmul.f32 %v4063_v35, %v2255_v40  ;;  %v2411_v16 = vpop.f32.mrb[31].mxu1 }
 0x204   : > { %v2804_v13 = vsel %vm2676_vm1, %v2612_v57, %v2740_v1  ;;  %v2509_v14 = vmul.f32 %v4063_v35, %v2401_v42  ;;  %v2803_v17 = vsel %vm2675_vm2, %v2611_v58, %v2739_v5  ;;  %v2514_v21 = vmul.f32 %v4065_v24, %v2259_v59 }
 0x205   : > { %v2805_v52 = vsel %vm2677_vm3, %v2613_v63, %v2741_v39  ;;  %v2618_v20 = vadd.f32 %v4138_v45, %v2506_v8  ;;  %v3444_v22 = vpack.c.bf16 %v2803_v17, %v2802_v11  ;;  %v2620_v23 = vadd.f32 %v4138_v45, %v2508_v54 }
 0x206   : > { %v3445_v6 = vpack.c.bf16 %v2805_v52, %v2804_v13  ;;  %v2619_v25 = vadd.f32 %v4138_v45, %v2507_v15  ;;  %v2621_v27 = vadd.f32 %v4138_v45, %v2509_v14  ;;  %v2626_v60 = vadd.f32 %v4152_v7, %v2514_v21 }
 0x207   : > { %vm2682_vm4 = vcmp.gt.f32.partialorder %v2618_v20, 0.0  ;;  %v2746_v26 = vmul.f32 0.2, %v2618_v20  ;;  %3040 = vst [vmem:[%s4090_s19 + $0x90] sm:$0xff] %v3444_v22  ;;  %vm2684_vm5 = vcmp.gt.f32.partialorder %v2620_v23, 0.0  ;;  %v2516_v37 = vmul.f32 %v4065_v24, %v2405_v2 }
 0x208   : > { %3041 = vst [vmem:[%s4090_s19 + $0x98] sm:$0xff] %v3445_v6  ;;  %v2748_v35 = vmul.f32 0.2, %v2620_v23  ;;  %vm2683_vm6 = vcmp.gt.f32.partialorder %v2619_v25, 0.0  ;;  %v2747_v46 = vmul.f32 0.2, %v2619_v25  ;;  %v2515_v40 = vmul.f32 %v4065_v24, %v2261_v29 }
 0x209   : > { %v2810_v28 = vsel %vm2682_vm4, %v2618_v20, %v2746_v26  ;;  %vm2685_vm7 = vcmp.gt.f32.partialorder %v2621_v27, 0.0  ;;  %v2749_v30 = vmul.f32 0.2, %v2621_v27  ;;  %vm2690_vm8 = vcmp.gt.f32.partialorder %v2626_v60, 0.0 }
 0x20a   : > { %v2812_v33 = vsel %vm2684_vm5, %v2620_v23, %v2748_v35  ;;  %v2811_v32 = vsel %vm2683_vm6, %v2619_v25, %v2747_v46  ;;  %v2754_v44 = vmul.f32 0.2, %v2626_v60  ;;  %v2517_v42 = vmul.f32 %v4065_v24, %v2407_v0 }
 0x20b   : > { %v3448_v45 = vpack.c.bf16 %v2811_v32, %v2810_v28  ;;  %v2813_v38 = vsel %vm2685_vm7, %v2621_v27, %v2749_v30  ;;  %v2628_v9 = vadd.f32 %v4152_v7, %v2516_v37  ;;  %v2522_v47 = vmul.f32 %v4067_v36, %v2263_v18 }
 0x20c   : > { %v3449_v43 = vpack.c.bf16 %v2813_v38, %v2812_v33  ;;  %v2818_v10 = vsel %vm2690_vm8, %v2626_v60, %v2754_v44  ;;  %v2627_v34 = vadd.f32 %v4152_v7, %v2515_v40  ;;  %v2629_v48 = vadd.f32 %v4152_v7, %v2517_v42 }
 0x20d   : > { %3044 = vst [vmem:[%s4090_s19 + $0xb0] sm:$0xff] %v3448_v45  ;;  %v2524_v51 = vmul.f32 %v4067_v36, %v2409_v4  ;;  %v2523_v53 = vmul.f32 %v4067_v36, %v2265_v12  ;;  %vm2692_vm9 = vcmp.gt.f32.partialorder %v2628_v9, 0.0  ;;  %v2756_v55 = vmul.f32 0.2, %v2628_v9 }
 0x20e   : > { %3045 = vst [vmem:[%s4090_s19 + $0xb8] sm:$0xff] %v3449_v43  ;;  %v2634_v24 = vadd.f32 %v4162_v31, %v2522_v47  ;;  %v2525_v41 = vmul.f32 %v4067_v36, %v2411_v16  ;;  %vm2691_vm10 = vcmp.gt.f32.partialorder %v2627_v34, 0.0  ;;  %v2755_v49 = vmul.f32 0.2, %v2627_v34 }
 0x20f   : > { %vm2693_vm11 = vcmp.gt.f32.partialorder %v2629_v48, 0.0  ;;  %v2757_v50 = vmul.f32 0.2, %v2629_v48  ;;  %v2820_v19 = vsel %vm2692_vm9, %v2628_v9, %v2756_v55  ;;  %v2636_v56 = vadd.f32 %v4162_v31, %v2524_v51 }
 0x210   : > { %vm2698_vm12 = vcmp.gt.f32.partialorder %v2634_v24, 0.0  ;;  %v2762_v7 = vmul.f32 0.2, %v2634_v24  ;;  %v2819_v57 = vsel %vm2691_vm10, %v2627_v34, %v2755_v49  ;;  %v2635_v59 = vadd.f32 %v4162_v31, %v2523_v53 }
 0x211   : > { %v2821_v58 = vsel %vm2693_vm11, %v2629_v48, %v2757_v50  ;;  %v2637_v2 = vadd.f32 %v4162_v31, %v2525_v41  ;;  %v3452_v61 = vpack.c.bf16 %v2819_v57, %v2818_v10  ;;  %vm2700_vm13 = vcmp.gt.f32.partialorder %v2636_v56, 0.0 }
 0x212   : > { %v3453_v36 = vpack.c.bf16 %v2821_v58, %v2820_v19  ;;  %v2826_v62 = vsel %vm2698_vm12, %v2634_v24, %v2762_v7  ;;  %v2764_v11 = vmul.f32 0.2, %v2636_v56  ;;  %vm2699_vm14 = vcmp.gt.f32.partialorder %v2635_v59, 0.0 }
 0x213   : > { %v2763_v63 = vmul.f32 0.2, %v2635_v59  ;;  %vm2701_vm15 = vcmp.gt.f32.partialorder %v2637_v2, 0.0  ;;  %3048 = vst [vmem:[%s4090_s19 + $0xd0] sm:$0xff] %v3452_v61  ;;  %v2765_v29 = vmul.f32 0.2, %v2637_v2 }
 0x214   : > { %3049 = vst [vmem:[%s4090_s19 + $0xd8] sm:$0xff] %v3453_v36  ;;  %v2828_v0 = vsel %vm2700_vm13, %v2636_v56, %v2764_v11 }
 0x215   : > { %v2827_v3 = vsel %vm2699_vm14, %v2635_v59, %v2763_v63  ;;  %v2829_v18 = vsel %vm2701_vm15, %v2637_v2, %v2765_v29 }
 0x216   : > { %v3456_v1 = vpack.c.bf16 %v2827_v3, %v2826_v62  ;;  %v3457_v4 = vpack.c.bf16 %v2829_v18, %v2828_v0 }
 0x218   : > { %3052 = vst [vmem:[%s4090_s19 + $0xf0] sm:$0xff] %v3456_v1  ;;  %3053 = vst [vmem:[%s4090_s19 + $0xf8] sm:$0xff] %v3457_v4 }
 0x219 PF: > { %s14_s15 = sadd.s32 1, %s3564_s15  }
 0x21a   : > { %p11_p4 = scmp.ge.s32.totalorder %s14_s15, 4  }
 0x21c   :  { %13 = sbr.rel (!%p11_p4) target bundleno = 1 (0x1), region = 66 }

// kernel: discriminator_x_forward.5
= control target key start
LH: loop header
LB: loop body
LE: loop exit
PB: predicated region body
PF: predicated region fallthrough
CT: control target
= control target key end

     0   :  { %s3015_s26 = smov 0   ;;  %s3673_s0 = inlined_call_operand.vmem [shape: bf16[2,1024,256], index: 0, kind: input, shape index: {}]   ;;  %s3674_s1 = inlined_call_operand.vmem [shape: bf16[128,1024], index: 1, kind: input, shape index: {}]   ;;  %s3675_s2 = inlined_call_operand.vmem [shape: f32[128,1], index: 2, kind: input, shape index: {}]   ;;  %s3676_s3 = inlined_call_operand.vmem [shape: f32[128,1], index: 3, kind: input, shape index: {}]   ;;  %s3677_s4 = inlined_call_operand.vmem [shape: f32[128,256], index: 4, kind: input, shape index: {}]   ;;  %s3678_s5 = inlined_call_operand.<no memory space> [shape: f32[1], index: 5, kind: input, shape index: {}]   ;;  %s3679_s6 = inlined_call_operand.vmem [shape: f32[2,1,1], index: 6, kind: output, shape index: {0}]   ;;  %s3680_s7 = inlined_call_operand.vmem [shape: f32[2,1,1], index: 7, kind: output, shape index: {1}]  }
   0x1   :  { %13 = sst [smem:[#allocation2]] %s3678_s5 }
   0x2 LB: > { %s2458_s27 = sadd.s32 4294967295, %s2969_s26   ;;  %p2462_p0 = scmp.ge.s32.totalorder %s2969_s26, 1  ;;  %s2969_s26 = sphi %s3015_s26, %s19_s26  }
   0x3   : > { %p241_p1 = scmp.lt.s32.totalorder %s2969_s26, 3 }
   0x5   : > { %p242_p2 = pnand %p2462_p0, %p241_p1 }
   0x6   : > { %p274_p3 = scmp.lt.s32.totalorder (!%p242_p2), %s2458_s27, 1  ;;  %v3026_v0 = vld [vmem:[%s3674_s1] sm:$0xff] (!%p242_p2)  ;;  %v3036_v2 = vld [vmem:[%s3674_s1 + $0x10] sm:$0xff] (!%p242_p2)  ;;  %v2971_v39 = vmov (!%p242_p2), 0   ;;  %s2374_s25 = sld [smem:[#allocation2]] (!%p242_p2) }
   0x7   : > { %245 = sbr.rel (%p242_p2) target bundleno = 618 (0x26a), region = 44  ;;  %v3031_v1 = vld [vmem:[%s3674_s1 + $0x20] sm:$0xff] (!%p242_p2)  ;;  %v3045_v5 = vld [vmem:[%s3674_s1 + $0x30] sm:$0xff] (!%p242_p2)  ;;  %2765 = vset.pattern.permute.xlu0 (!%p242_p2), %v2971_v39  ;;  %2766 = vset.pattern.permute.xlu1 (!%p242_p2), %v2971_v39 }
   0x8   : > { %v2465_v3 = vcombine.low (!%p242_p2), %v3026_v0, %v3031_v1  ;;  %v2466_v4 = vcombine.high (!%p242_p2), %v3026_v0, %v3031_v1  ;;  %v2469_v6 = vcombine.low (!%p242_p2), %v3036_v2, %v3045_v5  ;;  %v2470_v7 = vcombine.high (!%p242_p2), %v3036_v2, %v3045_v5  ;;  %v301_v0 = vld [vmem:[%s3674_s1 + $0x80] sm:$0xff] (!%p242_p2)  ;;  %v303_v2 = vld [vmem:[%s3674_s1 + $0x90] sm:$0xff] (!%p242_p2) }
   0x9   : > { %v305_v1 = vld [vmem:[%s3674_s1 + $0xa0] sm:$0xff] (!%p242_p2) }
   0xa   : > { %1469 = vmatprep.mubr.bf16.mxu1 (!%p242_p2), %v2466_v4  ;;  %1695 = vmatprep.mubr.bf16.mxu0 (!%p242_p2), %v2470_v7 }
   0xe   : > { %s3682_s27 = smov (!%p274_p3, %s2458_s27), 1 }
   0xf   : > { %s2659_s12 = sshll.u32 %s3682_s27, 10  ;;  %s284_s5 = scalar_lea.vmem %s3680_s7, %s3682_s27 }
  0x10   : > { %s3057_s15 = scalar_lea.vmem %s3673_s0, %s2659_s12  ;;  %s281_s9 = scalar_lea.vmem %s3679_s6, %s3682_s27 }
  0x11   : > { %v2767_v8 = vld [vmem:[%s3057_s15 + $0x4] ss:$8 sps:$4 sm:$0xff]   ;;  %v2771_v10 = vld [vmem:[%s3057_s15] ss:$8 sps:$4 sm:$0xff]   ;;  %v2773_v12 = vld [vmem:[%s3057_s15 + $0x14] ss:$8 sps:$4 sm:$0xff]  }
  0x12   : > { %v2769_v9 = vld [vmem:[%s3057_s15 + $0x204] ss:$8 sps:$4 sm:$0xff]   ;;  %1437 = vmatprep.subr.bf16.mxu1 %v2767_v8  ;;  %v2772_v11 = vld [vmem:[%s3057_s15 + $0x200] ss:$8 sps:$4 sm:$0xff]   ;;  %v2775_v13 = vld [vmem:[%s3057_s15 + $0x214] ss:$8 sps:$4 sm:$0xff]  }
  0x13   : > { %1663 = vmatprep.subr.bf16.mxu0 %v2769_v9  ;;  %1438 = vmatpush1.bf16.msra.mxu1 %v2771_v10  ;;  %v2777_v14 = vld [vmem:[%s3057_s15 + $0x10] ss:$8 sps:$4 sm:$0xff]   ;;  %v2779_v16 = vld [vmem:[%s3057_s15 + $0x24] ss:$8 sps:$4 sm:$0xff]   ;;  %v2783_v18 = vld [vmem:[%s3057_s15 + $0x20] ss:$8 sps:$4 sm:$0xff]  }
  0x14   : > { %1664 = vmatpush1.bf16.msra.mxu0 %v2772_v11  ;;  %1439 = vmatprep.subr.bf16.mxu1 %v2773_v12  ;;  %v2778_v15 = vld [vmem:[%s3057_s15 + $0x210] ss:$8 sps:$4 sm:$0xff]   ;;  %v2781_v17 = vld [vmem:[%s3057_s15 + $0x224] ss:$8 sps:$4 sm:$0xff]   ;;  %v2784_v19 = vld [vmem:[%s3057_s15 + $0x220] ss:$8 sps:$4 sm:$0xff]  }
  0x15   : > { %1665 = vmatprep.subr.bf16.mxu0 %v2775_v13  ;;  %v2785_v20 = vld [vmem:[%s3057_s15 + $0x34] ss:$8 sps:$4 sm:$0xff]   ;;  %v2789_v22 = vld [vmem:[%s3057_s15 + $0x30] ss:$8 sps:$4 sm:$0xff]   ;;  %v2791_v24 = vld [vmem:[%s3057_s15 + $0x44] ss:$8 sps:$4 sm:$0xff]  }
  0x16   : > { %v2787_v21 = vld [vmem:[%s3057_s15 + $0x234] ss:$8 sps:$4 sm:$0xff]   ;;  %v2790_v23 = vld [vmem:[%s3057_s15 + $0x230] ss:$8 sps:$4 sm:$0xff]   ;;  %v2793_v25 = vld [vmem:[%s3057_s15 + $0x244] ss:$8 sps:$4 sm:$0xff]  }
  0x17   : > { %1440 = vmatpush1.bf16.msra.mxu1 %v2777_v14  ;;  %v2795_v26 = vld [vmem:[%s3057_s15 + $0x40] ss:$8 sps:$4 sm:$0xff]   ;;  %v2797_v28 = vld [vmem:[%s3057_s15 + $0x54] ss:$8 sps:$4 sm:$0xff]   ;;  %v2801_v30 = vld [vmem:[%s3057_s15 + $0x50] ss:$8 sps:$4 sm:$0xff]  }
  0x18   : > { %1666 = vmatpush1.bf16.msra.mxu0 %v2778_v15  ;;  %1441 = vmatprep.subr.bf16.mxu1 %v2779_v16  ;;  %v2796_v27 = vld [vmem:[%s3057_s15 + $0x240] ss:$8 sps:$4 sm:$0xff]   ;;  %v2799_v29 = vld [vmem:[%s3057_s15 + $0x254] ss:$8 sps:$4 sm:$0xff]   ;;  %v2802_v31 = vld [vmem:[%s3057_s15 + $0x250] ss:$8 sps:$4 sm:$0xff]  }
  0x19   : > { %1667 = vmatprep.subr.bf16.mxu0 %v2781_v17  ;;  %v2803_v32 = vld [vmem:[%s3057_s15 + $0x64] ss:$8 sps:$4 sm:$0xff]   ;;  %v2807_v34 = vld [vmem:[%s3057_s15 + $0x60] ss:$8 sps:$4 sm:$0xff]   ;;  %v2809_v36 = vld [vmem:[%s3057_s15 + $0x74] ss:$8 sps:$4 sm:$0xff]  }
  0x1a   : > { %v2805_v33 = vld [vmem:[%s3057_s15 + $0x264] ss:$8 sps:$4 sm:$0xff]   ;;  %v2808_v35 = vld [vmem:[%s3057_s15 + $0x260] ss:$8 sps:$4 sm:$0xff]   ;;  %v2811_v37 = vld [vmem:[%s3057_s15 + $0x274] ss:$8 sps:$4 sm:$0xff]  }
  0x1b   : > { %1442 = vmatpush1.bf16.msra.mxu1 %v2783_v18  ;;  %v2813_v38 = vld [vmem:[%s3057_s15 + $0x70] ss:$8 sps:$4 sm:$0xff]   ;;  %v2815_v41 = vld [vmem:[%s3057_s15 + $0x84] ss:$8 sps:$4 sm:$0xff]   ;;  %v2819_v43 = vld [vmem:[%s3057_s15 + $0x80] ss:$8 sps:$4 sm:$0xff]  }
  0x1c   : > { %1668 = vmatpush1.bf16.msra.mxu0 %v2784_v19  ;;  %1443 = vmatprep.subr.bf16.mxu1 %v2785_v20  ;;  %v2814_v40 = vld [vmem:[%s3057_s15 + $0x270] ss:$8 sps:$4 sm:$0xff]   ;;  %v2817_v42 = vld [vmem:[%s3057_s15 + $0x284] ss:$8 sps:$4 sm:$0xff]   ;;  %v2820_v44 = vld [vmem:[%s3057_s15 + $0x280] ss:$8 sps:$4 sm:$0xff]  }
  0x1d   : > { %1669 = vmatprep.subr.bf16.mxu0 %v2787_v21  ;;  %v2821_v45 = vld [vmem:[%s3057_s15 + $0x94] ss:$8 sps:$4 sm:$0xff]   ;;  %v2825_v47 = vld [vmem:[%s3057_s15 + $0x90] ss:$8 sps:$4 sm:$0xff]   ;;  %v2827_v49 = vld [vmem:[%s3057_s15 + $0xa4] ss:$8 sps:$4 sm:$0xff]  }
  0x1e   : > { %v2823_v46 = vld [vmem:[%s3057_s15 + $0x294] ss:$8 sps:$4 sm:$0xff]   ;;  %v2826_v48 = vld [vmem:[%s3057_s15 + $0x290] ss:$8 sps:$4 sm:$0xff]   ;;  %v2829_v50 = vld [vmem:[%s3057_s15 + $0x2a4] ss:$8 sps:$4 sm:$0xff]  }
  0x1f   : > { %1444 = vmatpush1.bf16.msra.mxu1 %v2789_v22  ;;  %v2831_v51 = vld [vmem:[%s3057_s15 + $0xa0] ss:$8 sps:$4 sm:$0xff]   ;;  %v2833_v53 = vld [vmem:[%s3057_s15 + $0xb4] ss:$8 sps:$4 sm:$0xff]   ;;  %v2837_v55 = vld [vmem:[%s3057_s15 + $0xb0] ss:$8 sps:$4 sm:$0xff]  }
  0x20   : > { %1670 = vmatpush1.bf16.msra.mxu0 %v2790_v23  ;;  %1445 = vmatprep.subr.bf16.mxu1 %v2791_v24  ;;  %v2832_v52 = vld [vmem:[%s3057_s15 + $0x2a0] ss:$8 sps:$4 sm:$0xff]   ;;  %v2835_v54 = vld [vmem:[%s3057_s15 + $0x2b4] ss:$8 sps:$4 sm:$0xff]   ;;  %v2838_v56 = vld [vmem:[%s3057_s15 + $0x2b0] ss:$8 sps:$4 sm:$0xff]  }
  0x21   : > { %1671 = vmatprep.subr.bf16.mxu0 %v2793_v25  ;;  %v2839_v57 = vld [vmem:[%s3057_s15 + $0xc4] ss:$8 sps:$4 sm:$0xff]   ;;  %v2843_v59 = vld [vmem:[%s3057_s15 + $0xc0] ss:$8 sps:$4 sm:$0xff]   ;;  %v2845_v61 = vld [vmem:[%s3057_s15 + $0xd4] ss:$8 sps:$4 sm:$0xff]  }
  0x22   : > { %v2841_v58 = vld [vmem:[%s3057_s15 + $0x2c4] ss:$8 sps:$4 sm:$0xff]   ;;  %v2844_v60 = vld [vmem:[%s3057_s15 + $0x2c0] ss:$8 sps:$4 sm:$0xff]   ;;  %v2847_v62 = vld [vmem:[%s3057_s15 + $0x2d4] ss:$8 sps:$4 sm:$0xff]  }
  0x23   : > { %1446 = vmatpush1.bf16.msra.mxu1 %v2795_v26  ;;  %v2849_v63 = vld [vmem:[%s3057_s15 + $0xd0] ss:$8 sps:$4 sm:$0xff]   ;;  %v2851_v7 = vld [vmem:[%s3057_s15 + $0xe4] ss:$8 sps:$4 sm:$0xff]   ;;  %v2855_v9 = vld [vmem:[%s3057_s15 + $0xe0] ss:$8 sps:$4 sm:$0xff]  }
  0x24   : > { %1672 = vmatpush1.bf16.msra.mxu0 %v2796_v27  ;;  %1447 = vmatprep.subr.bf16.mxu1 %v2797_v28  ;;  %v2850_v4 = vld [vmem:[%s3057_s15 + $0x2d0] ss:$8 sps:$4 sm:$0xff]   ;;  %v2853_v8 = vld [vmem:[%s3057_s15 + $0x2e4] ss:$8 sps:$4 sm:$0xff]   ;;  %v2856_v10 = vld [vmem:[%s3057_s15 + $0x2e0] ss:$8 sps:$4 sm:$0xff]  }
  0x25   : > { %1673 = vmatprep.subr.bf16.mxu0 %v2799_v29  ;;  %v2857_v11 = vld [vmem:[%s3057_s15 + $0xf4] ss:$8 sps:$4 sm:$0xff]   ;;  %v2861_v13 = vld [vmem:[%s3057_s15 + $0xf0] ss:$8 sps:$4 sm:$0xff]   ;;  %v2865_v15 = vld [vmem:[%s3057_s15 + $0x104] ss:$8 sps:$4 sm:$0xff]  }
  0x26   : > { %v2859_v12 = vld [vmem:[%s3057_s15 + $0x2f4] ss:$8 sps:$4 sm:$0xff]   ;;  %v2862_v14 = vld [vmem:[%s3057_s15 + $0x2f0] ss:$8 sps:$4 sm:$0xff]   ;;  %v2868_v16 = vld [vmem:[%s3057_s15 + $0x304] ss:$8 sps:$4 sm:$0xff]  }
  0x27   : > { %1448 = vmatpush1.bf16.msra.mxu1 %v2801_v30  ;;  %v293_v17 = vld [vmem:[%s3674_s1 + $0x40] sm:$0xff]  ;;  %v295_v19 = vld [vmem:[%s3674_s1 + $0x50] sm:$0xff] }
  0x28   : > { %1674 = vmatpush1.bf16.msra.mxu0 %v2802_v31  ;;  %1449 = vmatprep.subr.bf16.mxu1 %v2803_v32  ;;  %v297_v18 = vld [vmem:[%s3674_s1 + $0x60] sm:$0xff]  ;;  %v299_v20 = vld [vmem:[%s3674_s1 + $0x70] sm:$0xff] }
  0x29   : > { %1675 = vmatprep.subr.bf16.mxu0 %v2805_v33  ;;  %v2863_v21 = vld [vmem:[%s3057_s15 + $0x100] ss:$8 sps:$4 sm:$0xff]   ;;  %v2871_v23 = vld [vmem:[%s3057_s15 + $0x114] ss:$8 sps:$4 sm:$0xff]   ;;  %v2474_v25 = vcombine.high %v293_v17, %v297_v18  ;;  %v2478_v26 = vcombine.high %v295_v19, %v299_v20  ;;  %v2869_v27 = vld [vmem:[%s3057_s15 + $0x110] ss:$8 sps:$4 sm:$0xff]   ;;  %v2477_v5 = vcombine.low %v295_v19, %v299_v20 }
  0x2a   : > { %v2866_v22 = vld [vmem:[%s3057_s15 + $0x300] ss:$8 sps:$4 sm:$0xff]   ;;  %v2874_v24 = vld [vmem:[%s3057_s15 + $0x314] ss:$8 sps:$4 sm:$0xff]   ;;  %v2872_v28 = vld [vmem:[%s3057_s15 + $0x310] ss:$8 sps:$4 sm:$0xff]  }
  0x2b   : > { %1450 = vmatpush1.bf16.msra.mxu1 %v2807_v34  ;;  %v2877_v29 = vld [vmem:[%s3057_s15 + $0x124] ss:$8 sps:$4 sm:$0xff]   ;;  %v2875_v31 = vld [vmem:[%s3057_s15 + $0x120] ss:$8 sps:$4 sm:$0xff]   ;;  %v2883_v33 = vld [vmem:[%s3057_s15 + $0x134] ss:$8 sps:$4 sm:$0xff]  }
  0x2c   : > { %1676 = vmatpush1.bf16.msra.mxu0 %v2808_v35  ;;  %1451 = vmatprep.subr.bf16.mxu1 %v2809_v36  ;;  %v2880_v30 = vld [vmem:[%s3057_s15 + $0x324] ss:$8 sps:$4 sm:$0xff]   ;;  %v2878_v32 = vld [vmem:[%s3057_s15 + $0x320] ss:$8 sps:$4 sm:$0xff]   ;;  %v2886_v34 = vld [vmem:[%s3057_s15 + $0x334] ss:$8 sps:$4 sm:$0xff]   ;;  %v2482_v35 = vcombine.high %v301_v0, %v305_v1 }
  0x2d   : > { %1677 = vmatprep.subr.bf16.mxu0 %v2811_v37  ;;  %v2881_v37 = vld [vmem:[%s3057_s15 + $0x130] ss:$8 sps:$4 sm:$0xff]   ;;  %v2889_v39 = vld [vmem:[%s3057_s15 + $0x144] ss:$8 sps:$4 sm:$0xff]  }
  0x2e   : > { %v331_v20 = vld [vmem:[%s3674_s1 + $0x170] sm:$0xff] }
  0x2f   : > { %1452 = vmatpush1.bf16.msra.mxu1 %v2813_v38  ;;  %v2884_v38 = vld [vmem:[%s3057_s15 + $0x330] ss:$8 sps:$4 sm:$0xff]  }
  0x30   : > { %1678 = vmatpush1.bf16.msra.mxu0 %v2814_v40  ;;  %1453 = vmatprep.subr.bf16.mxu1 %v2815_v41  ;;  %v2892_v40 = vld [vmem:[%s3057_s15 + $0x344] ss:$8 sps:$4 sm:$0xff]  }
  0x31   : > { %1679 = vmatprep.subr.bf16.mxu0 %v2817_v42  ;;  %v309_v41 = vld [vmem:[%s3674_s1 + $0xc0] sm:$0xff] }
  0x32   : > { %v313_v42 = vld [vmem:[%s3674_s1 + $0xe0] sm:$0xff] }
  0x33   : > { %1454 = vmatpush1.bf16.msra.mxu1 %v2819_v43  ;;  %v311_v43 = vld [vmem:[%s3674_s1 + $0xd0] sm:$0xff] }
  0x34   : > { %1680 = vmatpush1.bf16.msra.mxu0 %v2820_v44  ;;  %1455 = vmatprep.subr.bf16.mxu1 %v2821_v45  ;;  %v2481_v44 = vcombine.low %v301_v0, %v305_v1  ;;  %v1890_v0 = vld [vmem:[%s3675_s2 + $0x8] sm:$0xff]  ;;  %v2017_v1 = vld [vmem:[%s3676_s3] sm:$0xff] }
  0x35   : > { %1681 = vmatprep.subr.bf16.mxu0 %v2823_v46  ;;  %v315_v46 = vld [vmem:[%s3674_s1 + $0xf0] sm:$0xff] }
  0x37   : > { %1456 = vmatpush1.bf16.msra.mxu1 %v2825_v47  ;;  %v2887_v47 = vld [vmem:[%s3057_s15 + $0x140] ss:$8 sps:$4 sm:$0xff]  }
  0x38   : > { %1682 = vmatpush1.bf16.msra.mxu0 %v2826_v48  ;;  %1457 = vmatprep.subr.bf16.mxu1 %v2827_v49  ;;  %v2890_v48 = vld [vmem:[%s3057_s15 + $0x340] ss:$8 sps:$4 sm:$0xff]   ;;  %v2895_v49 = vld [vmem:[%s3057_s15 + $0x154] ss:$8 sps:$4 sm:$0xff]  }
  0x39   : > { %1683 = vmatprep.subr.bf16.mxu0 %v2829_v50  ;;  %v2898_v50 = vld [vmem:[%s3057_s15 + $0x354] ss:$8 sps:$4 sm:$0xff]  }
  0x3b   : > { %1458 = vmatpush1.bf16.msra.mxu1 %v2831_v51  ;;  %v2490_v51 = vcombine.high %v309_v41, %v313_v42 }
  0x3c   : > { %1684 = vmatpush1.bf16.msra.mxu0 %v2832_v52  ;;  %1459 = vmatprep.subr.bf16.mxu1 %v2833_v53  ;;  %v2494_v52 = vcombine.high %v311_v43, %v315_v46  ;;  %v2893_v53 = vld [vmem:[%s3057_s15 + $0x150] ss:$8 sps:$4 sm:$0xff]  }
  0x3d   : > { %1685 = vmatprep.subr.bf16.mxu0 %v2835_v54  ;;  %v2896_v54 = vld [vmem:[%s3057_s15 + $0x350] ss:$8 sps:$4 sm:$0xff]  }
  0x3f   : > { %1460 = vmatpush1.bf16.msra.mxu1 %v2837_v55  ;;  %v2901_v55 = vld [vmem:[%s3057_s15 + $0x164] ss:$8 sps:$4 sm:$0xff]  }
  0x40   : > { %1686 = vmatpush1.bf16.msra.mxu0 %v2838_v56  ;;  %1461 = vmatprep.subr.bf16.mxu1 %v2839_v57  ;;  %v2904_v56 = vld [vmem:[%s3057_s15 + $0x364] ss:$8 sps:$4 sm:$0xff]  }
  0x41   : > { %1687 = vmatprep.subr.bf16.mxu0 %v2841_v58  ;;  %v317_v57 = vld [vmem:[%s3674_s1 + $0x100] sm:$0xff] }
  0x42   : > { %v321_v58 = vld [vmem:[%s3674_s1 + $0x120] sm:$0xff] }
  0x43   : > { %1462 = vmatpush1.bf16.msra.mxu1 %v2843_v59  ;;  %v319_v59 = vld [vmem:[%s3674_s1 + $0x110] sm:$0xff] }
  0x44   : > { %1688 = vmatpush1.bf16.msra.mxu0 %v2844_v60  ;;  %1463 = vmatprep.subr.bf16.mxu1 %v2845_v61  ;;  %v2489_v60 = vcombine.low %v309_v41, %v313_v42  ;;  %v2493_v61 = vcombine.low %v311_v43, %v315_v46  ;;  %v2929_v41 = vld [vmem:[%s3057_s15 + $0x1b0] ss:$8 sps:$4 sm:$0xff]   ;;  %v2018_v43 = vld [vmem:[%s3676_s3 + $0x8] sm:$0xff] }
  0x45   : > { %1689 = vmatprep.subr.bf16.mxu0 %v2847_v62  ;;  %v323_v62 = vld [vmem:[%s3674_s1 + $0x130] sm:$0xff]  ;;  %v2940_v46 = vld [vmem:[%s3057_s15 + $0x3c4] ss:$8 sps:$4 sm:$0xff]  }
  0x46   : > { %v2501_v19 = vcombine.low %v319_v59, %v323_v62  ;;  %v2932_v42 = vld [vmem:[%s3057_s15 + $0x3b0] ss:$8 sps:$4 sm:$0xff]  }
  0x47   : > { %1464 = vmatpush1.bf16.msra.mxu1 %v2849_v63  ;;  %v2899_v63 = vld [vmem:[%s3057_s15 + $0x160] ss:$8 sps:$4 sm:$0xff]  }
  0x48   : > { %1690 = vmatpush1.bf16.msra.mxu0 %v2850_v4  ;;  %1465 = vmatprep.subr.bf16.mxu1 %v2851_v7  ;;  %v2902_v4 = vld [vmem:[%s3057_s15 + $0x360] ss:$8 sps:$4 sm:$0xff]   ;;  %v2907_v7 = vld [vmem:[%s3057_s15 + $0x174] ss:$8 sps:$4 sm:$0xff]  }
  0x49   : > { %1691 = vmatprep.subr.bf16.mxu0 %v2853_v8  ;;  %v2910_v8 = vld [vmem:[%s3057_s15 + $0x374] ss:$8 sps:$4 sm:$0xff]  }
  0x4b   : > { %1466 = vmatpush1.bf16.msra.mxu1 %v2855_v9  ;;  %v2498_v9 = vcombine.high %v317_v57, %v321_v58 }
  0x4c   : > { %1692 = vmatpush1.bf16.msra.mxu0 %v2856_v10  ;;  %1467 = vmatprep.subr.bf16.mxu1 %v2857_v11  ;;  %v2502_v10 = vcombine.high %v319_v59, %v323_v62  ;;  %v2905_v11 = vld [vmem:[%s3057_s15 + $0x170] ss:$8 sps:$4 sm:$0xff]   ;;  %v1893_v62 = vld [vmem:[%s3675_s2 + $0x20] sm:$0xff] }
  0x4d   : > { %1693 = vmatprep.subr.bf16.mxu0 %v2859_v12  ;;  %v2908_v12 = vld [vmem:[%s3057_s15 + $0x370] ss:$8 sps:$4 sm:$0xff]  }
  0x4e   : > { %v2941_v59 = vld [vmem:[%s3057_s15 + $0x1d0] ss:$8 sps:$4 sm:$0xff]  }
  0x4f   : > { %1468 = vmatpush1.bf16.msra.mxu1 %v2861_v13  ;;  %v2913_v13 = vld [vmem:[%s3057_s15 + $0x184] ss:$8 sps:$4 sm:$0xff]  }
  0x50   : > { %1694 = vmatpush1.bf16.msra.mxu0 %v2862_v14  ;;  %1550 = vmatprep.subr.bf16.mxu1 %v2865_v15  ;;  %v2916_v14 = vld [vmem:[%s3057_s15 + $0x384] ss:$8 sps:$4 sm:$0xff]  }
  0x51   : > { %1776 = vmatprep.subr.bf16.mxu0 %v2868_v16  ;;  %v325_v15 = vld [vmem:[%s3674_s1 + $0x140] sm:$0xff] }
  0x52   : > { %1470 = vmatmul.mubr.bf16.vlgmr.msra.gmra.mrb[0].mxu1 %v2465_v3  ;;  %v2473_v3 = vcombine.low %v293_v17, %v297_v18  ;;  %v329_v16 = vld [vmem:[%s3674_s1 + $0x160] sm:$0xff]  ;;  %v327_v17 = vld [vmem:[%s3674_s1 + $0x150] sm:$0xff]  ;;  %v2497_v18 = vcombine.low %v317_v57, %v321_v58 }
  0x53   : > { %1696 = vmatmul.mubr.bf16.vlgmr.msra.gmra.mrb[0].mxu0 %v2469_v6  ;;  %1551 = vmatpush1.bf16.msra.mxu1 %v2863_v21  ;;  %v307_v6 = vld [vmem:[%s3674_s1 + $0xb0] sm:$0xff]  ;;  %v1889_v21 = vld [vmem:[%s3675_s2] sm:$0xff] }
  0x54   : > { %1777 = vmatpush1.bf16.msra.mxu0 %v2866_v22  ;;  %1552 = vmatprep.subr.bf16.mxu1 %v2871_v23  ;;  %v2486_v36 = vcombine.high %v303_v2, %v307_v6  ;;  %v2485_v45 = vcombine.low %v303_v2, %v307_v6  ;;  %v1891_v22 = vld [vmem:[%s3675_s2 + $0x10] sm:$0xff]  ;;  %v2911_v23 = vld [vmem:[%s3057_s15 + $0x180] ss:$8 sps:$4 sm:$0xff]   ;;  %v2925_v2 = vld [vmem:[%s3057_s15 + $0x1a4] ss:$8 sps:$4 sm:$0xff]   ;;  %v2505_v6 = vcombine.low %v325_v15, %v329_v16 }
  0x55   : > { %1778 = vmatprep.subr.bf16.mxu0 %v2874_v24  ;;  %1479 = vmatprep.mubr.bf16.mxu1 %v2474_v25  ;;  %v2914_v24 = vld [vmem:[%s3057_s15 + $0x380] ss:$8 sps:$4 sm:$0xff]   ;;  %v2919_v25 = vld [vmem:[%s3057_s15 + $0x194] ss:$8 sps:$4 sm:$0xff]  }
  0x56   : > { %1705 = vmatprep.mubr.bf16.mxu0 %v2478_v26  ;;  %v2922_v26 = vld [vmem:[%s3057_s15 + $0x394] ss:$8 sps:$4 sm:$0xff]   ;;  %1907 = vperm.xlu0 %2765, %v1889_v21   ;;  %v294_v21 = vld [vmem:[%s3674_s1 + $0x48] sm:$0xff] }
  0x57   : > { %1553 = vmatpush1.bf16.msra.mxu1 %v2869_v27  ;;  %v2506_v27 = vcombine.high %v325_v15, %v329_v16  ;;  %1917 = vperm.xlu1 %2766, %v1891_v22   ;;  %v2955_v15 = vld [vmem:[%s3057_s15 + $0x1f4] ss:$8 sps:$4 sm:$0xff]  }
  0x58   : > { %1779 = vmatpush1.bf16.msra.mxu0 %v2872_v28  ;;  %1554 = vmatprep.subr.bf16.mxu1 %v2877_v29  ;;  %v2510_v28 = vcombine.high %v327_v17, %v331_v20  ;;  %v2917_v29 = vld [vmem:[%s3057_s15 + $0x190] ss:$8 sps:$4 sm:$0xff]   ;;  %v2958_v16 = vld [vmem:[%s3057_s15 + $0x3f4] ss:$8 sps:$4 sm:$0xff]  }
  0x59   : > { %1780 = vmatprep.subr.bf16.mxu0 %v2880_v30  ;;  %v2920_v30 = vld [vmem:[%s3057_s15 + $0x390] ss:$8 sps:$4 sm:$0xff]  }
  0x5a   : > { %1480 = vmatmul.mubr.bf16.gmra.mrb[4].mxu1 %v2473_v3  ;;  %v2928_v3 = vld [vmem:[%s3057_s15 + $0x3a4] ss:$8 sps:$4 sm:$0xff]   ;;  %1912 = vperm.xlu0 %2765, %v1890_v0   ;;  %v2020_v22 = vld [vmem:[%s3676_s3 + $0x18] sm:$0xff] }
  0x5b   : > { %1706 = vmatmul.mubr.bf16.gmra.mrb[4].mxu0 %v2477_v5  ;;  %1555 = vmatpush1.bf16.msra.mxu1 %v2875_v31  ;;  %v333_v5 = vld [vmem:[%s3674_s1 + $0x180] sm:$0xff]  ;;  %v2509_v31 = vcombine.low %v327_v17, %v331_v20  ;;  %v2956_v20 = vld [vmem:[%s3057_s15 + $0x3f0] ss:$8 sps:$4 sm:$0xff]  }
  0x5c   : > { %1781 = vmatpush1.bf16.msra.mxu0 %v2878_v32  ;;  %1556 = vmatprep.subr.bf16.mxu1 %v2883_v33  ;;  %v337_v32 = vld [vmem:[%s3674_s1 + $0x1a0] sm:$0xff]  ;;  %v335_v33 = vld [vmem:[%s3674_s1 + $0x190] sm:$0xff] }
  0x5d   : > { %1782 = vmatprep.subr.bf16.mxu0 %v2886_v34  ;;  %1489 = vmatprep.mubr.bf16.mxu1 %v2482_v35  ;;  %v339_v34 = vld [vmem:[%s3674_s1 + $0x1b0] sm:$0xff]  ;;  %v2923_v35 = vld [vmem:[%s3057_s15 + $0x1a0] ss:$8 sps:$4 sm:$0xff]  }
  0x5e   : > { %1715 = vmatprep.mubr.bf16.mxu0 %v2486_v36  ;;  %2035 = vperm.xlu1 %2766, %v2017_v1   ;;  %v2926_v36 = vld [vmem:[%s3057_s15 + $0x3a0] ss:$8 sps:$4 sm:$0xff]   ;;  %v1895_v1 = vld [vmem:[%s3675_s2 + $0x30] sm:$0xff] }
  0x5f   : > { %1557 = vmatpush1.bf16.msra.mxu1 %v2881_v37  ;;  %v2931_v37 = vld [vmem:[%s3057_s15 + $0x1b4] ss:$8 sps:$4 sm:$0xff]   ;;  %2040 = vperm.xlu0 %2765, %v2018_v43   ;;  %v2021_v0 = vld [vmem:[%s3676_s3 + $0x20] sm:$0xff] }
  0x60   : > { %1783 = vmatpush1.bf16.msra.mxu0 %v2884_v38  ;;  %1558 = vmatprep.subr.bf16.mxu1 %v2889_v39  ;;  %v2934_v38 = vld [vmem:[%s3057_s15 + $0x3b4] ss:$8 sps:$4 sm:$0xff]   ;;  %v2514_v39 = vcombine.high %v333_v5, %v337_v32 }
  0x61   : > { %1784 = vmatprep.subr.bf16.mxu0 %v2892_v40  ;;  %v2518_v40 = vcombine.high %v335_v33, %v339_v34  ;;  %v2024_v43 = vld [vmem:[%s3676_s3 + $0x38] sm:$0xff] }
  0x62   : > { %1490 = vmatmul.mubr.bf16.gmra.mrb[8].mxu1 %v2481_v44  ;;  %v1892_v44 = vld [vmem:[%s3675_s2 + $0x18] sm:$0xff] }
  0x63   : > { %1716 = vmatmul.mubr.bf16.gmra.mrb[8].mxu0 %v2485_v45  ;;  %1559 = vmatpush1.bf16.msra.mxu1 %v2887_v47  ;;  %v2937_v45 = vld [vmem:[%s3057_s15 + $0x1c4] ss:$8 sps:$4 sm:$0xff]  }
  0x64   : > { %1785 = vmatpush1.bf16.msra.mxu0 %v2890_v48  ;;  %1560 = vmatprep.subr.bf16.mxu1 %v2895_v49  ;;  %v341_v47 = vld [vmem:[%s3674_s1 + $0x1c0] sm:$0xff]  ;;  %v2513_v48 = vcombine.low %v333_v5, %v337_v32  ;;  %v2517_v49 = vcombine.low %v335_v33, %v339_v34  ;;  %v304_v5 = vld [vmem:[%s3674_s1 + $0x98] sm:$0xff] }
  0x65   : > { %1786 = vmatprep.subr.bf16.mxu0 %v2898_v50  ;;  %1499 = vmatprep.mubr.bf16.mxu1 %v2490_v51  ;;  %v345_v50 = vld [vmem:[%s3674_s1 + $0x1e0] sm:$0xff]  ;;  %v343_v51 = vld [vmem:[%s3674_s1 + $0x1d0] sm:$0xff]  ;;  %v1896_v32 = vld [vmem:[%s3675_s2 + $0x38] sm:$0xff] }
  0x66   : > { %1725 = vmatprep.mubr.bf16.mxu0 %v2494_v52  ;;  %v347_v52 = vld [vmem:[%s3674_s1 + $0x1f0] sm:$0xff]  ;;  %1922 = vperm.xlu1 %2766, %v1892_v44   ;;  %v2522_v57 = vcombine.high %v341_v47, %v345_v50  ;;  %v1898_v44 = vld [vmem:[%s3675_s2 + $0x48] sm:$0xff] }
  0x67   : > { %1561 = vmatpush1.bf16.msra.mxu1 %v2893_v53  ;;  %v2935_v53 = vld [vmem:[%s3057_s15 + $0x1c0] ss:$8 sps:$4 sm:$0xff]   ;;  %v2526_v58 = vcombine.high %v343_v51, %v347_v52 }
  0x68   : > { %1787 = vmatpush1.bf16.msra.mxu0 %v2896_v54  ;;  %1562 = vmatprep.subr.bf16.mxu1 %v2901_v55  ;;  %v2938_v54 = vld [vmem:[%s3057_s15 + $0x3c0] ss:$8 sps:$4 sm:$0xff]   ;;  %v2943_v55 = vld [vmem:[%s3057_s15 + $0x1d4] ss:$8 sps:$4 sm:$0xff]  }
  0x69   : > { %1788 = vmatprep.subr.bf16.mxu0 %v2904_v56  ;;  %v2946_v56 = vld [vmem:[%s3057_s15 + $0x3d4] ss:$8 sps:$4 sm:$0xff]  }
  0x6a   : > { %1500 = vmatmul.mubr.bf16.gmra.mrb[12].mxu1 %v2489_v60  ;;  %v2944_v60 = vld [vmem:[%s3057_s15 + $0x3d0] ss:$8 sps:$4 sm:$0xff]   ;;  %1927 = vperm.xlu1 %2766, %v1893_v62   ;;  %v1901_v62 = vld [vmem:[%s3675_s2 + $0x60] sm:$0xff] }
  0x6b   : > { %1726 = vmatmul.mubr.bf16.gmra.mrb[12].mxu0 %v2493_v61  ;;  %1563 = vmatpush1.bf16.msra.mxu1 %v2899_v63  ;;  %v2019_v61 = vld [vmem:[%s3676_s3 + $0x10] sm:$0xff]  ;;  %v2949_v63 = vld [vmem:[%s3057_s15 + $0x1e4] ss:$8 sps:$4 sm:$0xff]  }
  0x6c   : > { %1789 = vmatpush1.bf16.msra.mxu0 %v2902_v4  ;;  %1564 = vmatprep.subr.bf16.mxu1 %v2907_v7  ;;  %v2952_v4 = vld [vmem:[%s3057_s15 + $0x3e4] ss:$8 sps:$4 sm:$0xff]  }
  0x6d   : > { %1790 = vmatprep.subr.bf16.mxu0 %v2910_v8  ;;  %1509 = vmatprep.mubr.bf16.mxu1 %v2498_v9  ;;  %v286_v7 = vld [vmem:[%s3674_s1 + $0x8] sm:$0xff]  ;;  %v2521_v8 = vcombine.low %v341_v47, %v345_v50  ;;  %v2525_v9 = vcombine.low %v343_v51, %v347_v52  ;;  %v1899_v50 = vld [vmem:[%s3675_s2 + $0x50] sm:$0xff] }
  0x6e   : > { %1735 = vmatprep.mubr.bf16.mxu0 %v2502_v10  ;;  %v290_v10 = vld [vmem:[%s3674_s1 + $0x28] sm:$0xff]  ;;  %2045 = vperm.xlu0 %2765, %v2019_v61   ;;  %v2027_v61 = vld [vmem:[%s3676_s3 + $0x50] sm:$0xff] }
  0x6f   : > { %1565 = vmatpush1.bf16.msra.mxu1 %v2905_v11  ;;  %v288_v11 = vld [vmem:[%s3674_s1 + $0x18] sm:$0xff]  ;;  %v2468_v17 = vcombine.high %v286_v7, %v290_v10  ;;  %v318_v51 = vld [vmem:[%s3674_s1 + $0x108] sm:$0xff] }
  0x70   : > { %1791 = vmatpush1.bf16.msra.mxu0 %v2908_v12  ;;  %1566 = vmatprep.subr.bf16.mxu1 %v2913_v13  ;;  %v292_v12 = vld [vmem:[%s3674_s1 + $0x38] sm:$0xff]  ;;  %v2947_v13 = vld [vmem:[%s3057_s15 + $0x1e0] ss:$8 sps:$4 sm:$0xff]  }
  0x71   : > { %1792 = vmatprep.subr.bf16.mxu0 %v2916_v14  ;;  %v2950_v14 = vld [vmem:[%s3057_s15 + $0x3e0] ss:$8 sps:$4 sm:$0xff]  }
  0x72   : > { %1510 = vmatmul.mubr.bf16.gmra.mrb[16].mxu1 %v2497_v18  ;;  %v2472_v18 = vcombine.high %v288_v11, %v292_v12  ;;  %2050 = vperm.xlu0 %2765, %v2020_v22   ;;  %v322_v52 = vld [vmem:[%s3674_s1 + $0x128] sm:$0xff]  ;;  %v1904_v22 = vld [vmem:[%s3675_s2 + $0x78] sm:$0xff] }
  0x73   : > { %1736 = vmatmul.mubr.bf16.gmra.mrb[16].mxu0 %v2501_v19  ;;  %1567 = vmatpush1.bf16.msra.mxu1 %v2911_v23  ;;  %v2953_v19 = vld [vmem:[%s3057_s15 + $0x1f0] ss:$8 sps:$4 sm:$0xff]   ;;  %v1894_v23 = vld [vmem:[%s3675_s2 + $0x28] sm:$0xff] }
  0x74   : > { %1793 = vmatpush1.bf16.msra.mxu0 %v2914_v24  ;;  %1568 = vmatprep.subr.bf16.mxu1 %v2919_v25  ;;  %v298_v24 = vld [vmem:[%s3674_s1 + $0x68] sm:$0xff]  ;;  %v296_v25 = vld [vmem:[%s3674_s1 + $0x58] sm:$0xff] }
  0x75   : > { %1794 = vmatprep.subr.bf16.mxu0 %v2922_v26  ;;  %1519 = vmatprep.mubr.bf16.mxu1 %v2506_v27  ;;  %v300_v26 = vld [vmem:[%s3674_s1 + $0x78] sm:$0xff]  ;;  %v2467_v27 = vcombine.low %v286_v7, %v290_v10  ;;  %v2475_v33 = vcombine.low %v294_v21, %v298_v24  ;;  %v1902_v10 = vld [vmem:[%s3675_s2 + $0x68] sm:$0xff] }
  0x76   : > { %1745 = vmatprep.mubr.bf16.mxu0 %v2510_v28  ;;  %v2471_v28 = vcombine.low %v288_v11, %v292_v12  ;;  %1932 = vperm.xlu1 %2766, %v1894_v23   ;;  %v2479_v34 = vcombine.low %v296_v25, %v300_v26  ;;  %v328_v7 = vld [vmem:[%s3674_s1 + $0x158] sm:$0xff]  ;;  %v2499_v11 = vcombine.low %v318_v51, %v322_v52 }
  0x77   : > { %1569 = vmatpush1.bf16.msra.mxu1 %v2917_v29  ;;  %v2476_v29 = vcombine.high %v294_v21, %v298_v24  ;;  %2055 = vperm.xlu0 %2765, %v2021_v0   ;;  %v2030_v21 = vld [vmem:[%s3676_s3 + $0x68] sm:$0xff]  ;;  %v344_v0 = vld [vmem:[%s3674_s1 + $0x1d8] sm:$0xff] }
  0x78   : > { %1795 = vmatpush1.bf16.msra.mxu0 %v2920_v30  ;;  %1570 = vmatprep.subr.bf16.mxu1 %v2925_v2  ;;  %v2480_v30 = vcombine.high %v296_v25, %v300_v26  ;;  %v302_v2 = vld [vmem:[%s3674_s1 + $0x88] sm:$0xff] }
  0x79   : > { %1796 = vmatprep.subr.bf16.mxu0 %v2928_v3  ;;  %v306_v3 = vld [vmem:[%s3674_s1 + $0xa8] sm:$0xff] }
  0x7a   : > { %1520 = vmatmul.mubr.bf16.gmra.mrb[20].mxu1 %v2505_v6  ;;  %v308_v6 = vld [vmem:[%s3674_s1 + $0xb8] sm:$0xff]  ;;  %1937 = vperm.xlu1 %2766, %v1895_v1  }
  0x7b   : > { %1746 = vmatmul.mubr.bf16.gmra.mrb[20].mxu0 %v2509_v31  ;;  %1571 = vmatpush1.bf16.msra.mxu1 %v2923_v35  ;;  %v2022_v31 = vld [vmem:[%s3676_s3 + $0x28] sm:$0xff]  ;;  %v2484_v35 = vcombine.high %v302_v2, %v306_v3  ;;  %v348_v1 = vld [vmem:[%s3674_s1 + $0x1f8] sm:$0xff] }
  0x7c   : > { %1797 = vmatpush1.bf16.msra.mxu0 %v2926_v36  ;;  %1572 = vmatprep.subr.bf16.mxu1 %v2931_v37  ;;  %v2488_v36 = vcombine.high %v304_v5, %v308_v6  ;;  %v2023_v37 = vld [vmem:[%s3676_s3 + $0x30] sm:$0xff] }
  0x7d   : > { %1798 = vmatprep.subr.bf16.mxu0 %v2934_v38  ;;  %1529 = vmatprep.mubr.bf16.mxu1 %v2514_v39  ;;  %v1897_v38 = vld [vmem:[%s3675_s2 + $0x40] sm:$0xff]  ;;  %v310_v39 = vld [vmem:[%s3674_s1 + $0xc8] sm:$0xff] }
  0x7e   : > { %1755 = vmatprep.mubr.bf16.mxu0 %v2518_v40  ;;  %2060 = vperm.xlu0 %2765, %v2022_v31   ;;  %v314_v40 = vld [vmem:[%s3674_s1 + $0xe8] sm:$0xff] }
  0x7f   : > { %1573 = vmatpush1.bf16.msra.mxu1 %v2929_v41  ;;  %1942 = vperm.xlu1 %2766, %v1896_v32   ;;  %v312_v41 = vld [vmem:[%s3674_s1 + $0xd8] sm:$0xff]  ;;  %v2492_v47 = vcombine.high %v310_v39, %v314_v40  ;;  %v2527_v32 = vcombine.low %v344_v0, %v348_v1 }
  0x80   : > { %1799 = vmatpush1.bf16.msra.mxu0 %v2932_v42  ;;  %1574 = vmatprep.subr.bf16.mxu1 %v2937_v45  ;;  %v316_v42 = vld [vmem:[%s3674_s1 + $0xf8] sm:$0xff]  ;;  %v2483_v45 = vcombine.low %v302_v2, %v306_v3 }
  0x81   : > { %1800 = vmatprep.subr.bf16.mxu0 %v2940_v46  ;;  %v2487_v46 = vcombine.low %v304_v5, %v308_v6  ;;  %v2528_v6 = vcombine.high %v344_v0, %v348_v1 }
  0x82   : > { %1530 = vmatmul.mubr.bf16.gmra.mrb[24].mxu1 %v2513_v48  ;;  %2065 = vperm.xlu0 %2765, %v2023_v37   ;;  %v2496_v48 = vcombine.high %v312_v41, %v316_v42 }
  0x83   : > { %1756 = vmatmul.mubr.bf16.gmra.mrb[24].mxu0 %v2517_v49  ;;  %1575 = vmatpush1.bf16.msra.mxu1 %v2935_v53  ;;  %v2025_v49 = vld [vmem:[%s3676_s3 + $0x40] sm:$0xff]  ;;  %v320_v53 = vld [vmem:[%s3674_s1 + $0x118] sm:$0xff] }
  0x84   : > { %1801 = vmatpush1.bf16.msra.mxu0 %v2938_v54  ;;  %1576 = vmatprep.subr.bf16.mxu1 %v2943_v55  ;;  %v324_v54 = vld [vmem:[%s3674_s1 + $0x138] sm:$0xff]  ;;  %v2026_v55 = vld [vmem:[%s3676_s3 + $0x48] sm:$0xff] }
  0x85   : > { %1802 = vmatprep.subr.bf16.mxu0 %v2946_v56  ;;  %1539 = vmatprep.mubr.bf16.mxu1 %v2522_v57  ;;  %v1900_v56 = vld [vmem:[%s3675_s2 + $0x58] sm:$0xff]  ;;  %v2491_v57 = vcombine.low %v310_v39, %v314_v40  ;;  %v2503_v12 = vcombine.low %v320_v53, %v324_v54 }
  0x86   : > { %1765 = vmatprep.mubr.bf16.mxu0 %v2526_v58  ;;  %1947 = vperm.xlu1 %2766, %v1897_v38   ;;  %v2495_v58 = vcombine.low %v312_v41, %v316_v42 }
  0x87   : > { %1577 = vmatpush1.bf16.msra.mxu1 %v2941_v59  ;;  %2070 = vperm.xlu0 %2765, %v2024_v43   ;;  %v2500_v59 = vcombine.high %v318_v51, %v322_v52 }
  0x88   : > { %1803 = vmatpush1.bf16.msra.mxu0 %v2944_v60  ;;  %1578 = vmatprep.subr.bf16.mxu1 %v2949_v63  ;;  %v2504_v60 = vcombine.high %v320_v53, %v324_v54  ;;  %v326_v63 = vld [vmem:[%s3674_s1 + $0x148] sm:$0xff] }
  0x89   : > { %1804 = vmatprep.subr.bf16.mxu0 %v2952_v4  ;;  %v330_v4 = vld [vmem:[%s3674_s1 + $0x168] sm:$0xff] }
  0x8a   : > { %1540 = vmatmul.mubr.bf16.gmra.mrb[28].mxu1 %v2521_v8  ;;  %1952 = vperm.xlu1 %2766, %v1898_v44   ;;  %v332_v8 = vld [vmem:[%s3674_s1 + $0x178] sm:$0xff]  ;;  %v2507_v23 = vcombine.low %v326_v63, %v330_v4 }
  0x8b   : > { %1766 = vmatmul.mubr.bf16.gmra.mrb[28].mxu0 %v2525_v9  ;;  %1579 = vmatpush1.bf16.msra.mxu1 %v2947_v13  ;;  %v2028_v9 = vld [vmem:[%s3676_s3 + $0x58] sm:$0xff]  ;;  %v2508_v13 = vcombine.high %v326_v63, %v330_v4  ;;  %v2511_v24 = vcombine.low %v328_v7, %v332_v8 }
  0x8c   : > { %1805 = vmatpush1.bf16.msra.mxu0 %v2950_v14  ;;  %1580 = vmatprep.subr.bf16.mxu1 %v2955_v15  ;;  %v2512_v14 = vcombine.high %v328_v7, %v332_v8  ;;  %v2029_v15 = vld [vmem:[%s3676_s3 + $0x60] sm:$0xff] }
  0x8d   : > { %1806 = vmatprep.subr.bf16.mxu0 %v2958_v16  ;;  %1582 = vmatprep.mubr.bf16.mxu1 %v2468_v17  ;;  %v1903_v16 = vld [vmem:[%s3675_s2 + $0x70] sm:$0xff]  ;;  %v334_v17 = vld [vmem:[%s3674_s1 + $0x188] sm:$0xff] }
  0x8e   : > { %1808 = vmatprep.mubr.bf16.mxu0 %v2472_v18  ;;  %2075 = vperm.xlu0 %2765, %v2025_v49   ;;  %v338_v18 = vld [vmem:[%s3674_s1 + $0x1a8] sm:$0xff] }
  0x8f   : > { %1581 = vmatpush1.bf16.msra.mxu1 %v2953_v19  ;;  %1957 = vperm.xlu1 %2766, %v1899_v50   ;;  %v336_v19 = vld [vmem:[%s3674_s1 + $0x198] sm:$0xff]  ;;  %v2516_v25 = vcombine.high %v334_v17, %v338_v18  ;;  %v2515_v2 = vcombine.low %v334_v17, %v338_v18  ;;  %v2242_v18 = vld [vmem:[%s3677_s4 + $0x8] sm:$0xff] }
  0x90   : > { %1807 = vmatpush1.bf16.msra.mxu0 %v2956_v20  ;;  %v340_v20 = vld [vmem:[%s3674_s1 + $0x1b8] sm:$0xff] }
  0x91   : > { %v2520_v26 = vcombine.high %v336_v19, %v340_v20  ;;  %v2519_v3 = vcombine.low %v336_v19, %v340_v20 }
  0x92   : > { %1583 = vmatmul.mubr.bf16.vlgmr.msra.gmra.mrb[0].mxu1 %v2467_v27  ;;  %2080 = vperm.xlu0 %2765, %v2026_v55   ;;  %v2031_v27 = vld [vmem:[%s3676_s3 + $0x70] sm:$0xff] }
  0x93   : > { %1809 = vmatmul.mubr.bf16.vlgmr.msra.gmra.mrb[0].mxu0 %v2471_v28  ;;  %1592 = vmatprep.mubr.bf16.mxu1 %v2476_v29  ;;  %v2032_v28 = vld [vmem:[%s3676_s3 + $0x78] sm:$0xff]  ;;  %v342_v29 = vld [vmem:[%s3674_s1 + $0x1c8] sm:$0xff] }
  0x94   : > { %1818 = vmatprep.mubr.bf16.mxu0 %v2480_v30  ;;  %1962 = vperm.xlu1 %2766, %v1900_v56   ;;  %v346_v30 = vld [vmem:[%s3674_s1 + $0x1e8] sm:$0xff] }
  0x95   : > { %v2524_v5 = vcombine.high %v342_v29, %v346_v30  ;;  %v2523_v31 = vcombine.low %v342_v29, %v346_v30 }
  0x96   : > { %2085 = vperm.xlu0 %2765, %v2027_v61  }
  0x98   : > { %1967 = vperm.xlu1 %2766, %v1901_v62  }
  0x9a   : > { %1593 = vmatmul.mubr.bf16.gmra.mrb[4].mxu1 %v2475_v33  ;;  %2090 = vperm.xlu0 %2765, %v2028_v9  }
  0x9b   : > { %1819 = vmatmul.mubr.bf16.gmra.mrb[4].mxu0 %v2479_v34  ;;  %1602 = vmatprep.mubr.bf16.mxu1 %v2484_v35 }
  0x9c   : > { %1828 = vmatprep.mubr.bf16.mxu0 %v2488_v36  ;;  %1972 = vperm.xlu1 %2766, %v1902_v10  }
  0x9e   : > { %2095 = vperm.xlu0 %2765, %v2029_v15  }
  0xa0   : > { %1977 = vperm.xlu1 %2766, %v1903_v16  }
  0xa2   : > { %1603 = vmatmul.mubr.bf16.gmra.mrb[8].mxu1 %v2483_v45  ;;  %2100 = vperm.xlu0 %2765, %v2030_v21  }
  0xa3   : > { %1829 = vmatmul.mubr.bf16.gmra.mrb[8].mxu0 %v2487_v46  ;;  %1612 = vmatprep.mubr.bf16.mxu1 %v2492_v47 }
  0xa4   : > { %1838 = vmatprep.mubr.bf16.mxu0 %v2496_v48  ;;  %1982 = vperm.xlu1 %2766, %v1904_v22  }
  0xa6   : > { %2105 = vperm.xlu0 %2765, %v2031_v27  }
  0xa8   : > { %2110 = vperm.xlu1 %2766, %v2032_v28  }
  0xaa   : > { %1613 = vmatmul.mubr.bf16.gmra.mrb[12].mxu1 %v2491_v57 }
  0xab   : > { %1839 = vmatmul.mubr.bf16.gmra.mrb[12].mxu0 %v2495_v58  ;;  %1622 = vmatprep.mubr.bf16.mxu1 %v2500_v59 }
  0xac   : > { %1848 = vmatprep.mubr.bf16.mxu0 %v2504_v60 }
  0xb2   : > { %1623 = vmatmul.mubr.bf16.gmra.mrb[16].mxu1 %v2499_v11 }
  0xb3   : > { %1849 = vmatmul.mubr.bf16.gmra.mrb[16].mxu0 %v2503_v12  ;;  %1632 = vmatprep.mubr.bf16.mxu1 %v2508_v13  ;;  %v2241_v13 = vld [vmem:[%s3677_s4] sm:$0xff] }
  0xb4   : > { %1858 = vmatprep.mubr.bf16.mxu0 %v2512_v14 }
  0xba   : > { %1633 = vmatmul.mubr.bf16.gmra.mrb[20].mxu1 %v2507_v23 }
  0xbb   : > { %1859 = vmatmul.mubr.bf16.gmra.mrb[20].mxu0 %v2511_v24  ;;  %1642 = vmatprep.mubr.bf16.mxu1 %v2516_v25 }
  0xbc   : > { %1868 = vmatprep.mubr.bf16.mxu0 %v2520_v26 }
  0xc2   : > { %1643 = vmatmul.mubr.bf16.gmra.mrb[24].mxu1 %v2515_v2 }
  0xc3   : > { %1869 = vmatmul.mubr.bf16.gmra.mrb[24].mxu0 %v2519_v3  ;;  %1652 = vmatprep.mubr.bf16.mxu1 %v2524_v5  ;;  %v2243_v5 = vld [vmem:[%s3677_s4 + $0x10] sm:$0xff] }
  0xc4   : > { %1878 = vmatprep.mubr.bf16.mxu0 %v2528_v6  ;;  %v2244_v6 = vld [vmem:[%s3677_s4 + $0x18] sm:$0xff] }
  0xca   : > { %1653 = vmatmul.mubr.bf16.gmra.mrb[28].mxu1 %v2523_v31 }
  0xcb   : > { %1879 = vmatmul.mubr.bf16.gmra.mrb[28].mxu0 %v2527_v32 }
  0xd5   : > { %v1908_v33 = vpop.permute.xlu0 %1907 }
  0xd6   : > { %v3469_v34 = vpop.permute.xlu1 %1917 }
  0xd9   : > { %v1913_v35 = vpop.permute.xlu0 %1912 }
  0xdd   : > { %v2036_v36 = vpop.permute.xlu1 %2035 }
  0xde   : > { %v2041_v37 = vpop.permute.xlu0 %2040 }
  0xe5   : > { %v3471_v38 = vpop.permute.xlu1 %1922 }
  0xe9   : > { %v3475_v40 = vpop.permute.xlu1 %1927 }
  0xed   : > { %v3473_v39 = vpop.permute.xlu0 %2045 }
  0xf1   : > { %v3477_v41 = vpop.permute.xlu0 %2050 }
  0xf5   : > { %v3479_v42 = vpop.permute.xlu1 %1932 }
  0xf6   : > { %v3481_v43 = vpop.permute.xlu0 %2055 }
  0xf9   : > { %v3483_v44 = vpop.permute.xlu1 %1937 }
  0xfd   : > { %v3485_v45 = vpop.permute.xlu0 %2060 }
  0xfe   : > { %v3487_v46 = vpop.permute.xlu1 %1942 }
 0x101   : > { %v3489_v47 = vpop.permute.xlu0 %2065 }
 0x105   : > { %v3491_v48 = vpop.permute.xlu1 %1947 }
 0x106   : > { %v3493_v9 = vpop.permute.xlu0 %2070 }
 0x109   : > { %v3495_v10 = vpop.permute.xlu1 %1952 }
 0x165   : > { %v1584_v49 = vpop.f32.mrb[0].mxu1 }
 0x166   : > { %v1810_v50 = vpop.f32.mrb[0].mxu0  ;;  %v1586_v52 = vpop.f32.mrb[1].mxu1 }
 0x167   : > { %v2660_v51 = vadd.f32 %v1810_v50, %v1584_v49  ;;  %v1812_v53 = vpop.f32.mrb[1].mxu0  ;;  %v1588_v55 = vpop.f32.mrb[2].mxu1 }
 0x168   : > { %v2661_v54 = vadd.f32 %v1812_v53, %v1586_v52  ;;  %v1814_v56 = vpop.f32.mrb[2].mxu0  ;;  %v1590_v59 = vpop.f32.mrb[3].mxu1 }
 0x169   : > { %v1985_v57 = vmul.f32 %v2660_v51, %v1908_v33  ;;  %v2662_v58 = vadd.f32 %v1814_v56, %v1588_v55  ;;  %v1816_v60 = vpop.f32.mrb[3].mxu0  ;;  %v3518_v55 = vpop.permute.xlu1 %1957 }
 0x16a   : > { %v1986_v61 = vmul.f32 %v2661_v54, %v1908_v33  ;;  %v2663_v62 = vadd.f32 %v1816_v60, %v1590_v59  ;;  %v3516_v54 = vpop.permute.xlu0 %2075 }
 0x16b   : > { %v2113_v63 = vadd.f32 %v2036_v36, %v1985_v57  ;;  %v1987_v4 = vmul.f32 %v2662_v58, %v1913_v35  ;;  %v2245_v57 = vld [vmem:[%s3677_s4 + $0x20] sm:$0xff] }
 0x16c   : > { %v2114_v7 = vadd.f32 %v2036_v36, %v1986_v61  ;;  %v1988_v8 = vmul.f32 %v2663_v62, %v1913_v35  ;;  %v2246_v61 = vld [vmem:[%s3677_s4 + $0x28] sm:$0xff] }
 0x16d   : > { %v2115_v11 = vadd.f32 %v2041_v37, %v1987_v4  ;;  %vm2145_vm0 = vcmp.gt.f32.partialorder %v2113_v63, 0.0  ;;  %v2177_v12 = vmul.f32 0.2, %v2113_v63  ;;  %v1594_v15 = vpop.f32.mrb[4].mxu1 }
 0x16e   : > { %v2116_v14 = vadd.f32 %v2041_v37, %v1988_v8  ;;  %v1820_v16 = vpop.f32.mrb[4].mxu0  ;;  %vm2146_vm1 = vcmp.gt.f32.partialorder %v2114_v7, 0.0  ;;  %v2178_v17 = vmul.f32 0.2, %v2114_v7  ;;  %v1596_v20 = vpop.f32.mrb[5].mxu1 }
 0x16f   : > { %v2664_v19 = vadd.f32 %v1820_v16, %v1594_v15  ;;  %v1822_v21 = vpop.f32.mrb[5].mxu0  ;;  %v2209_v22 = vsel %vm2145_vm0, %v2113_v63, %v2177_v12  ;;  %vm2147_vm2 = vcmp.gt.f32.partialorder %v2115_v11, 0.0  ;;  %v2179_v23 = vmul.f32 0.2, %v2115_v11  ;;  %v1598_v25 = vpop.f32.mrb[6].mxu1 }
 0x170   : > { %v2665_v24 = vadd.f32 %v1822_v21, %v1596_v20  ;;  %v1824_v26 = vpop.f32.mrb[6].mxu0  ;;  %v2210_v27 = vsel %vm2146_vm1, %v2114_v7, %v2178_v17  ;;  %v2273_v28 = vmul.f32 %v2241_v13, %v2209_v22  ;;  %vm2148_vm3 = vcmp.gt.f32.partialorder %v2116_v14, 0.0  ;;  %v1600_v0 = vpop.f32.mrb[7].mxu1  ;;  %v2247_v21 = vld [vmem:[%s3677_s4 + $0x30] sm:$0xff]  ;;  %v2248_v22 = vld [vmem:[%s3677_s4 + $0x38] sm:$0xff] }
 0x171   : > { %v1989_v29 = vmul.f32 %v2664_v19, %v3469_v34  ;;  %v2666_v30 = vadd.f32 %v1824_v26, %v1598_v25  ;;  %v1826_v1 = vpop.f32.mrb[7].mxu0  ;;  %v2274_v2 = vmul.f32 %v2242_v18, %v2210_v27  ;;  %v2180_v3 = vmul.f32 0.2, %v2116_v14 }
 0x172   : > { %v1990_v31 = vmul.f32 %v2665_v24, %v3469_v34  ;;  %v2667_v32 = vadd.f32 %v1826_v1, %v1600_v0  ;;  %v2211_v33 = vsel %vm2147_vm2, %v2115_v11, %v2179_v23 }
 0x173   : > { %v2117_v35 = vadd.f32 %v3473_v39, %v1989_v29  ;;  %v1991_v36 = vmul.f32 %v2666_v30, %v3471_v38  ;;  %v2305_v37 = vadd.f32 %v2274_v2, %v2273_v28  ;;  %v2212_v49 = vsel %vm2148_vm3, %v2116_v14, %v2180_v3  ;;  %v3541_v3 = vpop.permute.xlu0 %2080 }
 0x174   : > { %v2118_v50 = vadd.f32 %v3473_v39, %v1990_v31  ;;  %v1992_v51 = vmul.f32 %v2667_v32, %v3471_v38  ;;  %v2275_v52 = vmul.f32 %v2243_v5, %v2211_v33  ;;  %v2276_v53 = vmul.f32 %v2244_v6, %v2212_v49  ;;  %v3543_v5 = vpop.permute.xlu1 %1962  ;;  %v2249_v31 = vld [vmem:[%s3677_s4 + $0x40] sm:$0xff] }
 0x175   : > { %v2119_v34 = vadd.f32 %v3477_v41, %v1991_v36  ;;  %2306 = vadd.xlane.f32.xlu0 %v2305_v37  ;;  %vm2149_vm4 = vcmp.gt.f32.partialorder %v2117_v35, 0.0  ;;  %v2181_v56 = vmul.f32 0.2, %v2117_v35  ;;  %v1604_v39 = vpop.f32.mrb[8].mxu1  ;;  %v2250_v36 = vld [vmem:[%s3677_s4 + $0x48] sm:$0xff] }
 0x176   : > { %v2120_v58 = vadd.f32 %v3477_v41, %v1992_v51  ;;  %v1830_v59 = vpop.f32.mrb[8].mxu0  ;;  %v2308_v38 = vadd.f32 %v2276_v53, %v2275_v52  ;;  %vm2150_vm5 = vcmp.gt.f32.partialorder %v2118_v50, 0.0  ;;  %v2182_v60 = vmul.f32 0.2, %v2118_v50  ;;  %v1606_v4 = vpop.f32.mrb[9].mxu1 }
 0x177   : > { %v2668_v62 = vadd.f32 %v1830_v59, %v1604_v39  ;;  %v1832_v63 = vpop.f32.mrb[9].mxu0  ;;  %v2213_v7 = vsel %vm2149_vm4, %v2117_v35, %v2181_v56  ;;  %vm2151_vm6 = vcmp.gt.f32.partialorder %v2119_v34, 0.0  ;;  %v2183_v8 = vmul.f32 0.2, %v2119_v34  ;;  %v1608_v12 = vpop.f32.mrb[10].mxu1 }
 0x178   : > { %2309 = vadd.xlane.f32.xlu1 %v2308_v38  ;;  %v2669_v11 = vadd.f32 %v1832_v63, %v1606_v4  ;;  %v1834_v13 = vpop.f32.mrb[10].mxu0  ;;  %v2214_v41 = vsel %vm2150_vm5, %v2118_v50, %v2182_v60  ;;  %v2277_v14 = vmul.f32 %v2245_v57, %v2213_v7  ;;  %vm2152_vm7 = vcmp.gt.f32.partialorder %v2120_v58, 0.0  ;;  %v1610_v17 = vpop.f32.mrb[11].mxu1  ;;  %v2252_v63 = vld [vmem:[%s3677_s4 + $0x58] sm:$0xff] }
 0x179   : > { %v1993_v15 = vmul.f32 %v2668_v62, %v3475_v40  ;;  %v2670_v16 = vadd.f32 %v1834_v13, %v1608_v12  ;;  %v1836_v18 = vpop.f32.mrb[11].mxu0  ;;  %v2278_v19 = vmul.f32 %v2246_v61, %v2214_v41  ;;  %v2184_v20 = vmul.f32 0.2, %v2120_v58  ;;  %v2251_v62 = vld [vmem:[%s3677_s4 + $0x50] sm:$0xff] }
 0x17a   : > { %v1994_v23 = vmul.f32 %v2669_v11, %v3475_v40  ;;  %v2671_v24 = vadd.f32 %v1836_v18, %v1610_v17  ;;  %v2215_v25 = vsel %vm2151_vm6, %v2119_v34, %v2183_v8  ;;  %v3567_v18 = vpop.permute.xlu0 %2085 }
 0x17b   : > { %v2121_v26 = vadd.f32 %v3481_v43, %v1993_v15  ;;  %v1995_v27 = vmul.f32 %v2670_v16, %v3479_v42  ;;  %v2311_v28 = vadd.f32 %v2278_v19, %v2277_v14  ;;  %v2216_v29 = vsel %vm2152_vm7, %v2120_v58, %v2184_v20  ;;  %v3569_v19 = vpop.permute.xlu1 %1967 }
 0x17c   : > { %v2122_v30 = vadd.f32 %v3481_v43, %v1994_v23  ;;  %v1996_v0 = vmul.f32 %v2671_v24, %v3479_v42  ;;  %v2279_v1 = vmul.f32 %v2247_v21, %v2215_v25  ;;  %v2280_v2 = vmul.f32 %v2248_v22, %v2216_v29  ;;  %v2253_v21 = vld [vmem:[%s3677_s4 + $0x60] sm:$0xff]  ;;  %v2254_v25 = vld [vmem:[%s3677_s4 + $0x68] sm:$0xff] }
 0x17d   : > { %v2123_v40 = vadd.f32 %v3485_v45, %v1995_v27  ;;  %2312 = vadd.xlane.f32.xlu0 %v2311_v28  ;;  %vm2153_vm8 = vcmp.gt.f32.partialorder %v2121_v26, 0.0  ;;  %v2185_v6 = vmul.f32 0.2, %v2121_v26  ;;  %v1614_v43 = vpop.f32.mrb[12].mxu1 }
 0x17e   : > { %v2124_v32 = vadd.f32 %v3485_v45, %v1996_v0  ;;  %v1840_v33 = vpop.f32.mrb[12].mxu0  ;;  %v2314_v42 = vadd.f32 %v2280_v2, %v2279_v1  ;;  %vm2154_vm9 = vcmp.gt.f32.partialorder %v2122_v30, 0.0  ;;  %v2186_v35 = vmul.f32 0.2, %v2122_v30  ;;  %v1616_v49 = vpop.f32.mrb[13].mxu1 }
 0x17f   : > { %v2672_v37 = vadd.f32 %v1840_v33, %v1614_v43  ;;  %v1842_v50 = vpop.f32.mrb[13].mxu0  ;;  %v2217_v51 = vsel %vm2153_vm8, %v2121_v26, %v2185_v6  ;;  %vm2155_vm10 = vcmp.gt.f32.partialorder %v2123_v40, 0.0  ;;  %v2187_v52 = vmul.f32 0.2, %v2123_v40  ;;  %v1618_v34 = vpop.f32.mrb[14].mxu1 }
 0x180   : > { %v2673_v53 = vadd.f32 %v1842_v50, %v1616_v49  ;;  %v1844_v56 = vpop.f32.mrb[14].mxu0  ;;  %v2218_v57 = vsel %vm2154_vm9, %v2122_v30, %v2186_v35  ;;  %v2281_v45 = vmul.f32 %v2249_v31, %v2217_v51  ;;  %vm2156_vm11 = vcmp.gt.f32.partialorder %v2124_v32, 0.0  ;;  %v1620_v38 = vpop.f32.mrb[15].mxu1  ;;  %v2255_v35 = vld [vmem:[%s3677_s4 + $0x70] sm:$0xff] }
 0x181   : > { %v1997_v58 = vmul.f32 %v2672_v37, %v3483_v44  ;;  %v2674_v39 = vadd.f32 %v1844_v56, %v1618_v34  ;;  %v1846_v59 = vpop.f32.mrb[15].mxu0  ;;  %2315 = vadd.xlane.f32.xlu0 %v2314_v42  ;;  %v2282_v60 = vmul.f32 %v2250_v36, %v2218_v57  ;;  %v2188_v61 = vmul.f32 0.2, %v2124_v32  ;;  %v2256_v36 = vld [vmem:[%s3677_s4 + $0x78] sm:$0xff] }
 0x182   : > { %v1998_v4 = vmul.f32 %v2673_v53, %v3483_v44  ;;  %v2675_v7 = vadd.f32 %v1846_v59, %v1620_v38  ;;  %v2219_v8 = vsel %vm2155_vm10, %v2123_v40, %v2187_v52  ;;  %v3592_v59 = vpop.permute.xlu1 %1972 }
 0x183   : > { %v2125_v11 = vadd.f32 %v3489_v47, %v1997_v58  ;;  %v1999_v12 = vmul.f32 %v2674_v39, %v3487_v46  ;;  %v2317_v13 = vadd.f32 %v2282_v60, %v2281_v45  ;;  %v2220_v41 = vsel %vm2156_vm11, %v2124_v32, %v2188_v61  ;;  %v2091_v39 = vpop.permute.xlu0 %2090  ;;  %v2257_v60 = vld [vmem:[%s3677_s4 + $0x80] sm:$0xff] }
 0x184   : > { %v2126_v14 = vadd.f32 %v3489_v47, %v1998_v4  ;;  %v2000_v15 = vmul.f32 %v2675_v7, %v3487_v46  ;;  %v2283_v16 = vmul.f32 %v2251_v62, %v2219_v8  ;;  %v2284_v17 = vmul.f32 %v2252_v63, %v2220_v41  ;;  %v2258_v4 = vld [vmem:[%s3677_s4 + $0x88] sm:$0xff] }
 0x185   : > { %v2127_v44 = vadd.f32 %v3493_v9, %v1999_v12  ;;  %2318 = vadd.xlane.f32.xlu1 %v2317_v13  ;;  %vm2157_vm12 = vcmp.gt.f32.partialorder %v2125_v11, 0.0  ;;  %v2189_v20 = vmul.f32 0.2, %v2125_v11  ;;  %v1624_v47 = vpop.f32.mrb[16].mxu1 }
 0x186   : > { %v2128_v22 = vadd.f32 %v3493_v9, %v2000_v15  ;;  %v1850_v23 = vpop.f32.mrb[16].mxu0  ;;  %v2320_v46 = vadd.f32 %v2284_v17, %v2283_v16  ;;  %vm2158_vm13 = vcmp.gt.f32.partialorder %v2126_v14, 0.0  ;;  %v2190_v24 = vmul.f32 0.2, %v2126_v14  ;;  %v1626_v28 = vpop.f32.mrb[17].mxu1 }
 0x187   : > { %v2676_v26 = vadd.f32 %v1850_v23, %v1624_v47  ;;  %v1852_v27 = vpop.f32.mrb[17].mxu0  ;;  %v2221_v29 = vsel %vm2157_vm12, %v2125_v11, %v2189_v20  ;;  %vm2159_vm14 = vcmp.gt.f32.partialorder %v2127_v44, 0.0  ;;  %v2191_v30 = vmul.f32 0.2, %v2127_v44  ;;  %v1628_v1 = vpop.f32.mrb[18].mxu1  ;;  %v2259_v23 = vld [vmem:[%s3677_s4 + $0x90] sm:$0xff] }
 0x188   : > { %2321 = vadd.xlane.f32.xlu0 %v2320_v46  ;;  %v2677_v0 = vadd.f32 %v1852_v27, %v1626_v28  ;;  %v1854_v2 = vpop.f32.mrb[18].mxu0  ;;  %v2222_v9 = vsel %vm2158_vm13, %v2126_v14, %v2190_v24  ;;  %v2285_v40 = vmul.f32 %v2253_v21, %v2221_v29  ;;  %vm2160_vm15 = vcmp.gt.f32.partialorder %v2128_v22, 0.0  ;;  %v1630_v32 = vpop.f32.mrb[19].mxu1  ;;  %v2260_v46 = vld [vmem:[%s3677_s4 + $0x98] sm:$0xff] }
 0x189   : > { %v2001_v6 = vmul.f32 %v2676_v26, %v3491_v48  ;;  %v2678_v31 = vadd.f32 %v1854_v2, %v1628_v1  ;;  %v1856_v43 = vpop.f32.mrb[19].mxu0  ;;  %v2286_v33 = vmul.f32 %v2254_v25, %v2222_v9  ;;  %v2192_v42 = vmul.f32 0.2, %v2128_v22 }
 0x18a   : > { %v2002_v37 = vmul.f32 %v2677_v0, %v3491_v48  ;;  %v2679_v49 = vadd.f32 %v1856_v43, %v1630_v32  ;;  %v2223_v50 = vsel %vm2159_vm14, %v2127_v44, %v2191_v30  ;;  %v2261_v32 = vld [vmem:[%s3677_s4 + $0xa0] sm:$0xff] }
 0x18b   : > { %v2129_v51 = vadd.f32 %v3516_v54, %v2001_v6  ;;  %v2003_v52 = vmul.f32 %v2678_v31, %v3495_v10  ;;  %v2323_v53 = vadd.f32 %v2286_v33, %v2285_v40  ;;  %v2224_v34 = vsel %vm2160_vm15, %v2128_v22, %v2192_v42  ;;  %v2096_v40 = vpop.permute.xlu0 %2095  ;;  %v3615_v6 = vpop.permute.xlu1 %1977 }
 0x18c   : > { %v2130_v56 = vadd.f32 %v3516_v54, %v2002_v37  ;;  %v2004_v57 = vmul.f32 %v2679_v49, %v3495_v10  ;;  %v2287_v45 = vmul.f32 %v2255_v35, %v2223_v50  ;;  %v2288_v58 = vmul.f32 %v2256_v36, %v2224_v34 }
 0x18d   : > { %v2131_v48 = vadd.f32 %v3541_v3, %v2003_v52  ;;  %2324 = vadd.xlane.f32.xlu1 %v2323_v53  ;;  %vm2161_vm0 = vcmp.gt.f32.partialorder %v2129_v51, 0.0  ;;  %v2193_v38 = vmul.f32 0.2, %v2129_v51  ;;  %v1634_v62 = vpop.f32.mrb[20].mxu1 }
 0x18e   : > { %v2132_v61 = vadd.f32 %v3541_v3, %v2004_v57  ;;  %v1860_v54 = vpop.f32.mrb[20].mxu0  ;;  %v2326_v63 = vadd.f32 %v2288_v58, %v2287_v45  ;;  %vm2162_vm1 = vcmp.gt.f32.partialorder %v2130_v56, 0.0  ;;  %v2194_v10 = vmul.f32 0.2, %v2130_v56  ;;  %v1636_v11 = vpop.f32.mrb[21].mxu1 }
 0x18f   : > { %v2680_v7 = vadd.f32 %v1860_v54, %v1634_v62  ;;  %v1862_v8 = vpop.f32.mrb[21].mxu0  ;;  %v2225_v12 = vsel %vm2161_vm0, %v2129_v51, %v2193_v38  ;;  %vm2163_vm2 = vcmp.gt.f32.partialorder %v2131_v48, 0.0  ;;  %v2195_v13 = vmul.f32 0.2, %v2131_v48  ;;  %v1638_v14 = vpop.f32.mrb[22].mxu1  ;;  %v2264_v62 = vld [vmem:[%s3677_s4 + $0xb8] sm:$0xff] }
 0x190   : > { %2327 = vadd.xlane.f32.xlu0 %v2326_v63  ;;  %v2681_v41 = vadd.f32 %v1862_v8, %v1636_v11  ;;  %v1864_v15 = vpop.f32.mrb[22].mxu0  ;;  %v2226_v3 = vsel %vm2162_vm1, %v2130_v56, %v2194_v10  ;;  %v2289_v16 = vmul.f32 %v2257_v60, %v2225_v12  ;;  %vm2164_vm3 = vcmp.gt.f32.partialorder %v2132_v61, 0.0  ;;  %v1640_v20 = vpop.f32.mrb[23].mxu1 }
 0x191   : > { %v2005_v17 = vmul.f32 %v2680_v7, %v3518_v55  ;;  %v2682_v44 = vadd.f32 %v1864_v15, %v1638_v14  ;;  %v1866_v21 = vpop.f32.mrb[23].mxu0  ;;  %v2290_v22 = vmul.f32 %v2258_v4, %v2226_v3  ;;  %v2196_v47 = vmul.f32 0.2, %v2132_v61  ;;  %v2101_v12 = vpop.permute.xlu0 %2100 }
 0x192   : > { %v2006_v24 = vmul.f32 %v2681_v41, %v3518_v55  ;;  %v2683_v25 = vadd.f32 %v1866_v21, %v1640_v20  ;;  %v2227_v26 = vsel %vm2163_vm2, %v2131_v48, %v2195_v13  ;;  %v1983_v3 = vpop.permute.xlu1 %1982  ;;  %vm2383_vm0 = vcmask 0  }
 0x193   : > { %v2133_v27 = vadd.f32 %v3567_v18, %v2005_v17  ;;  %v2007_v28 = vmul.f32 %v2682_v44, %v3543_v5  ;;  %v2329_v29 = vadd.f32 %v2290_v22, %v2289_v16  ;;  %v2228_v30 = vsel %vm2164_vm3, %v2132_v61, %v2196_v47  ;;  %v2263_v61 = vld [vmem:[%s3677_s4 + $0xb0] sm:$0xff] }
 0x194   : > { %v2134_v0 = vadd.f32 %v3567_v18, %v2006_v24  ;;  %v2008_v1 = vmul.f32 %v2683_v25, %v3543_v5  ;;  %v2291_v2 = vmul.f32 %v2259_v23, %v2227_v26  ;;  %v2292_v9 = vmul.f32 %v2260_v46, %v2228_v30  ;;  %v2262_v5 = vld [vmem:[%s3677_s4 + $0xa8] sm:$0xff] }
 0x195   : > { %v2135_v31 = vadd.f32 %v2091_v39, %v2007_v28  ;;  %2330 = vadd.xlane.f32.xlu1 %v2329_v29  ;;  %vm2165_vm4 = vcmp.gt.f32.partialorder %v2133_v27, 0.0  ;;  %v2197_v55 = vmul.f32 0.2, %v2133_v27  ;;  %v1644_v33 = vpop.f32.mrb[24].mxu1 }
 0x196   : > { %v2136_v43 = vadd.f32 %v2091_v39, %v2008_v1  ;;  %v1870_v42 = vpop.f32.mrb[24].mxu0  ;;  %v2332_v35 = vadd.f32 %v2292_v9, %v2291_v2  ;;  %vm2166_vm5 = vcmp.gt.f32.partialorder %v2134_v0, 0.0  ;;  %v2198_v18 = vmul.f32 0.2, %v2134_v0  ;;  %v1646_v49 = vpop.f32.mrb[25].mxu1 }
 0x197   : > { %v2684_v36 = vadd.f32 %v1870_v42, %v1644_v33  ;;  %v1872_v37 = vpop.f32.mrb[25].mxu0  ;;  %v2229_v50 = vsel %vm2165_vm4, %v2133_v27, %v2197_v55  ;;  %vm2167_vm6 = vcmp.gt.f32.partialorder %v2135_v31, 0.0  ;;  %v2199_v51 = vmul.f32 0.2, %v2135_v31  ;;  %v1648_v53 = vpop.f32.mrb[26].mxu1 }
 0x198   : > { %2333 = vadd.xlane.f32.xlu0 %v2332_v35  ;;  %v2685_v52 = vadd.f32 %v1872_v37, %v1646_v49  ;;  %v1874_v34 = vpop.f32.mrb[26].mxu0  ;;  %v2230_v56 = vsel %vm2166_vm5, %v2134_v0, %v2198_v18  ;;  %v2293_v57 = vmul.f32 %v2261_v32, %v2229_v50  ;;  %vm2168_vm7 = vcmp.gt.f32.partialorder %v2136_v43, 0.0  ;;  %v1650_v39 = vpop.f32.mrb[27].mxu1  ;;  %v2267_v32 = vld [vmem:[%s3677_s4 + $0xd0] sm:$0xff] }
 0x199   : > { %v2009_v45 = vmul.f32 %v2684_v36, %v3569_v19  ;;  %v2686_v58 = vadd.f32 %v1874_v34, %v1648_v53  ;;  %v1876_v48 = vpop.f32.mrb[27].mxu0  ;;  %v2294_v38 = vmul.f32 %v2262_v5, %v2230_v56  ;;  %v2200_v60 = vmul.f32 0.2, %v2136_v43  ;;  %v2106_v33 = vpop.permute.xlu0 %2105 }
 0x19a   : > { %v2010_v54 = vmul.f32 %v2685_v52, %v3569_v19  ;;  %v2687_v63 = vadd.f32 %v1876_v48, %v1650_v39  ;;  %v2231_v10 = vsel %vm2167_vm6, %v2135_v31, %v2199_v51  ;;  %v2265_v19 = vld [vmem:[%s3677_s4 + $0xc0] sm:$0xff]  ;;  %v2111_v50 = vpop.permute.xlu1 %2110  ;;  %v2270_v48 = vld [vmem:[%s3677_s4 + $0xe8] sm:$0xff] }
 0x19b   : > { %v2137_v4 = vadd.f32 %v2096_v40, %v2009_v45  ;;  %v2011_v7 = vmul.f32 %v2686_v58, %v3592_v59  ;;  %v2335_v8 = vadd.f32 %v2294_v38, %v2293_v57  ;;  %v2232_v11 = vsel %vm2168_vm7, %v2136_v43, %v2200_v60  ;;  %v2268_v43 = vld [vmem:[%s3677_s4 + $0xd8] sm:$0xff] }
 0x19c   : > { %v2138_v13 = vadd.f32 %v2096_v40, %v2010_v54  ;;  %v2012_v41 = vmul.f32 %v2687_v63, %v3592_v59  ;;  %v2295_v14 = vmul.f32 %v2263_v61, %v2231_v10  ;;  %v2296_v15 = vmul.f32 %v2264_v62, %v2232_v11  ;;  %v2266_v59 = vld [vmem:[%s3677_s4 + $0xc8] sm:$0xff]  ;;  %v2271_v61 = vld [vmem:[%s3677_s4 + $0xf0] sm:$0xff]  ;;  %v2272_v10 = vld [vmem:[%s3677_s4 + $0xf8] sm:$0xff] }
 0x19d   : > { %v2139_v16 = vadd.f32 %v2101_v12, %v2011_v7  ;;  %2336 = vadd.xlane.f32.xlu1 %v2335_v8  ;;  %vm2169_vm8 = vcmp.gt.f32.partialorder %v2137_v4, 0.0  ;;  %v2201_v17 = vmul.f32 0.2, %v2137_v4  ;;  %v1654_v20 = vpop.f32.mrb[28].mxu1 }
 0x19e   : > { %v2140_v44 = vadd.f32 %v2101_v12, %v2012_v41  ;;  %v1880_v21 = vpop.f32.mrb[28].mxu0  ;;  %v2338_v22 = vadd.f32 %v2296_v15, %v2295_v14  ;;  %vm2170_vm9 = vcmp.gt.f32.partialorder %v2138_v13, 0.0  ;;  %v2202_v47 = vmul.f32 0.2, %v2138_v13  ;;  %v1656_v24 = vpop.f32.mrb[29].mxu1 }
 0x19f   : > { %v2688_v23 = vadd.f32 %v1880_v21, %v1654_v20  ;;  %v1882_v46 = vpop.f32.mrb[29].mxu0  ;;  %v2233_v25 = vsel %vm2169_vm8, %v2137_v4, %v2201_v17  ;;  %vm2171_vm10 = vcmp.gt.f32.partialorder %v2139_v16, 0.0  ;;  %v2203_v26 = vmul.f32 0.2, %v2139_v16  ;;  %v1658_v28 = vpop.f32.mrb[30].mxu1 }
 0x1a0   : > { %2339 = vadd.xlane.f32.xlu0 %v2338_v22  ;;  %v2689_v27 = vadd.f32 %v1882_v46, %v1656_v24  ;;  %v1884_v29 = vpop.f32.mrb[30].mxu0  ;;  %v2234_v30 = vsel %vm2170_vm9, %v2138_v13, %v2202_v47  ;;  %v2297_v0 = vmul.f32 %v2265_v19, %v2233_v25  ;;  %vm2172_vm11 = vcmp.gt.f32.partialorder %v2140_v44, 0.0  ;;  %v1660_v9 = vpop.f32.mrb[31].mxu1 }
 0x1a1   : > { %v2013_v1 = vmul.f32 %v2688_v23, %v3615_v6  ;;  %v2690_v2 = vadd.f32 %v1884_v29, %v1658_v28  ;;  %v1886_v40 = vpop.f32.mrb[31].mxu0  ;;  %v2298_v31 = vmul.f32 %v2266_v59, %v2234_v30  ;;  %v2204_v55 = vmul.f32 0.2, %v2140_v44 }
 0x1a2   : > { %v2014_v42 = vmul.f32 %v2689_v27, %v3615_v6  ;;  %v2691_v35 = vadd.f32 %v1886_v40, %v1660_v9  ;;  %v2235_v18 = vsel %vm2171_vm10, %v2139_v16, %v2203_v26  ;;  %v2269_v6 = vld [vmem:[%s3677_s4 + $0xe0] sm:$0xff] }
 0x1a3   : > { %v2141_v5 = vadd.f32 %v2106_v33, %v2013_v1  ;;  %v2015_v36 = vmul.f32 %v2690_v2, %v1983_v3  ;;  %v2341_v37 = vadd.f32 %v2298_v31, %v2297_v0  ;;  %v2236_v49 = vsel %vm2172_vm11, %v2140_v44, %v2204_v55 }
 0x1a4   : > { %v2142_v51 = vadd.f32 %v2106_v33, %v2014_v42  ;;  %v2016_v52 = vmul.f32 %v2691_v35, %v1983_v3  ;;  %v2299_v53 = vmul.f32 %v2267_v32, %v2235_v18  ;;  %v2300_v34 = vmul.f32 %v2268_v43, %v2236_v49 }
 0x1a5   : > { %v2143_v56 = vadd.f32 %v2111_v50, %v2015_v36  ;;  %2342 = vadd.xlane.f32.xlu1 %v2341_v37  ;;  %vm2173_vm12 = vcmp.gt.f32.partialorder %v2141_v5, 0.0  ;;  %v2205_v57 = vmul.f32 0.2, %v2141_v5  ;;  %v2375_v37 = vstv %s2374_s25 }
 0x1a6   : > { %v2144_v45 = vadd.f32 %v2111_v50, %v2016_v52  ;;  %v2344_v58 = vadd.f32 %v2300_v34, %v2299_v53  ;;  %vm2174_vm13 = vcmp.gt.f32.partialorder %v2142_v51, 0.0  ;;  %v2206_v39 = vmul.f32 0.2, %v2142_v51 }
 0x1a7   : > { %v2237_v38 = vsel %vm2173_vm12, %v2141_v5, %v2205_v57  ;;  %vm2175_vm14 = vcmp.gt.f32.partialorder %v2143_v56, 0.0  ;;  %v2207_v60 = vmul.f32 0.2, %v2143_v56 }
 0x1a8   : > { %2345 = vadd.xlane.f32.xlu0 %v2344_v58  ;;  %v2238_v62 = vsel %vm2174_vm13, %v2142_v51, %v2206_v39  ;;  %v2301_v54 = vmul.f32 %v2269_v6, %v2237_v38  ;;  %vm2176_vm15 = vcmp.gt.f32.partialorder %v2144_v45, 0.0  ;;  %v2208_v63 = vmul.f32 0.2, %v2144_v45 }
 0x1a9   : > { %v2302_v4 = vmul.f32 %v2270_v48, %v2238_v62  ;;  %v2239_v7 = vsel %vm2175_vm14, %v2143_v56, %v2207_v60 }
 0x1aa   : > { %v2240_v8 = vsel %vm2176_vm15, %v2144_v45, %v2208_v63  ;;  %v2303_v11 = vmul.f32 %v2271_v61, %v2239_v7 }
 0x1ab   : > { %v2347_v12 = vadd.f32 %v2302_v4, %v2301_v54  ;;  %v2304_v13 = vmul.f32 %v2272_v10, %v2240_v8 }
 0x1ad   : > { %2348 = vadd.xlane.f32.xlu1 %v2347_v12  ;;  %v2350_v41 = vadd.f32 %v2304_v13, %v2303_v11 }
 0x1af   : > { %2351 = vadd.xlane.f32.xlu0 %v2350_v41 }
 0x202   : > { %v2307_v14 = vpop.xlane.xlu0 %2306 }
 0x205   : > { %v2310_v3 = vpop.xlane.xlu1 %2309 }
 0x206   : > { %v2353_v16 = vadd.f32 %v2310_v3, %v2307_v14 }
 0x20a   : > { %v2313_v15 = vpop.xlane.xlu0 %2312 }
 0x20b   : > { %v2354_v19 = vadd.f32 %v2353_v16, %v2313_v15 }
 0x20e   : > { %v2316_v17 = vpop.xlane.xlu0 %2315 }
 0x20f   : > { %v2355_v20 = vadd.f32 %v2354_v19, %v2316_v17 }
 0x212   : > { %v2319_v44 = vpop.xlane.xlu1 %2318 }
 0x213   : > { %v2356_v21 = vadd.f32 %v2355_v20, %v2319_v44 }
 0x215   : > { %v2322_v22 = vpop.xlane.xlu0 %2321 }
 0x216   : > { %v2357_v59 = vadd.f32 %v2356_v21, %v2322_v22 }
 0x21a   : > { %v2325_v47 = vpop.xlane.xlu1 %2324 }
 0x21b   : > { %v2358_v23 = vadd.f32 %v2357_v59, %v2325_v47 }
 0x21d   : > { %v2328_v46 = vpop.xlane.xlu0 %2327 }
 0x21e   : > { %v2359_v25 = vadd.f32 %v2358_v23, %v2328_v46 }
 0x222   : > { %v2331_v24 = vpop.xlane.xlu1 %2330 }
 0x223   : > { %v2360_v26 = vadd.f32 %v2359_v25, %v2331_v24 }
 0x225   : > { %v2334_v27 = vpop.xlane.xlu0 %2333 }
 0x226   : > { %v2361_v29 = vadd.f32 %v2360_v26, %v2334_v27 }
 0x22a   : > { %v2337_v28 = vpop.xlane.xlu1 %2336 }
 0x22b   : > { %v2362_v30 = vadd.f32 %v2361_v29, %v2337_v28 }
 0x22d   : > { %v2340_v0 = vpop.xlane.xlu0 %2339 }
 0x22e   : > { %v2363_v2 = vadd.f32 %v2362_v30, %v2340_v0 }
 0x232   : > { %v2343_v1 = vpop.xlane.xlu1 %2342 }
 0x233   : > { %v2364_v9 = vadd.f32 %v2363_v2, %v2343_v1 }
 0x235   : > { %v2346_v40 = vpop.xlane.xlu0 %2345 }
 0x236   : > { %v2365_v31 = vadd.f32 %v2364_v9, %v2346_v40 }
 0x23a   : > { %v2349_v55 = vpop.xlane.xlu1 %2348 }
 0x23b   : > { %v2366_v32 = vadd.f32 %v2365_v31, %v2349_v55 }
 0x23c   : > { %v2352_v43 = vpop.xlane.xlu0 %2351 }
 0x23d   : > { %v2367_v33 = vadd.f32 %v2366_v32, %v2352_v43 }
 0x23f   : > { %v2368_v42 = vrot.slane %v2367_v33, 4 }
 0x241   : > { %v2369_v35 = vadd.f32 %v2368_v42, %v2367_v33 }
 0x243   : > { %v2370_v18 = vrot.slane %v2369_v35, 2 }
 0x245   : > { %v2371_v5 = vadd.f32 %v2370_v18, %v2369_v35 }
 0x247   : > { %v2372_v36 = vrot.slane %v2371_v5, 1 }
 0x249   : > { %v2373_v49 = vadd.f32 %v2372_v36, %v2371_v5 }
 0x24b   : > { %v2376_v50 = vadd.f32 %v2375_v37, %v2373_v49 }
 0x24d   : > { %v2377_v51 = vsub.f32 0.0, %v2376_v50  ;;  %2384 = vst.msk [vmem:[%s284_s5] sm:$0x1] %vm2383_vm0, %v2376_v50 }
 0x24f   : > { %v2378_v52 = vmul.f32 1.442695, %v2377_v51 }
 0x251   : > { %2959 = vpow2.f32 %v2378_v52 }
 0x25b   : > { %v2960_v53 = vpop.eup %2959 }
 0x25c   : > { %v2380_v34 = vadd.f32 1.0, %v2960_v53 }
 0x25e   : > { %2961 = vrcp.f32 %v2380_v34 }
 0x268   : > { %v2962_v56 = vpop.eup %2961 }
 0x269   : > { %2385 = vst.msk [vmem:[%s281_s9] sm:$0x1] %vm2383_vm0, %v2962_v56 }
 0x26a PF: > { %s19_s26 = sadd.s32 1, %s2969_s26  }
 0x26b   : > { %p16_p4 = scmp.ge.s32.totalorder %s19_s26, 4  }
 0x26d   :  { %18 = sbr.rel (!%p16_p4) target bundleno = 2 (0x2), region = 86 }

</bundles_post_ra>
